<compile_context>
chip_gen: v6e
topology: v6e:2x2x1
jax: 0.10.0
libtpu: 0.0.40
codegen_flags: <defaults>
</compile_context>

<pallas_src>
import jax
import jax.numpy as jnp
from jax.experimental import pallas as pl
from jax.experimental.pallas import tpu as pltpu

KH1 = 15  # conv1 kernel height
KW = 3    # all convs have kernel width 3, padding 1 (-> "same" along W)


def _cnn_kernel(x_ref, t1_ref, b1_ref, t2_ref, b2_ref, t3_ref, b3_ref,
                mask_ref, r_ref, out_ref):
    """Fused conv1+relu -> conv2+relu -> conv3 -> mean(W) for one batch block.

    Layouts (per grid step):
      x_ref   : [1, 3*H, Lb]          3 kw-shifted copies of the padded input,
                                      Lb = Bt*(W+2) lanes = (example, column).
      t1/t2/t3: Toeplitz / block-diag weight matrices (precomputed on host).
      mask    : [1, Lb]  1 at real columns, 0 at per-example pad columns.
      r       : [Lb, Bt] segment mean matrix (1/W at real columns of example bt).
      out_ref : [1, h_out*nc, Bt]
    """
    f32 = jnp.float32
    xcat = x_ref[0]                  # [3*H, Lb]
    mask = mask_ref[...]             # [1, Lb]

    # ---- conv1 (+bias, relu) for every (h, oc) at once -----------------------
    y1 = jnp.dot(t1_ref[...], xcat, preferred_element_type=f32)    # [h_out*32, Lb]
    y1 = jnp.maximum(y1 + b1_ref[...], 0.0) * mask                 # zero pad cols

    # +-1 lane shifts (the conv "same" padding); zero column hoisted once.
    zc = jnp.zeros((y1.shape[0], 1), f32)
    l1 = jnp.concatenate([zc, y1[:, :-1]], axis=1)
    r1 = jnp.concatenate([y1[:, 1:], zc], axis=1)
    rhs2 = jnp.concatenate([l1, y1, r1], axis=0)                   # [3*h_out*32, Lb]

    # ---- conv2 (+bias, relu) --------------------------------------------------
    y2 = jnp.dot(t2_ref[...], rhs2, preferred_element_type=f32)    # [h_out*32, Lb]
    y2 = jnp.maximum(y2 + b2_ref[...], 0.0) * mask

    l2 = jnp.concatenate([zc, y2[:, :-1]], axis=1)
    r2 = jnp.concatenate([y2[:, 1:], zc], axis=1)
    rhs3 = jnp.concatenate([l2, y2, r2], axis=0)                   # [3*h_out*32, Lb]

    # ---- conv3, then mean over width folded into one small matmul ------------
    y3 = jnp.dot(t3_ref[...], rhs3, preferred_element_type=f32)    # [h_out*nc, Lb]
    out_ref[0] = jnp.dot(y3, r_ref[...], preferred_element_type=f32) + b3_ref[...]


def simple_nn_1dcnn_robot(x, params, block_batch=None):
    """x: [B, 1, H, W] float32 (NCHW, like PyTorch).  Returns the module output."""
    w1, b1, w2, b2, w3, b3 = params
    b, cin, h, w = x.shape
    assert cin == 1
    assert h >= KH1, "input height must be >= 15 (conv1 kernel height)"
    h_out = h - KH1 + 1
    nc = w3.shape[0]
    wp = w + 2

    # --- batch tiling: several examples per grid step, but keep >= 2 steps -----
    if block_batch is None:
        block_batch = max(1, min(8, pl.cdiv(b, 2)))
    bt = min(block_batch, b)
    nblk = pl.cdiv(b, bt)
    bp = nblk * bt
    lb = bt * wp

    # --- host-side glue: pad/shift input, build Toeplitz / block-diag weights --
    xp = jnp.pad(x[:, 0], ((0, bp - b), (0, 0), (1, 1)))            # [Bp, H, W+2]
    xb = xp.reshape(nblk, bt, h, wp).transpose(0, 2, 1, 3).reshape(nblk, h, lb)
    xl = jnp.pad(xb, ((0, 0), (0, 0), (1, 0)))[:, :, :lb]           # x[..., l-1]
    xr = jnp.pad(xb, ((0, 0), (0, 0), (0, 1)))[:, :, 1:]            # x[..., l+1]
    xsh = jnp.concatenate([xl, xb, xr], axis=1)                     # [nblk, 3H, Lb]

    # conv1 Toeplitz: T1[h*32+oc, kw*H + r] = w1[oc,0,r-h,kw] for 0<=r-h<15.
    w1k = jnp.transpose(w1[:, 0], (0, 2, 1))                        # [32, 3, 15]
    t1 = jnp.zeros((h_out, 32, KW, h), jnp.float32)
    for hh in range(h_out):                                         # trace-time, small
        t1 = t1.at[hh, :, :, hh:hh + KH1].set(w1k)
    t1 = t1.reshape(h_out * 32, KW * h)

    # conv2/conv3 block-diagonal over h: col index = kw*(h_out*32) + h'*32 + ic.
    eye_h = jnp.eye(h_out, dtype=jnp.float32)
    w2k = w2[:, :, 0, :]                                            # [32, 32, 3]
    t2 = jnp.einsum('oik,hg->hokgi', w2k, eye_h).reshape(h_out * 32, KW * h_out * 32)
    w3k = w3[:, :, 0, :]                                            # [nc, 32, 3]
    t3 = jnp.einsum('cik,hg->hckgi', w3k, eye_h).reshape(h_out * nc, KW * h_out * 32)

    b1c = jnp.tile(b1, h_out).reshape(h_out * 32, 1)
    b2c = jnp.tile(b2, h_out).reshape(h_out * 32, 1)
    b3c = jnp.tile(b3, h_out).reshape(h_out * nc, 1)

    # boundary mask over the flat (example, column) lane axis.
    lane = jnp.arange(lb) % wp
    mask = ((lane >= 1) & (lane <= w)).astype(jnp.float32).reshape(1, lb)
    # segment mean matrix: R[bt'*wp + j, bt] = 1/W for real columns of example bt.
    jcol = jnp.arange(wp)
    seg = jnp.where((jcol >= 1) & (jcol <= w), 1.0 / w, 0.0).astype(jnp.float32)
    rmat = jnp.einsum('j,bc->bjc', seg, jnp.eye(bt, dtype=jnp.float32)).reshape(lb, bt)

    out3 = pl.pallas_call(
        _cnn_kernel,
        out_shape=jax.ShapeDtypeStruct((nblk, h_out * nc, bt), jnp.float32),
        grid=(nblk,),
        in_specs=[
            pl.BlockSpec((1, KW * h, lb), lambda i: (i, 0, 0)),
            pl.BlockSpec((h_out * 32, KW * h), lambda i: (0, 0)),
            pl.BlockSpec((h_out * 32, 1), lambda i: (0, 0)),
            pl.BlockSpec((h_out * 32, KW * h_out * 32), lambda i: (0, 0)),
            pl.BlockSpec((h_out * 32, 1), lambda i: (0, 0)),
            pl.BlockSpec((h_out * nc, KW * h_out * 32), lambda i: (0, 0)),
            pl.BlockSpec((h_out * nc, 1), lambda i: (0, 0)),
            pl.BlockSpec((1, lb), lambda i: (0, 0)),
            pl.BlockSpec((lb, bt), lambda i: (0, 0)),
        ],
        out_specs=pl.BlockSpec((1, h_out * nc, bt), lambda i: (i, 0, 0)),
        compiler_params=pltpu.CompilerParams(dimension_semantics=("parallel",)),
    )(xsh, t1, b1c, t2, b2c, t3, b3c, mask, rmat)

    # [nblk, h*nc+c, bt] -> [B, nc, h_out]  (layout plumbing in the wrapper)
    out = out3.transpose(0, 2, 1).reshape(bp, h_out, nc).transpose(0, 2, 1)[:b]

    # torch.squeeze(x, dim=2): only removes the height axis if it has size 1.
    if h_out == 1:
        out = out[:, :, 0]
    return out


def _ref_forward(x, params):
    """Pure-JAX reference (mirrors the PyTorch forward exactly)."""
    w1, b1, w2, b2, w3, b3 = params
    dn = ("NCHW", "OIHW", "NCHW")
    y = jax.lax.conv_general_dilated(x, w1, (1, 1), ((0, 0), (1, 1)),
                                     dimension_numbers=dn)
    y = jax.nn.relu(y + b1[None, :, None, None])
    y = jax.lax.conv_general_dilated(y, w2, (1, 1), ((0, 0), (1, 1)),
                                     dimension_numbers=dn)
    y = jax.nn.relu(y + b2[None, :, None, None])
    y = jax.lax.conv_general_dilated(y, w3, (1, 1), ((0, 0), (1, 1)),
                                     dimension_numbers=dn)
    y = y + b3[None, :, None, None]
    if y.shape[2] == 1:
        y = jnp.squeeze(y, axis=2)   # torch.squeeze(x, dim=2)
    return jnp.mean(y, axis=-1)       # torch.mean(x, dim=-1)


def _init_params(key, num_classes=4):
    """Deterministic init matching PyTorch Conv2d default (uniform +-1/sqrt(fan_in))."""
    ks = jax.random.split(key, 6)

    def u(k, shape, fan_in):
        bound = 1.0 / (fan_in ** 0.5)
        return jax.random.uniform(k, shape, jnp.float32, -bound, bound)

    w1 = u(ks[0], (32, 1, KH1, KW), 1 * KH1 * KW)
    b1 = u(ks[1], (32,), 1 * KH1 * KW)
    w2 = u(ks[2], (32, 32, 1, KW), 32 * 1 * KW)
    b2 = u(ks[3], (32,), 32 * 1 * KW)
    w3 = u(ks[4], (num_classes, 32, 1, KW), 32 * 1 * KW)
    b3 = u(ks[5], (num_classes,), 32 * 1 * KW)
    return (w1, b1, w2, b2, w3, b3)


if __name__ == "__main__":
    key = jax.random.PRNGKey(0)
    pkey, xkey = jax.random.split(key)

    params = _init_params(pkey, num_classes=4)
    # Input per the module docstring: [bs, 1, 22, W]; small W for the example.
    x = jax.random.normal(xkey, (2, 1, 22, 16), jnp.float32)

    out = jax.block_until_ready(simple_nn_1dcnn_robot(x, params))
    ref = jax.block_until_ready(_ref_forward(x, params))

    if out.shape != ref.shape or not jnp.allclose(out, ref, rtol=1e-3, atol=1e-3):
        raise AssertionError(
            f"mismatch: kernel {out.shape} vs ref {ref.shape}, "
            f"max abs err {float(jnp.max(jnp.abs(out - ref)))}")

    print("KERNEL_OK")
</pallas_src>

<mosaic_0001>
module attributes {stable_mosaic.version = 11 : i64} {
  func.func @_cnn_kernel(%arg0: i32, %arg1: memref<1x66x18xf32, #tpu.memory_space<vmem>>, %arg2: memref<256x66xf32, #tpu.memory_space<vmem>>, %arg3: memref<256x1xf32, #tpu.memory_space<vmem>>, %arg4: memref<256x768xf32, #tpu.memory_space<vmem>>, %arg5: memref<256x1xf32, #tpu.memory_space<vmem>>, %arg6: memref<32x768xf32, #tpu.memory_space<vmem>>, %arg7: memref<32x1xf32, #tpu.memory_space<vmem>>, %arg8: memref<1x18xf32, #tpu.memory_space<vmem>>, %arg9: memref<18x1xf32, #tpu.memory_space<vmem>>, %arg10: memref<1x32x1xf32, #tpu.memory_space<vmem>>) attributes {dimension_semantics = [#tpu.dimension_semantics<parallel>], iteration_bounds = array<i64: 2>, scalar_prefetch = 0 : i64, scratch_operands = 0 : i64, tpu.core_type = #tpu.core_type<tc>, window_params = [{transform_indices = @transform_0, window_bounds = array<i64: 1, 66, 18>}, {pipeline_mode = #tpu.pipeline_mode<synchronous>, transform_indices = @transform_1, window_bounds = array<i64: 256, 66>}, {pipeline_mode = #tpu.pipeline_mode<synchronous>, transform_indices = @transform_2, window_bounds = array<i64: 256, 1>}, {pipeline_mode = #tpu.pipeline_mode<synchronous>, transform_indices = @transform_3, window_bounds = array<i64: 256, 768>}, {pipeline_mode = #tpu.pipeline_mode<synchronous>, transform_indices = @transform_4, window_bounds = array<i64: 256, 1>}, {pipeline_mode = #tpu.pipeline_mode<synchronous>, transform_indices = @transform_5, window_bounds = array<i64: 32, 768>}, {pipeline_mode = #tpu.pipeline_mode<synchronous>, transform_indices = @transform_6, window_bounds = array<i64: 32, 1>}, {pipeline_mode = #tpu.pipeline_mode<synchronous>, transform_indices = @transform_7, window_bounds = array<i64: 1, 18>}, {pipeline_mode = #tpu.pipeline_mode<synchronous>, transform_indices = @transform_8, window_bounds = array<i64: 18, 1>}, {transform_indices = @transform_9, window_bounds = array<i64: 1, 32, 1>}]} {
    %c0 = arith.constant 0 : index
    %c0_0 = arith.constant 0 : index
    %c0_1 = arith.constant 0 : index
    %0 = vector.load %arg1[%c0, %c0_0, %c0_1] : memref<1x66x18xf32, #tpu.memory_space<vmem>>, vector<1x66x18xf32>
    %1 = vector.shape_cast %0 : vector<1x66x18xf32> to vector<66x18xf32>
    %c0_2 = arith.constant 0 : index
    %c0_3 = arith.constant 0 : index
    %2 = vector.load %arg8[%c0_2, %c0_3] : memref<1x18xf32, #tpu.memory_space<vmem>>, vector<1x18xf32>
    %c0_4 = arith.constant 0 : index
    %c0_5 = arith.constant 0 : index
    %3 = vector.load %arg2[%c0_4, %c0_5] : memref<256x66xf32, #tpu.memory_space<vmem>>, vector<256x66xf32>
    %cst = arith.constant dense<0.000000e+00> : vector<256x18xf32>
    %4 = tpu.matmul %3, %1, %cst {dimension_numbers = #tpu.dot_dimension_numbers<[1], [0], [0], [1], [0, 0, 1, 1], [], []>} : vector<256x66xf32>, vector<66x18xf32>, vector<256x18xf32> -> vector<256x18xf32>
    %c0_6 = arith.constant 0 : index
    %c0_7 = arith.constant 0 : index
    %5 = vector.load %arg3[%c0_6, %c0_7] : memref<256x1xf32, #tpu.memory_space<vmem>>, vector<256x1xf32>
    %6 = vector.broadcast %5 : vector<256x1xf32> to vector<256x18xf32>
    %7 = arith.addf %4, %6 : vector<256x18xf32>
    %cst_8 = arith.constant 0.000000e+00 : f32
    %8 = vector.broadcast %cst_8 : f32 to vector<256x18xf32>
    %9 = arith.maximumf %7, %8 : vector<256x18xf32>
    %10 = vector.broadcast %2 : vector<1x18xf32> to vector<256x18xf32>
    %11 = arith.mulf %9, %10 : vector<256x18xf32>
    %cst_9 = arith.constant 0.000000e+00 : f32
    %12 = vector.broadcast %cst_9 : f32 to vector<256x1xf32>
    %13 = vector.extract_strided_slice %11 {offsets = [0, 0], sizes = [256, 17], strides = [1, 1]} : vector<256x18xf32> to vector<256x17xf32>
    %14 = tpu.concatenate %12, %13 in 1 : vector<256x1xf32>, vector<256x17xf32> -> vector<256x18xf32>
    %15 = vector.extract_strided_slice %11 {offsets = [0, 1], sizes = [256, 17], strides = [1, 1]} : vector<256x18xf32> to vector<256x17xf32>
    %16 = tpu.concatenate %15, %12 in 1 : vector<256x17xf32>, vector<256x1xf32> -> vector<256x18xf32>
    %17 = tpu.concatenate %14, %11, %16 in 0 : vector<256x18xf32>, vector<256x18xf32>, vector<256x18xf32> -> vector<768x18xf32>
    %c0_10 = arith.constant 0 : index
    %c0_11 = arith.constant 0 : index
    %18 = vector.load %arg4[%c0_10, %c0_11] : memref<256x768xf32, #tpu.memory_space<vmem>>, vector<256x768xf32>
    %cst_12 = arith.constant dense<0.000000e+00> : vector<256x18xf32>
    %19 = tpu.matmul %18, %17, %cst_12 {dimension_numbers = #tpu.dot_dimension_numbers<[1], [0], [0], [1], [0, 0, 1, 1], [], []>} : vector<256x768xf32>, vector<768x18xf32>, vector<256x18xf32> -> vector<256x18xf32>
    %c0_13 = arith.constant 0 : index
    %c0_14 = arith.constant 0 : index
    %20 = vector.load %arg5[%c0_13, %c0_14] : memref<256x1xf32, #tpu.memory_space<vmem>>, vector<256x1xf32>
    %21 = vector.broadcast %20 : vector<256x1xf32> to vector<256x18xf32>
    %22 = arith.addf %19, %21 : vector<256x18xf32>
    %cst_15 = arith.constant 0.000000e+00 : f32
    %23 = vector.broadcast %cst_15 : f32 to vector<256x18xf32>
    %24 = arith.maximumf %22, %23 : vector<256x18xf32>
    %25 = vector.broadcast %2 : vector<1x18xf32> to vector<256x18xf32>
    %26 = arith.mulf %24, %25 : vector<256x18xf32>
    %27 = vector.extract_strided_slice %26 {offsets = [0, 0], sizes = [256, 17], strides = [1, 1]} : vector<256x18xf32> to vector<256x17xf32>
    %28 = tpu.concatenate %12, %27 in 1 : vector<256x1xf32>, vector<256x17xf32> -> vector<256x18xf32>
    %29 = vector.extract_strided_slice %26 {offsets = [0, 1], sizes = [256, 17], strides = [1, 1]} : vector<256x18xf32> to vector<256x17xf32>
    %30 = tpu.concatenate %29, %12 in 1 : vector<256x17xf32>, vector<256x1xf32> -> vector<256x18xf32>
    %31 = tpu.concatenate %28, %26, %30 in 0 : vector<256x18xf32>, vector<256x18xf32>, vector<256x18xf32> -> vector<768x18xf32>
    %c0_16 = arith.constant 0 : index
    %c0_17 = arith.constant 0 : index
    %32 = vector.load %arg6[%c0_16, %c0_17] : memref<32x768xf32, #tpu.memory_space<vmem>>, vector<32x768xf32>
    %cst_18 = arith.constant dense<0.000000e+00> : vector<32x18xf32>
    %33 = tpu.matmul %32, %31, %cst_18 {dimension_numbers = #tpu.dot_dimension_numbers<[1], [0], [0], [1], [0, 0, 1, 1], [], []>} : vector<32x768xf32>, vector<768x18xf32>, vector<32x18xf32> -> vector<32x18xf32>
    %c0_19 = arith.constant 0 : index
    %c0_20 = arith.constant 0 : index
    %34 = vector.load %arg9[%c0_19, %c0_20] : memref<18x1xf32, #tpu.memory_space<vmem>>, vector<18x1xf32>
    %cst_21 = arith.constant dense<0.000000e+00> : vector<32x1xf32>
    %35 = tpu.matmul %33, %34, %cst_21 {dimension_numbers = #tpu.dot_dimension_numbers<[1], [0], [0], [1], [0, 0, 1, 1], [], []>} : vector<32x18xf32>, vector<18x1xf32>, vector<32x1xf32> -> vector<32x1xf32>
    %c0_22 = arith.constant 0 : index
    %c0_23 = arith.constant 0 : index
    %36 = vector.load %arg7[%c0_22, %c0_23] : memref<32x1xf32, #tpu.memory_space<vmem>>, vector<32x1xf32>
    %37 = arith.addf %35, %36 : vector<32x1xf32>
    %c0_24 = arith.constant 0 : index
    %c0_25 = arith.constant 0 : index
    %c0_26 = arith.constant 0 : index
    %38 = vector.load %arg10[%c0_24, %c0_25, %c0_26] : memref<1x32x1xf32, #tpu.memory_space<vmem>>, vector<1x32x1xf32>
    %39 = vector.shape_cast %38 : vector<1x32x1xf32> to vector<32x1xf32>
    %40 = vector.shape_cast %37 : vector<32x1xf32> to vector<1x32x1xf32>
    tpu.vector_store %arg10[%c0_24, %c0_25, %c0_26], %40 {strides = array<i32>} : memref<1x32x1xf32, #tpu.memory_space<vmem>>, vector<1x32x1xf32>,
    return
  }
  func.func @transform_0(%arg0: i32) -> (i32, i32, i32) {
    %c0_i32 = arith.constant 0 : i32
    %c0_i32_0 = arith.constant 0 : i32
    %c0_i32_1 = arith.constant 0 : i32
    return %arg0, %c0_i32, %c0_i32_0 : i32, i32, i32
  }
  func.func @transform_1(%arg0: i32) -> (i32, i32) {
    %c0_i32 = arith.constant 0 : i32
    %c0_i32_0 = arith.constant 0 : i32
    %c0_i32_1 = arith.constant 0 : i32
    return %c0_i32, %c0_i32_0 : i32, i32
  }
  func.func @transform_2(%arg0: i32) -> (i32, i32) {
    %c0_i32 = arith.constant 0 : i32
    %c0_i32_0 = arith.constant 0 : i32
    %c0_i32_1 = arith.constant 0 : i32
    return %c0_i32, %c0_i32_0 : i32, i32
  }
  func.func @transform_3(%arg0: i32) -> (i32, i32) {
    %c0_i32 = arith.constant 0 : i32
    %c0_i32_0 = arith.constant 0 : i32
    %c0_i32_1 = arith.constant 0 : i32
    return %c0_i32, %c0_i32_0 : i32, i32
  }
  func.func @transform_4(%arg0: i32) -> (i32, i32) {
    %c0_i32 = arith.constant 0 : i32
    %c0_i32_0 = arith.constant 0 : i32
    %c0_i32_1 = arith.constant 0 : i32
    return %c0_i32, %c0_i32_0 : i32, i32
  }
  func.func @transform_5(%arg0: i32) -> (i32, i32) {
    %c0_i32 = arith.constant 0 : i32
    %c0_i32_0 = arith.constant 0 : i32
    %c0_i32_1 = arith.constant 0 : i32
    return %c0_i32, %c0_i32_0 : i32, i32
  }
  func.func @transform_6(%arg0: i32) -> (i32, i32) {
    %c0_i32 = arith.constant 0 : i32
    %c0_i32_0 = arith.constant 0 : i32
    %c0_i32_1 = arith.constant 0 : i32
    return %c0_i32, %c0_i32_0 : i32, i32
  }
  func.func @transform_7(%arg0: i32) -> (i32, i32) {
    %c0_i32 = arith.constant 0 : i32
    %c0_i32_0 = arith.constant 0 : i32
    %c0_i32_1 = arith.constant 0 : i32
    return %c0_i32, %c0_i32_0 : i32, i32
  }
  func.func @transform_8(%arg0: i32) -> (i32, i32) {
    %c0_i32 = arith.constant 0 : i32
    %c0_i32_0 = arith.constant 0 : i32
    %c0_i32_1 = arith.constant 0 : i32
    return %c0_i32, %c0_i32_0 : i32, i32
  }
  func.func @transform_9(%arg0: i32) -> (i32, i32, i32) {
    %c0_i32 = arith.constant 0 : i32
    %c0_i32_0 = arith.constant 0 : i32
    %c0_i32_1 = arith.constant 0 : i32
    return %arg0, %c0_i32, %c0_i32_0 : i32, i32, i32
  }
}

</mosaic_0001>

<bundles_post_ra>
// kernel: tpu_custom_call.1
= control target key start
LH: loop header
LB: loop body
LE: loop exit
PB: predicated region body
PF: predicated region fallthrough
CT: control target
= control target key end

     0   :  { %14 = vsyncpa [#allocation3], 0  ;;  %s3763_s30 = smov 0   ;;  %s5471_s0 = inlined_call_operand.vmem [shape: f32[2,66,18], index: 0, kind: input, shape index: {}]   ;;  %s5472_s1 = inlined_call_operand.vmem [shape: f32[256,66], index: 1, kind: input, shape index: {}]   ;;  %s5473_s2 = inlined_call_operand.vmem [shape: f32[256,1], index: 2, kind: input, shape index: {}]   ;;  %s5474_s3 = inlined_call_operand.hbm [shape: f32[256,768], index: 3, kind: input, shape index: {}]   ;;  %s5475_s4 = inlined_call_operand.vmem [shape: f32[256,1], index: 4, kind: input, shape index: {}]   ;;  %s5476_s5 = inlined_call_operand.vmem [shape: f32[32,768], index: 5, kind: input, shape index: {}]   ;;  %s5477_s6 = inlined_call_operand.vmem [shape: f32[32,1], index: 6, kind: input, shape index: {}]   ;;  %s5478_s7 = inlined_call_operand.vmem [shape: f32[1,18], index: 7, kind: input, shape index: {}]   ;;  %s5479_s8 = inlined_call_operand.vmem [shape: f32[18,1], index: 8, kind: input, shape index: {}]   ;;  %s5480_s9 = inlined_call_operand.vmem [shape: f32[2,32,1], index: 9, kind: output, shape index: {}]  }
   0x1 LB: > { %s3769_s10 = sadd.s32 4294967295, %s3704_s30   ;;  %p3139_p0 = scmp.ge.s32.totalorder %s3704_s30, 1  ;;  %s3704_s30 = sphi %s3763_s30, %s20_s30  }
   0x2   : > { %p245_p1 = scmp.lt.s32.totalorder %s3704_s30, 3  ;;  %s3706_s11 = smov [#allocation2]  }
   0x3   : > { %s263_s12 = sshll.u32 %s3706_s11, 4  ;;  %p3648_p3 = scmp.eq.s32.totalorder %s3769_s10, 0  ;;  %s264_s12 = int_to_ptr.vmem [resolvable:$true] %s263_s12 }
   0x4   : > { %p3773_p2 = pnand %p3139_p0, %p245_p1  ;;  %s3679_s14 = scalar_lea.vmem %s264_s12, 24576 }
   0x5   : > { %p3680_p7 = scmp.ne.s32.totalorder %s264_s12, %s3679_s14  ;;  %p3687_p10 = scmp.lt.s32.totalorder %s264_s12, %s264_s12 }
   0x6   : > { %p3644_p4 = pneg %p3773_p2  ;;  %p3688_p11 = scmp.lt.s32.totalorder %s3679_s14, %s3679_s14 }
   0x8   : > { %p3645_p5 = pnand %p3648_p3, %p3644_p4  ;;  %p3689_p12 = por %p3688_p11, %p3687_p10 }
   0xa   : > { %p3670_p6 = pneg %p3645_p5 }
   0xc   : > { %p3682_p8 = pnand %p3680_p7, %p3670_p6 }
   0xe   : > { %p3683_p9 = pneg %p3682_p8 }
  0x10   : > { %p3690_p13 = pnand %p3689_p12, %p3683_p9 }
  0x12   : > { %3693 = shalt.err (!%p3690_p13)
}
  0x13   : > { %s3707_s15 = smov 768   ;;  %s3708_s16 = smov 48  }
  0x14   : > { %3647 = dma.hbm_to_vmem [thread:$0]  (!%p3645_p5), %s5474_s3, 24576, %s264_s12, [#allocation3], %s3707_s15, %s3707_s15, %s3708_s16  }
  0x15   : > { %302 = sbr.rel (%p3773_p2) target bundleno = 1531 (0x5fb), region = 56 }
  0x1a   : > { %3699 = dma.done.wait (%p3648_p3), [#allocation3], 24576  }
  0x1b   : > { %3701 = vsyncadd (%p3648_p3), [#allocation3], 4294942720  ;;  %p338_p0 = scmp.lt.s32.totalorder %s3769_s10, 1  ;;  %v3709_v0 = vmov 0   ;;  %vm679_vm0 = vcmask 1041408   ;;  %vm582_vm1 = vcmask 539648  }
  0x1c   : > { %3665 = vset.pattern.permute.xlu0 %v3709_v0  ;;  %3666 = vset.pattern.permute.xlu1 %v3709_v0  ;;  %v358_v4 = vld [vmem:[%s5472_s1] sm:$0xff]  ;;  %v405_v8 = vld [vmem:[%s5473_s2 + $0x78] sm:$0xff]  ;;  %v403_v10 = vld [vmem:[%s5473_s2 + $0x68] sm:$0xff]  ;;  %s3711_s20 = smov 1   ;;  %s3712_s21 = smov 127   ;;  %vm1106_vm2 = vcmask 7168  }
  0x1d   : > { %s5555_s10 = smov (!%p338_p0, %s3769_s10), 1  ;;  %3579 = vmatprep.mubr.msk.f32.mxu0 %vm582_vm1, %v358_v4  ;;  %499 = vperm.xlu0 %3665, %v405_v8   ;;  %v404_v11 = vld [vmem:[%s5473_s2 + $0x70] sm:$0xff]  ;;  %v402_v13 = vld [vmem:[%s5473_s2 + $0x60] sm:$0xff]  ;;  %v401_v15 = vld [vmem:[%s5473_s2 + $0x58] sm:$0xff]  ;;  %vm1235_vm4 = vcmask 138240   ;;  %vm2965_vm5 = vcmask 146432  }
  0x1e   : > { %s3639_s19 = smul.u32 72, %s5555_s10  ;;  %489 = vperm.xlu1 %3666, %v403_v10   ;;  %v359_v16 = vld [vmem:[%s5472_s1 + $0x8] sm:$0xff]  ;;  %v400_v17 = vld [vmem:[%s5473_s2 + $0x50] sm:$0xff]  ;;  %v361_v20 = vld [vmem:[%s5472_s1 + $0x18] sm:$0xff]  ;;  %v3710_v10 = vmov 0.0   ;;  %s3380_s15 = sshll.u32 %s5555_s10, 5 }
  0x1f   : > { %v360_v18 = vld [vmem:[%s5472_s1 + $0x10] sm:$0xff]  ;;  %v399_v19 = vld [vmem:[%s5473_s2 + $0x48] sm:$0xff]  ;;  %v398_v21 = vld [vmem:[%s5473_s2 + $0x40] sm:$0xff]  ;;  %1652 = vmatprep.subr.mxu1 %v3710_v10 }
  0x20   : > { %s3799_s22 = scalar_lea.vmem %s5471_s0, %s3639_s19  ;;  %v362_v22 = vld [vmem:[%s5472_s1 + $0x20] sm:$0xff]  ;;  %v397_v23 = vld [vmem:[%s5473_s2 + $0x38] sm:$0xff]  ;;  %v363_v24 = vld [vmem:[%s5472_s1 + $0x28] sm:$0xff] }
  0x21   : > { %v356_v1 = vld [vmem:[%s3799_s22 + $0x40] sm:$0x3]  ;;  %v355_v2 = vld [vmem:[%s3799_s22 + $0x38] sm:$0xff]  ;;  %v354_v3 = vld [vmem:[%s3799_s22 + $0x30] sm:$0xff]  ;;  %494 = vperm.xlu0 %3665, %v404_v11  }
  0x22   : > { %3561 = vmatprep.subr.msk.mxu0 %vm679_vm0, %v356_v1  ;;  %v353_v5 = vld [vmem:[%s3799_s22 + $0x28] sm:$0xff]  ;;  %v352_v6 = vld [vmem:[%s3799_s22 + $0x20] sm:$0xff]  ;;  %v351_v7 = vld [vmem:[%s3799_s22 + $0x18] sm:$0xff]  ;;  %484 = vperm.xlu1 %3666, %v402_v13  }
  0x23   : > { %3562 = vmatpush3.msk.msra.mxu0 %vm679_vm0, %v356_v1  ;;  %v350_v9 = vld [vmem:[%s3799_s22 + $0x10] sm:$0xff]  ;;  %v349_v12 = vld [vmem:[%s3799_s22 + $0x8] sm:$0xff]  ;;  %v348_v14 = vld [vmem:[%s3799_s22] sm:$0xff] }
  0x24   : > { %3563 = vmatprep.subr.mxu0 %v355_v2  ;;  %v396_v25 = vld [vmem:[%s5473_s2 + $0x30] sm:$0xff]  ;;  %v395_v27 = vld [vmem:[%s5473_s2 + $0x28] sm:$0xff]  ;;  %v365_v28 = vld [vmem:[%s5472_s1 + $0x38] sm:$0xff] }
  0x25   : > { %3564 = vmatpush3.msra.mxu0 %v355_v2  ;;  %479 = vperm.xlu0 %3665, %v401_v15   ;;  %v364_v26 = vld [vmem:[%s5472_s1 + $0x30] sm:$0xff]  ;;  %v394_v29 = vld [vmem:[%s5473_s2 + $0x20] sm:$0xff]  ;;  %v393_v31 = vld [vmem:[%s5473_s2 + $0x18] sm:$0xff] }
  0x26   : > { %3565 = vmatprep.subr.mxu0 %v354_v3  ;;  %474 = vperm.xlu1 %3666, %v400_v17   ;;  %v366_v30 = vld [vmem:[%s5472_s1 + $0x40] sm:$0xff]  ;;  %v367_v32 = vld [vmem:[%s5472_s1 + $0x48] sm:$0xff]  ;;  %v392_v33 = vld [vmem:[%s5473_s2 + $0x10] sm:$0xff] }
  0x27   : > { %3566 = vmatpush3.msra.mxu0 %v354_v3  ;;  %v368_v34 = vld [vmem:[%s5472_s1 + $0x50] sm:$0xff]  ;;  %v391_v35 = vld [vmem:[%s5473_s2 + $0x8] sm:$0xff]  ;;  %v369_v36 = vld [vmem:[%s5472_s1 + $0x58] sm:$0xff] }
  0x28   : > { %3567 = vmatprep.subr.mxu0 %v353_v5  ;;  %v390_v37 = vld [vmem:[%s5473_s2] sm:$0xff]  ;;  %v421_v39 = vld [vmem:[%s5473_s2 + $0xf8] sm:$0xff]  ;;  %v371_v40 = vld [vmem:[%s5472_s1 + $0x68] sm:$0xff] }
  0x29   : > { %3568 = vmatpush3.msra.mxu0 %v353_v5  ;;  %469 = vperm.xlu0 %3665, %v399_v19   ;;  %v370_v38 = vld [vmem:[%s5472_s1 + $0x60] sm:$0xff]  ;;  %v420_v41 = vld [vmem:[%s5473_s2 + $0xf0] sm:$0xff]  ;;  %v419_v43 = vld [vmem:[%s5473_s2 + $0xe8] sm:$0xff] }
  0x2a   : > { %3569 = vmatprep.subr.mxu0 %v352_v6  ;;  %464 = vperm.xlu1 %3666, %v398_v21   ;;  %v372_v42 = vld [vmem:[%s5472_s1 + $0x70] sm:$0xff]  ;;  %v373_v44 = vld [vmem:[%s5472_s1 + $0x78] sm:$0xff]  ;;  %v418_v45 = vld [vmem:[%s5473_s2 + $0xe0] sm:$0xff] }
  0x2b   : > { %3570 = vmatpush3.msra.mxu0 %v352_v6  ;;  %v374_v46 = vld [vmem:[%s5472_s1 + $0x80] sm:$0xff]  ;;  %v417_v47 = vld [vmem:[%s5473_s2 + $0xd8] sm:$0xff]  ;;  %v375_v48 = vld [vmem:[%s5472_s1 + $0x88] sm:$0xff] }
  0x2c   : > { %3571 = vmatprep.subr.mxu0 %v351_v7  ;;  %v416_v49 = vld [vmem:[%s5473_s2 + $0xd0] sm:$0xff]  ;;  %v415_v51 = vld [vmem:[%s5473_s2 + $0xc8] sm:$0xff]  ;;  %v377_v52 = vld [vmem:[%s5472_s1 + $0x98] sm:$0xff] }
  0x2d   : > { %3572 = vmatpush3.msra.mxu0 %v351_v7  ;;  %459 = vperm.xlu0 %3665, %v397_v23   ;;  %v376_v50 = vld [vmem:[%s5472_s1 + $0x90] sm:$0xff]  ;;  %v414_v53 = vld [vmem:[%s5473_s2 + $0xc0] sm:$0xff]  ;;  %v413_v55 = vld [vmem:[%s5473_s2 + $0xb8] sm:$0xff] }
  0x2e   : > { %3573 = vmatprep.subr.mxu0 %v350_v9  ;;  %454 = vperm.xlu1 %3666, %v396_v25   ;;  %v378_v54 = vld [vmem:[%s5472_s1 + $0xa0] sm:$0xff]  ;;  %v379_v56 = vld [vmem:[%s5472_s1 + $0xa8] sm:$0xff]  ;;  %v412_v57 = vld [vmem:[%s5473_s2 + $0xb0] sm:$0xff] }
  0x2f   : > { %3574 = vmatpush3.msra.mxu0 %v350_v9  ;;  %v380_v58 = vld [vmem:[%s5472_s1 + $0xb0] sm:$0xff]  ;;  %v411_v59 = vld [vmem:[%s5473_s2 + $0xa8] sm:$0xff]  ;;  %v381_v60 = vld [vmem:[%s5472_s1 + $0xb8] sm:$0xff] }
  0x30   : > { %3575 = vmatprep.subr.mxu0 %v349_v12  ;;  %v410_v61 = vld [vmem:[%s5473_s2 + $0xa0] sm:$0xff]  ;;  %v409_v63 = vld [vmem:[%s5473_s2 + $0x98] sm:$0xff]  ;;  %v383_v0 = vld [vmem:[%s5472_s1 + $0xc8] sm:$0xff] }
  0x31   : > { %3576 = vmatpush3.msra.mxu0 %v349_v12  ;;  %449 = vperm.xlu0 %3665, %v395_v27   ;;  %v382_v62 = vld [vmem:[%s5472_s1 + $0xc0] sm:$0xff]  ;;  %v408_v1 = vld [vmem:[%s5473_s2 + $0x90] sm:$0xff]  ;;  %v407_v3 = vld [vmem:[%s5473_s2 + $0x88] sm:$0xff] }
  0x32   : > { %3577 = vmatprep.subr.mxu0 %v348_v14  ;;  %444 = vperm.xlu1 %3666, %v394_v29   ;;  %v384_v2 = vld [vmem:[%s5472_s1 + $0xd0] sm:$0xff]  ;;  %v385_v4 = vld [vmem:[%s5472_s1 + $0xd8] sm:$0xff]  ;;  %v406_v5 = vld [vmem:[%s5473_s2 + $0x80] sm:$0xff] }
  0x33   : > { %3578 = vmatpush3.msra.mxu0 %v348_v14  ;;  %v386_v6 = vld [vmem:[%s5472_s1 + $0xe0] sm:$0xff]  ;;  %v387_v7 = vld [vmem:[%s5472_s1 + $0xe8] sm:$0xff]  ;;  %v388_v8 = vld [vmem:[%s5472_s1 + $0xf0] sm:$0xff] }
  0x34   : > { %3580 = vmatmul.mubr.msk.f32.vlgmr.msra.gmra.mxu0 %vm582_vm1, %v359_v16  ;;  %v389_v9 = vld [vmem:[%s5472_s1 + $0xf8] sm:$0xff]  ;;  %1877 = vmatprep.subr.mxu0 %v3710_v10  ;;  %vm4386_vm3 = vmneg %vm1106_vm2 }
  0x35   : > { %3582 = vmatprep.mubr.msk.f32.mxu0 %vm582_vm1, %v360_v18  ;;  %439 = vperm.xlu0 %3665, %v393_v31  }
  0x36   : > { %434 = vperm.xlu1 %3666, %v392_v33  }
  0x38   : > { %3583 = vmatmul.mubr.msk.f32.gmra.mxu0 %vm582_vm1, %v361_v20 }
  0x39   : > { %3585 = vmatprep.mubr.msk.f32.mxu0 %vm582_vm1, %v362_v22  ;;  %429 = vperm.xlu0 %3665, %v391_v35  }
  0x3a   : > { %424 = vperm.xlu1 %3666, %v390_v37  }
  0x3c   : > { %3586 = vmatmul.mubr.msk.f32.gmra.mxu0 %vm582_vm1, %v363_v24 }
  0x3d   : > { %3588 = vmatprep.mubr.msk.f32.mxu0 %vm582_vm1, %v364_v26  ;;  %579 = vperm.xlu0 %3665, %v421_v39  }
  0x3e   : > { %574 = vperm.xlu1 %3666, %v420_v41  }
  0x40   : > { %3589 = vmatmul.mubr.msk.f32.gmra.mxu0 %vm582_vm1, %v365_v28 }
  0x41   : > { %3591 = vmatprep.mubr.msk.f32.mxu0 %vm582_vm1, %v366_v30  ;;  %569 = vperm.xlu0 %3665, %v419_v43  }
  0x42   : > { %564 = vperm.xlu1 %3666, %v418_v45  }
  0x44   : > { %3592 = vmatmul.mubr.msk.f32.gmra.mxu0 %vm582_vm1, %v367_v32 }
  0x45   : > { %3594 = vmatprep.mubr.msk.f32.mxu0 %vm582_vm1, %v368_v34  ;;  %559 = vperm.xlu0 %3665, %v417_v47  }
  0x46   : > { %554 = vperm.xlu1 %3666, %v416_v49  }
  0x48   : > { %3595 = vmatmul.mubr.msk.f32.gmra.mxu0 %vm582_vm1, %v369_v36 }
  0x49   : > { %3597 = vmatprep.mubr.msk.f32.mxu0 %vm582_vm1, %v370_v38  ;;  %549 = vperm.xlu0 %3665, %v415_v51  }
  0x4a   : > { %544 = vperm.xlu1 %3666, %v414_v53  }
  0x4c   : > { %3598 = vmatmul.mubr.msk.f32.gmra.mxu0 %vm582_vm1, %v371_v40 }
  0x4d   : > { %3600 = vmatprep.mubr.msk.f32.mxu0 %vm582_vm1, %v372_v42  ;;  %539 = vperm.xlu0 %3665, %v413_v55  }
  0x4e   : > { %534 = vperm.xlu1 %3666, %v412_v57  }
  0x50   : > { %3601 = vmatmul.mubr.msk.f32.gmra.mxu0 %vm582_vm1, %v373_v44 }
  0x51   : > { %3603 = vmatprep.mubr.msk.f32.mxu0 %vm582_vm1, %v374_v46  ;;  %529 = vperm.xlu0 %3665, %v411_v59   ;;  %v4059_v46 = vld [vmem:[%s5478_s7] ss:$0 sm:$0xff] }
  0x52   : > { %524 = vperm.xlu1 %3666, %v410_v61  }
  0x54   : > { %3604 = vmatmul.mubr.msk.f32.gmra.mxu0 %vm582_vm1, %v375_v48 }
  0x55   : > { %3606 = vmatprep.mubr.msk.f32.mxu0 %vm582_vm1, %v376_v50  ;;  %519 = vperm.xlu0 %3665, %v409_v63  }
  0x56   : > { %514 = vperm.xlu1 %3666, %v408_v1  }
  0x58   : > { %3607 = vmatmul.mubr.msk.f32.gmra.mxu0 %vm582_vm1, %v377_v52 }
  0x59   : > { %3609 = vmatprep.mubr.msk.f32.mxu0 %vm582_vm1, %v378_v54  ;;  %509 = vperm.xlu0 %3665, %v407_v3  }
  0x5a   : > { %504 = vperm.xlu1 %3666, %v406_v5  }
  0x5c   : > { %3610 = vmatmul.mubr.msk.f32.gmra.mxu0 %vm582_vm1, %v379_v56 }
  0x5d   : > { %3612 = vmatprep.mubr.msk.f32.mxu0 %vm582_vm1, %v380_v58 }
  0x60   : > { %3613 = vmatmul.mubr.msk.f32.gmra.mxu0 %vm582_vm1, %v381_v60 }
  0x61   : > { %3615 = vmatprep.mubr.msk.f32.mxu0 %vm582_vm1, %v382_v62 }
  0x64   : > { %3616 = vmatmul.mubr.msk.f32.gmra.mxu0 %vm582_vm1, %v383_v0 }
  0x65   : > { %3618 = vmatprep.mubr.msk.f32.mxu0 %vm582_vm1, %v384_v2 }
  0x68   : > { %3619 = vmatmul.mubr.msk.f32.gmra.mxu0 %vm582_vm1, %v385_v4 }
  0x69   : > { %3621 = vmatprep.mubr.msk.f32.mxu0 %vm582_vm1, %v386_v6 }
  0x6c   : > { %3622 = vmatmul.mubr.msk.f32.gmra.mxu0 %vm582_vm1, %v387_v7 }
  0x6d   : > { %3624 = vmatprep.mubr.msk.f32.mxu0 %vm582_vm1, %v388_v8 }
  0x70   : > { %3625 = vmatmul.mubr.msk.f32.gmra.mxu0 %vm582_vm1, %v389_v9 }
  0x98   : > { %v500_v11 = vpop.permute.xlu0 %499 }
  0x99   : > { %v490_v12 = vpop.permute.xlu1 %489 }
  0x9c   : > { %v495_v13 = vpop.permute.xlu0 %494 }
  0x9d   : > { %v485_v15 = vpop.permute.xlu1 %484 }
  0xa0   : > { %v480_v18 = vpop.permute.xlu0 %479 }
  0xa1   : > { %v475_v20 = vpop.permute.xlu1 %474 }
  0xa4   : > { %v470_v23 = vpop.permute.xlu0 %469 }
  0xa5   : > { %v465_v25 = vpop.permute.xlu1 %464 }
  0xa8   : > { %v460_v28 = vpop.permute.xlu0 %459 }
  0xa9   : > { %v455_v30 = vpop.permute.xlu1 %454 }
  0xac   : > { %v450_v33 = vpop.permute.xlu0 %449 }
  0xad   : > { %v4050_v35 = vpop.permute.xlu1 %444 }
  0xb0   : > { %v4052_v40 = vpop.permute.xlu0 %439 }
  0xb1   : > { %v4054_v45 = vpop.permute.xlu1 %434 }
  0xb4   : > { %v4074_v56 = vpop.permute.xlu0 %429 }
  0xb5   : > { %v4085_v61 = vpop.permute.xlu1 %424 }
  0xb8   : > { %v4105_v6 = vpop.permute.xlu0 %579 }
  0xf4   : > { %v4038_v14 = vpop.f32.mrf.mxu0 }
  0xf6   : > { %v4040_v16 = vpop.f32.mrf.mxu0 }
  0xf8   : > { %v4042_v17 = vpop.f32.mrf.mxu0 }
  0xfa   : > { %v4044_v19 = vpop.f32.mrf.mxu0 }
  0xfc   : > { %v4046_v21 = vpop.f32.mrf.mxu0 }
  0xfe   : > { %v4048_v22 = vpop.f32.mrf.mxu0 }
 0x100   : > { %v3590_v24 = vpop.f32.mrf.mxu0 }
 0x101   : > { %v785_v3 = vadd.f32 %v3590_v24, %v460_v28  ;;  %v770_v24 = vadd.f32 %v4048_v22, %v4050_v35  ;;  %v765_v28 = vadd.f32 %v4042_v17, %v4052_v40  ;;  %v755_v35 = vadd.f32 %v4038_v14, %v4074_v56 }
 0x102   : > { %v779_v26 = vpop.f32.mrf.mxu0 }
 0x103   : > { %v780_v8 = vadd.f32 %v779_v26, %v455_v30  ;;  %v570_v26 = vpop.permute.xlu0 %569 }
 0x104   : > { %v3593_v27 = vpop.f32.mrf.mxu0 }
 0x105   : > { %v795_v58 = vadd.f32 %v3593_v27, %v470_v23 }
 0x106   : > { %v789_v29 = vpop.f32.mrf.mxu0 }
 0x107   : > { %v790_v63 = vadd.f32 %v789_v29, %v465_v25  ;;  %v917_v4 = vmax.f32 %v795_v58, 0.0  ;;  %v914_v25 = vmax.f32 %v780_v8, 0.0 }
 0x108   : > { %v3596_v31 = vpop.f32.mrf.mxu0 }
 0x109   : > { %v805_v48 = vadd.f32 %v3596_v31, %v480_v18  ;;  %v916_v9 = vmax.f32 %v790_v63, 0.0  ;;  %v915_v18 = vmax.f32 %v785_v3, 0.0  ;;  %v4159_v17 = vmul.f32 %v4059_v46, %v914_v25 }
 0x10a   : > { %v799_v32 = vpop.f32.mrf.mxu0 }
 0x10b   : > { %v800_v53 = vadd.f32 %v799_v32, %v475_v20  ;;  %v919_v59 = vmax.f32 %v805_v48, 0.0  ;;  %v4123_v20 = vmul.f32 %v4059_v46, %v917_v4  ;;  %v4145_v22 = vmul.f32 %v4059_v46, %v915_v18 }
 0x10c   : > { %v3599_v34 = vpop.f32.mrf.mxu0  ;;  %v760_v32 = vadd.f32 %v4044_v19, %v4054_v45  ;;  %v560_v19 = vpop.permute.xlu0 %559 }
 0x10d   : > { %v815_v38 = vadd.f32 %v3599_v34, %v490_v12  ;;  %v918_v0 = vmax.f32 %v800_v53, 0.0  ;;  %v4100_v5 = vmul.f32 %v4059_v46, %v919_v59  ;;  %v4116_v12 = vpop.permute.xlu1 %574 }
 0x10e   : > { %v809_v36 = vpop.f32.mrf.mxu0  ;;  %v910_v40 = vmax.f32 %v760_v32, 0.0 }
 0x10f   : > { %v810_v42 = vadd.f32 %v809_v36, %v485_v15  ;;  %v921_v49 = vmax.f32 %v815_v38, 0.0  ;;  %v775_v15 = vadd.f32 %v4046_v21, %v450_v33  ;;  %v4137_v21 = vmul.f32 %v4059_v46, %v916_v9 }
 0x110   : > { %v3602_v37 = vpop.f32.mrf.mxu0  ;;  %v912_v33 = vmax.f32 %v770_v24, 0.0  ;;  %v911_v36 = vmax.f32 %v765_v28, 0.0  ;;  %v4191_v48 = vmul.f32 %v4059_v46, %v910_v40 }
 0x111   : > { %v825_v39 = vadd.f32 %v3602_v37, %v500_v11  ;;  %v920_v54 = vmax.f32 %v810_v42, 0.0  ;;  %v4080_v60 = vmul.f32 %v4059_v46, %v921_v49  ;;  %v4114_v11 = vmul.f32 %v4059_v46, %v918_v0  ;;  %v565_v30 = vpop.permute.xlu1 %564  ;;  %v550_v49 = vpop.permute.xlu0 %549 }
 0x112   : > { %v819_v41 = vpop.f32.mrf.mxu0  ;;  %v913_v29 = vmax.f32 %v775_v15, 0.0  ;;  %v4177_v14 = vmul.f32 %v4059_v46, %v912_v33 }
 0x113   : > { %v923_v43 = vmax.f32 %v825_v39, 0.0  ;;  %v820_v44 = vadd.f32 %v819_v41, %v495_v13  ;;  %v4091_v1 = vmul.f32 %v4059_v46, %v920_v54  ;;  %v750_v39 = vadd.f32 %v4040_v16, %v4085_v61 }
 0x114   : > { %v4061_v47 = vpop.f32.mrf.mxu0  ;;  %v4165_v37 = vmul.f32 %v4059_v46, %v913_v29 }
 0x115   : > { %v4064_v50 = vmul.f32 %v4059_v46, %v923_v43  ;;  %v922_v51 = vmax.f32 %v820_v44, 0.0  ;;  %v555_v41 = vpop.permute.xlu1 %554  ;;  %v909_v43 = vmax.f32 %v755_v35, 0.0  ;;  %v4181_v44 = vmul.f32 %v4059_v46, %v911_v36 }
 0x116   : > { %v4066_v52 = vpop.f32.mrf.mxu0  ;;  %v908_v45 = vmax.f32 %v750_v39, 0.0 }
 0x117   : > { %v4069_v55 = vmul.f32 %v4059_v46, %v922_v51  ;;  %1040 = vrot.lane.b32.xlu0 %v4064_v50, %s3711_s20  ;;  %1878 = vmatpush1.msra.mxu0 %v4064_v50  ;;  %v4195_v53 = vmul.f32 %v4059_v46, %v909_v43 }
 0x118   : > { %v4076_v57 = vpop.f32.mrf.mxu0  ;;  %1879 = vmatprep.subr.mxu0 %v3710_v10  ;;  %v4207_v3 = vmul.f32 %v4059_v46, %v908_v45 }
 0x119   : > { %1038 = vrot.lane.b32.xlu1 %v4069_v55, %s3711_s20  ;;  %1880 = vmatpush1.msra.mxu0 %v4069_v55  ;;  %v545_v58 = vpop.permute.xlu1 %544 }
 0x11a   : > { %v4087_v62 = vpop.f32.mrf.mxu0  ;;  %1881 = vmatprep.subr.mxu0 %v3710_v10 }
 0x11b   : > { %1036 = vrot.lane.b32.xlu0 %v4080_v60, %s3711_s20  ;;  %1882 = vmatpush1.msra.mxu0 %v4080_v60 }
 0x11c   : > { %v4096_v2 = vpop.f32.mrf.mxu0  ;;  %1883 = vmatprep.subr.mxu0 %v3710_v10 }
 0x11d   : > { %1034 = vrot.lane.b32.xlu1 %v4091_v1, %s3711_s20  ;;  %1884 = vmatpush1.msra.mxu0 %v4091_v1  ;;  %v535_v25 = vpop.permute.xlu1 %534 }
 0x11e   : > { %v4107_v7 = vpop.f32.mrf.mxu0  ;;  %1885 = vmatprep.subr.mxu0 %v3710_v10 }
 0x11f   : > { %1032 = vrot.lane.b32.xlu0 %v4100_v5, %s3711_s20  ;;  %1886 = vmatpush1.msra.mxu0 %v4100_v5 }
 0x120   : > { %v4118_v13 = vpop.f32.mrf.mxu0  ;;  %1887 = vmatprep.subr.mxu0 %v3710_v10 }
 0x121   : > { %1030 = vrot.lane.b32.xlu1 %v4114_v11, %s3711_s20  ;;  %1888 = vmatpush1.msra.mxu0 %v4114_v11 }
 0x122   : > { %v4128_v23 = vpop.f32.mrf.mxu0  ;;  %1889 = vmatprep.subr.mxu0 %v3710_v10 }
 0x123   : > { %1028 = vrot.lane.b32.xlu0 %v4123_v20, %s3711_s20  ;;  %1890 = vmatpush1.msra.mxu0 %v4123_v20 }
 0x124   : > { %v4139_v27 = vpop.f32.mrf.mxu0  ;;  %1891 = vmatprep.subr.mxu0 %v3710_v10 }
 0x125   : > { %1026 = vrot.lane.b32.xlu1 %v4137_v21, %s3711_s20  ;;  %1892 = vmatpush1.msra.mxu0 %v4137_v21 }
 0x126   : > { %v4150_v31 = vpop.f32.mrf.mxu0  ;;  %1893 = vmatprep.subr.mxu0 %v3710_v10 }
 0x127   : > { %1024 = vrot.lane.b32.xlu0 %v4145_v22, %s3711_s20  ;;  %1894 = vmatpush1.msra.mxu0 %v4145_v22 }
 0x128   : > { %v3620_v34 = vpop.f32.mrf.mxu0  ;;  %1895 = vmatprep.subr.mxu0 %v3710_v10 }
 0x129   : > { %1022 = vrot.lane.b32.xlu1 %v4159_v17, %s3711_s20  ;;  %1896 = vmatpush1.msra.mxu0 %v4159_v17  ;;  %v885_v4 = vadd.f32 %v3620_v34, %v560_v19  ;;  %v860_v19 = vadd.f32 %v4128_v23, %v535_v25 }
 0x12a   : > { %v879_v38 = vpop.f32.mrf.mxu0  ;;  %1897 = vmatprep.subr.mxu0 %v3710_v10 }
 0x12b   : > { %1020 = vrot.lane.b32.xlu0 %v4165_v37, %s3711_s20  ;;  %1898 = vmatpush1.msra.mxu0 %v4165_v37  ;;  %v880_v15 = vadd.f32 %v879_v38, %v555_v41  ;;  %v935_v28 = vmax.f32 %v885_v4, 0.0  ;;  %v930_v43 = vmax.f32 %v860_v19, 0.0 }
 0x12c   : > { %v3623_v42 = vpop.f32.mrf.mxu0  ;;  %1899 = vmatprep.subr.mxu0 %v3710_v10 }
 0x12d   : > { %1018 = vrot.lane.b32.xlu1 %v4177_v14, %s3711_s20  ;;  %1900 = vmatpush1.msra.mxu0 %v4177_v14  ;;  %v895_v54 = vadd.f32 %v3623_v42, %v570_v26  ;;  %v875_v26 = vadd.f32 %v4139_v27, %v550_v49  ;;  %v934_v32 = vmax.f32 %v880_v15, 0.0  ;;  %v4242_v36 = vmul.f32 %v4059_v46, %v935_v28  ;;  %v1277_v28 = vld [vmem:[#allocation2 + $0x48] sm:$0xff] }
 0x12e   : > { %v889_v16 = vpop.f32.mrf.mxu0  ;;  %1901 = vmatprep.subr.mxu0 %v3710_v10 }
 0x12f   : > { %1016 = vrot.lane.b32.xlu0 %v4181_v44, %s3711_s20  ;;  %1902 = vmatpush1.msra.mxu0 %v4181_v44  ;;  %v890_v61 = vadd.f32 %v889_v16, %v565_v30  ;;  %v870_v30 = vadd.f32 %v4150_v31, %v545_v58  ;;  %v933_v35 = vmax.f32 %v875_v26, 0.0  ;;  %v525_v31 = vpop.permute.xlu1 %524  ;;  %v4250_v39 = vmul.f32 %v4059_v46, %v934_v32  ;;  %v1270_v26 = vld [vmem:[#allocation2 + $0x10] sm:$0xff] }
 0x130   : > { %v3626_v51 = vpop.f32.mrf.mxu0  ;;  %1903 = vmatprep.subr.mxu0 %v3710_v10  ;;  %v850_v42 = vadd.f32 %v4107_v7, %v525_v31  ;;  %v1282_v32 = vld [vmem:[#allocation2 + $0x70] sm:$0xff]  ;;  %v1355_v31 = vld [vmem:[#allocation2 + $0x2b8] sm:$0xff] }
 0x131   : > { %v905_v56 = vadd.f32 %v3626_v51, %v4105_v6  ;;  %1014 = vrot.lane.b32.xlu1 %v4191_v48, %s3711_s20  ;;  %1904 = vmatpush1.msra.mxu0 %v4191_v48  ;;  %v937_v6 = vmax.f32 %v895_v54, 0.0  ;;  %v936_v18 = vmax.f32 %v890_v61, 0.0  ;;  %v932_v38 = vmax.f32 %v870_v30, 0.0  ;;  %v1283_v30 = vld [vmem:[#allocation2 + $0x78] sm:$0xff] }
 0x132   : > { %v899_v59 = vpop.f32.mrf.mxu0  ;;  %1905 = vmatprep.subr.mxu0 %v3710_v10  ;;  %v4258_v41 = vmul.f32 %v4059_v46, %v933_v35  ;;  %v928_v54 = vmax.f32 %v850_v42, 0.0  ;;  %v1348_v35 = vld [vmem:[#allocation2 + $0x280] sm:$0xff]  ;;  %v1367_v42 = vld [vmem:[#allocation2 + $0x318] sm:$0xff] }
 0x133   : > { %v939_v63 = vmax.f32 %v905_v56, 0.0  ;;  %v900_v0 = vadd.f32 %v899_v59, %v4116_v12  ;;  %1012 = vrot.lane.b32.xlu0 %v4195_v53, %s3711_s20  ;;  %1906 = vmatpush1.msra.mxu0 %v4195_v53  ;;  %v540_v12 = vpop.permute.xlu0 %539  ;;  %v4226_v29 = vmul.f32 %v4059_v46, %v937_v6  ;;  %v4234_v33 = vmul.f32 %v4059_v46, %v936_v18 }
 0x134   : > { %1907 = vmatprep.subr.mxu0 %v3710_v10  ;;  %v865_v34 = vadd.f32 %v4118_v13, %v540_v12  ;;  %v4266_v16 = vmul.f32 %v4059_v46, %v932_v38  ;;  %v4282_v56 = vmul.f32 %v4059_v46, %v930_v43  ;;  %v1354_v38 = vld [vmem:[#allocation2 + $0x2b0] sm:$0xff] }
 0x135   : > { %v4211_v8 = vmul.f32 %v4059_v46, %v939_v63  ;;  %v938_v9 = vmax.f32 %v900_v0, 0.0  ;;  %1010 = vrot.lane.b32.xlu1 %v4207_v3, %s3711_s20  ;;  %1908 = vmatpush1.msra.mxu0 %v4207_v3  ;;  %v1271_v0 = vld [vmem:[#allocation2 + $0x18] sm:$0xff] }
 0x136   : > { %1909 = vmatprep.subr.mxu0 %v3710_v10  ;;  %v931_v40 = vmax.f32 %v865_v34, 0.0  ;;  %1941 = vmatprep.mubr.f32.mxu0 %v1271_v0  ;;  %v1295_v34 = vld [vmem:[#allocation2 + $0xd8] sm:$0xff] }
 0x137   : > { %v4218_v24 = vmul.f32 %v4059_v46, %v938_v9  ;;  %1072 = vrot.lane.b32.xlu0 %v4211_v8, %s3711_s20  ;;  %1910 = vmatpush2.msra.mxu0 %v4211_v8  ;;  %v530_v27 = vpop.permute.xlu0 %529  ;;  %v4298_v9 = vmul.f32 %v4059_v46, %v928_v54  ;;  %v1372_v54 = vld [vmem:[#allocation2 + $0x340] sm:$0xff] }
 0x138   : > { %1911 = vmatprep.subr.mxu0 %v3710_v10  ;;  %v855_v13 = vadd.f32 %v4096_v2, %v530_v27  ;;  %v515_v2 = vpop.permute.xlu1 %514  ;;  %v4274_v51 = vmul.f32 %v4059_v46, %v931_v40  ;;  %v1289_v27 = vld [vmem:[#allocation2 + $0xa8] sm:$0xff] }
 0x139   : > { %1070 = vrot.lane.b32.xlu1 %v4218_v24, %s3711_s20  ;;  %1912 = vmatpush2.msra.mxu0 %v4218_v24  ;;  %v840_v7 = vadd.f32 %v4087_v62, %v515_v2  ;;  %v1491_v2 = vld [vmem:[%s5475_s4 + $0xf8] sm:$0xff] }
 0x13a   : > { %1913 = vmatprep.subr.mxu0 %v3710_v10  ;;  %v929_v49 = vmax.f32 %v855_v13, 0.0  ;;  %v1361_v13 = vld [vmem:[#allocation2 + $0x2e8] sm:$0xff] }
 0x13b   : > { %1068 = vrot.lane.b32.xlu0 %v4226_v29, %s3711_s20  ;;  %1914 = vmatpush2.msra.mxu0 %v4226_v29  ;;  %v520_v23 = vpop.permute.xlu0 %519  ;;  %v926_v6 = vmax.f32 %v840_v7, 0.0 }
 0x13c   : > { %1915 = vmatprep.subr.mxu0 %v3710_v10  ;;  %v845_v45 = vadd.f32 %v4076_v57, %v520_v23  ;;  %v1269_v57 = vld [vmem:[#allocation2 + $0x8] sm:$0xff]  ;;  %v4290_v63 = vmul.f32 %v4059_v46, %v929_v49  ;;  %v505_v62 = vpop.permute.xlu1 %504 }
 0x13d   : > { %1066 = vrot.lane.b32.xlu1 %v4234_v33, %s3711_s20  ;;  %1916 = vmatpush2.msra.mxu0 %v4234_v33  ;;  %v830_v4 = vadd.f32 %v4066_v52, %v505_v62  ;;  %v4312_v15 = vmul.f32 %v4059_v46, %v926_v6  ;;  %v1373_v49 = vld [vmem:[#allocation2 + $0x348] sm:$0xff] }
 0x13e   : > { %1917 = vmatprep.subr.mxu0 %v3710_v10  ;;  %1716 = vmatprep.mubr.f32.mxu1 %v1269_v57  ;;  %v927_v61 = vmax.f32 %v845_v45, 0.0  ;;  %v1489_v62 = vld [vmem:[%s5475_s4 + $0xe8] sm:$0xff] }
 0x13f   : > { %1064 = vrot.lane.b32.xlu0 %v4242_v36, %s3711_s20  ;;  %1918 = vmatpush2.msra.mxu0 %v4242_v36  ;;  %v510_v58 = vpop.permute.xlu0 %509  ;;  %v924_v52 = vmax.f32 %v830_v4, 0.0  ;;  %v1385_v4 = vld [vmem:[#allocation2 + $0x3a8] sm:$0xff] }
 0x140   : > { %1919 = vmatprep.subr.mxu0 %v3710_v10  ;;  %v835_v59 = vadd.f32 %v4061_v47, %v510_v58  ;;  %v4305_v12 = vmul.f32 %v4059_v46, %v927_v61  ;;  %v1379_v58 = vld [vmem:[#allocation2 + $0x378] sm:$0xff]  ;;  %v1473_v6 = vld [vmem:[%s5475_s4 + $0x68] sm:$0xff] }
 0x141   : > { %1062 = vrot.lane.b32.xlu1 %v4250_v39, %s3711_s20  ;;  %1920 = vmatpush2.msra.mxu0 %v4250_v39  ;;  %v4326_v25 = vmul.f32 %v4059_v46, %v924_v52 }
 0x142   : > { %1921 = vmatprep.subr.mxu0 %v3710_v10  ;;  %v925_v47 = vmax.f32 %v835_v59, 0.0  ;;  %v1474_v59 = vld [vmem:[%s5475_s4 + $0x70] sm:$0xff] }
 0x143   : > { %1060 = vrot.lane.b32.xlu0 %v4258_v41, %s3711_s20  ;;  %1922 = vmatpush2.msra.mxu0 %v4258_v41 }
 0x144   : > { %1923 = vmatprep.subr.mxu0 %v3710_v10  ;;  %v4319_v18 = vmul.f32 %v4059_v46, %v925_v47  ;;  %v1276_v46 = vld [vmem:[#allocation2 + $0x40] sm:$0xff] }
 0x145   : > { %1058 = vrot.lane.b32.xlu1 %v4266_v16, %s3711_s20  ;;  %1924 = vmatpush2.msra.mxu0 %v4266_v16  ;;  %v1384_v47 = vld [vmem:[#allocation2 + $0x3a0] sm:$0xff] }
 0x146   : > { %1925 = vmatprep.subr.mxu0 %v3710_v10 }
 0x147   : > { %1056 = vrot.lane.b32.xlu0 %v4274_v51, %s3711_s20  ;;  %1926 = vmatpush2.msra.mxu0 %v4274_v51 }
 0x148   : > { %1927 = vmatprep.subr.mxu0 %v3710_v10 }
 0x149   : > { %1054 = vrot.lane.b32.xlu1 %v4282_v56, %s3711_s20  ;;  %1928 = vmatpush2.msra.mxu0 %v4282_v56 }
 0x14a   : > { %1929 = vmatprep.subr.mxu0 %v3710_v10 }
 0x14b   : > { %1052 = vrot.lane.b32.xlu0 %v4290_v63, %s3711_s20  ;;  %1930 = vmatpush2.msra.mxu0 %v4290_v63 }
 0x14c   : > { %1931 = vmatprep.subr.mxu0 %v3710_v10 }
 0x14d   : > { %1050 = vrot.lane.b32.xlu1 %v4298_v9, %s3711_s20  ;;  %1932 = vmatpush2.msra.mxu0 %v4298_v9 }
 0x14e   : > { %1933 = vmatprep.subr.mxu0 %v3710_v10 }
 0x14f   : > { %1048 = vrot.lane.b32.xlu0 %v4305_v12, %s3711_s20  ;;  %1934 = vmatpush2.msra.mxu0 %v4305_v12 }
 0x150   : > { %1935 = vmatprep.subr.mxu0 %v3710_v10 }
 0x151   : > { %1046 = vrot.lane.b32.xlu1 %v4312_v15, %s3711_s20  ;;  %1936 = vmatpush2.msra.mxu0 %v4312_v15 }
 0x152   : > { %1937 = vmatprep.subr.mxu0 %v3710_v10 }
 0x153   : > { %1044 = vrot.lane.b32.xlu0 %v4319_v18, %s3711_s20  ;;  %1938 = vmatpush2.msra.mxu0 %v4319_v18 }
 0x154   : > { %1939 = vmatprep.subr.mxu0 %v3710_v10 }
 0x155   : > { %1042 = vrot.lane.b32.xlu1 %v4326_v25, %s3711_s20  ;;  %1940 = vmatpush2.msra.mxu0 %v4326_v25 }
 0x156   : > { %1942 = vmatmul.mubr.f32.vlgmr.msra.gmra.mxu0 %v1270_v26  ;;  %v1390_v26 = vld [vmem:[#allocation2 + $0x3d0] sm:$0xff] }
 0x157   : > { %1169 = vrot.lane.b32.xlu0 %v4064_v50, %s3712_s21  ;;  %1946 = vmatprep.mubr.f32.mxu0 %v1277_v28  ;;  %v1288_v50 = vld [vmem:[#allocation2 + $0xa0] sm:$0xff]  ;;  %v1487_v28 = vld [vmem:[%s5475_s4 + $0xd8] sm:$0xff] }
 0x159   : > { %1167 = vrot.lane.b32.xlu1 %v4069_v55, %s3712_s21  ;;  %v1294_v55 = vld [vmem:[#allocation2 + $0xd0] sm:$0xff] }
 0x15a   : > { %1947 = vmatmul.mubr.f32.gmra.mxu0 %v1276_v46 }
 0x15b   : > { %1165 = vrot.lane.b32.xlu0 %v4080_v60, %s3712_s21  ;;  %1951 = vmatprep.mubr.f32.mxu0 %v1283_v30  ;;  %v1301_v60 = vld [vmem:[#allocation2 + $0x108] sm:$0xff] }
 0x15c   : > { %v1397_v30 = vld [vmem:[#allocation2 + $0x408] sm:$0xff] }
 0x15d   : > { %1163 = vrot.lane.b32.xlu1 %v4091_v1, %s3712_s21  ;;  %v1300_v1 = vld [vmem:[#allocation2 + $0x100] sm:$0xff] }
 0x15e   : > { %1952 = vmatmul.mubr.f32.gmra.mxu0 %v1282_v32  ;;  %v1471_v32 = vld [vmem:[%s5475_s4 + $0x58] sm:$0xff] }
 0x15f   : > { %1161 = vrot.lane.b32.xlu0 %v4100_v5, %s3712_s21  ;;  %1956 = vmatprep.mubr.f32.mxu0 %v1289_v27  ;;  %v1307_v5 = vld [vmem:[#allocation2 + $0x138] sm:$0xff] }
 0x161   : > { %1159 = vrot.lane.b32.xlu1 %v4114_v11, %s3712_s21  ;;  %v1306_v11 = vld [vmem:[#allocation2 + $0x130] sm:$0xff] }
 0x162   : > { %1957 = vmatmul.mubr.f32.gmra.mxu0 %v1288_v50  ;;  %v1396_v50 = vld [vmem:[#allocation2 + $0x400] sm:$0xff] }
 0x163   : > { %1157 = vrot.lane.b32.xlu0 %v4123_v20, %s3712_s21  ;;  %1961 = vmatprep.mubr.f32.mxu0 %v1295_v34  ;;  %v1313_v20 = vld [vmem:[#allocation2 + $0x168] sm:$0xff]  ;;  %v1486_v34 = vld [vmem:[%s5475_s4 + $0xd0] sm:$0xff] }
 0x165   : > { %1155 = vrot.lane.b32.xlu1 %v4137_v21, %s3712_s21  ;;  %v1312_v21 = vld [vmem:[#allocation2 + $0x160] sm:$0xff] }
 0x166   : > { %1962 = vmatmul.mubr.f32.gmra.mxu0 %v1294_v55 }
 0x167   : > { %1153 = vrot.lane.b32.xlu0 %v4145_v22, %s3712_s21  ;;  %1966 = vmatprep.mubr.f32.mxu0 %v1301_v60  ;;  %v1319_v22 = vld [vmem:[#allocation2 + $0x198] sm:$0xff] }
 0x168   : > { %v1403_v60 = vld [vmem:[#allocation2 + $0x438] sm:$0xff] }
 0x169   : > { %1151 = vrot.lane.b32.xlu1 %v4159_v17, %s3712_s21  ;;  %v1318_v17 = vld [vmem:[#allocation2 + $0x190] sm:$0xff] }
 0x16a   : > { %1967 = vmatmul.mubr.f32.gmra.mxu0 %v1300_v1  ;;  %v1470_v1 = vld [vmem:[%s5475_s4 + $0x50] sm:$0xff] }
 0x16b   : > { %1149 = vrot.lane.b32.xlu0 %v4165_v37, %s3712_s21  ;;  %1971 = vmatprep.mubr.f32.mxu0 %v1307_v5  ;;  %v1325_v37 = vld [vmem:[#allocation2 + $0x1c8] sm:$0xff] }
 0x16d   : > { %1147 = vrot.lane.b32.xlu1 %v4177_v14, %s3712_s21  ;;  %v1324_v14 = vld [vmem:[#allocation2 + $0x1c0] sm:$0xff] }
 0x16e   : > { %1972 = vmatmul.mubr.f32.gmra.mxu0 %v1306_v11  ;;  %v1402_v11 = vld [vmem:[#allocation2 + $0x430] sm:$0xff] }
 0x16f   : > { %1145 = vrot.lane.b32.xlu0 %v4181_v44, %s3712_s21  ;;  %1976 = vmatprep.mubr.f32.mxu0 %v1313_v20  ;;  %v1331_v44 = vld [vmem:[#allocation2 + $0x1f8] sm:$0xff]  ;;  %v1485_v20 = vld [vmem:[%s5475_s4 + $0xc8] sm:$0xff] }
 0x171   : > { %1143 = vrot.lane.b32.xlu1 %v4191_v48, %s3712_s21  ;;  %v1330_v48 = vld [vmem:[#allocation2 + $0x1f0] sm:$0xff] }
 0x172   : > { %1977 = vmatmul.mubr.f32.gmra.mxu0 %v1312_v21 }
 0x173   : > { %1141 = vrot.lane.b32.xlu0 %v4195_v53, %s3712_s21  ;;  %1981 = vmatprep.mubr.f32.mxu0 %v1319_v22  ;;  %v1337_v53 = vld [vmem:[#allocation2 + $0x228] sm:$0xff] }
 0x174   : > { %v1409_v22 = vld [vmem:[#allocation2 + $0x468] sm:$0xff] }
 0x175   : > { %1139 = vrot.lane.b32.xlu1 %v4207_v3, %s3712_s21  ;;  %v1336_v3 = vld [vmem:[#allocation2 + $0x220] sm:$0xff] }
 0x176   : > { %1982 = vmatmul.mubr.f32.gmra.mxu0 %v1318_v17  ;;  %v1469_v17 = vld [vmem:[%s5475_s4 + $0x48] sm:$0xff] }
 0x177   : > { %1201 = vrot.lane.b32.xlu0 %v4211_v8, %s3712_s21  ;;  %1986 = vmatprep.mubr.f32.mxu0 %v1325_v37  ;;  %v1343_v8 = vld [vmem:[#allocation2 + $0x258] sm:$0xff] }
 0x179   : > { %1199 = vrot.lane.b32.xlu1 %v4218_v24, %s3712_s21  ;;  %v1342_v24 = vld [vmem:[#allocation2 + $0x250] sm:$0xff] }
 0x17a   : > { %1987 = vmatmul.mubr.f32.gmra.mxu0 %v1324_v14  ;;  %v1408_v14 = vld [vmem:[#allocation2 + $0x460] sm:$0xff] }
 0x17b   : > { %1197 = vrot.lane.b32.xlu0 %v4226_v29, %s3712_s21  ;;  %1991 = vmatprep.mubr.f32.mxu0 %v1331_v44  ;;  %v1349_v29 = vld [vmem:[#allocation2 + $0x288] sm:$0xff]  ;;  %v1484_v44 = vld [vmem:[%s5475_s4 + $0xc0] sm:$0xff] }
 0x17d   : > { %1195 = vrot.lane.b32.xlu1 %v4234_v33, %s3712_s21  ;;  %v5484_v33 = vmov 0 }
 0x17e   : > { %1992 = vmatmul.mubr.f32.gmra.mxu0 %v1330_v48  ;;  %v5485_v33 = vsel %vm4386_vm3, 4294967295, %v5484_v33 }
 0x17f   : > { %1193 = vrot.lane.b32.xlu0 %v4242_v36, %s3712_s21  ;;  %1996 = vmatprep.mubr.f32.mxu0 %v1337_v53  ;;  %5486 = vst [vmem:[#allocation5_spill] sm:$0xff] %v5485_v33  ;;  %v1415_v53 = vld [vmem:[#allocation2 + $0x498] sm:$0xff] }
 0x181   : > { %1191 = vrot.lane.b32.xlu1 %v4250_v39, %s3712_s21 }
 0x182   : > { %1997 = vmatmul.mubr.f32.gmra.mxu0 %v1336_v3  ;;  %v1468_v3 = vld [vmem:[%s5475_s4 + $0x40] sm:$0xff] }
 0x183   : > { %1189 = vrot.lane.b32.xlu0 %v4258_v41, %s3712_s21  ;;  %2001 = vmatprep.mubr.f32.mxu0 %v1343_v8  ;;  %v1360_v41 = vld [vmem:[#allocation2 + $0x2e0] sm:$0xff] }
 0x185   : > { %1187 = vrot.lane.b32.xlu1 %v4266_v16, %s3712_s21  ;;  %v1366_v16 = vld [vmem:[#allocation2 + $0x310] sm:$0xff] }
 0x186   : > { %2002 = vmatmul.mubr.f32.gmra.mxu0 %v1342_v24  ;;  %v1414_v24 = vld [vmem:[#allocation2 + $0x490] sm:$0xff] }
 0x187   : > { %1185 = vrot.lane.b32.xlu0 %v4274_v51, %s3712_s21  ;;  %2006 = vmatprep.mubr.f32.mxu0 %v1349_v29  ;;  %v1475_v51 = vld [vmem:[%s5475_s4 + $0x78] sm:$0xff] }
 0x188   : > { %v1483_v29 = vld [vmem:[%s5475_s4 + $0xb8] sm:$0xff] }
 0x189   : > { %v1041_v36 = vpop.permute.xlu0 %1040  ;;  %1183 = vrot.lane.b32.xlu1 %v4282_v56, %s3712_s21  ;;  %v1490_v56 = vld [vmem:[%s5475_s4 + $0xf0] sm:$0xff] }
 0x18a   : > { %3182 = vmatpush1.msk.msra.mxu1 %vm4386_vm3, %v1041_v36  ;;  %2007 = vmatmul.mubr.f32.gmra.mxu0 %v1348_v35  ;;  %v1421_v36 = vld [vmem:[#allocation2 + $0x4c8] sm:$0xff] }
 0x18b   : > { %1654 = vmatprep.subr.mxu1 %v3710_v10  ;;  %1181 = vrot.lane.b32.xlu0 %v4290_v63, %s3712_s21  ;;  %v1039_v19 = vpop.permute.xlu1 %1038  ;;  %v1378_v63 = vld [vmem:[#allocation2 + $0x370] sm:$0xff] }
 0x18c   : > { %3184 = vmatpush1.msk.msra.mxu1 %vm4386_vm3, %v1039_v19  ;;  %2011 = vmatprep.mubr.f32.mxu0 %v1355_v31  ;;  %v1467_v31 = vld [vmem:[%s5475_s4 + $0x38] sm:$0xff] }
 0x18d   : > { %v1037_v39 = vpop.permute.xlu0 %1036  ;;  %1656 = vmatprep.subr.mxu1 %v3710_v10  ;;  %1179 = vrot.lane.b32.xlu1 %v4298_v9, %s3712_s21 }
 0x18e   : > { %3186 = vmatpush1.msk.msra.mxu1 %vm4386_vm3, %v1037_v39  ;;  %2012 = vmatmul.mubr.f32.gmra.mxu0 %v1354_v38  ;;  %v1420_v38 = vld [vmem:[#allocation2 + $0x4c0] sm:$0xff]  ;;  %v1482_v39 = vld [vmem:[%s5475_s4 + $0xb0] sm:$0xff] }
 0x18f   : > { %1177 = vrot.lane.b32.xlu0 %v4305_v12, %s3712_s21  ;;  %1658 = vmatprep.subr.mxu1 %v3710_v10  ;;  %v1035_v40 = vpop.permute.xlu1 %1034  ;;  %v1488_v12 = vld [vmem:[%s5475_s4 + $0xe0] sm:$0xff] }
 0x190   : > { %3188 = vmatpush1.msk.msra.mxu1 %vm4386_vm3, %v1035_v40  ;;  %2016 = vmatprep.mubr.f32.mxu0 %v1361_v13  ;;  %v1427_v40 = vld [vmem:[#allocation2 + $0x4f8] sm:$0xff] }
 0x191   : > { %v1033_v23 = vpop.permute.xlu0 %1032  ;;  %1660 = vmatprep.subr.mxu1 %v3710_v10  ;;  %1175 = vrot.lane.b32.xlu1 %v4312_v15, %s3712_s21  ;;  %v1391_v15 = vld [vmem:[#allocation2 + $0x3d8] sm:$0xff] }
 0x192   : > { %3190 = vmatpush1.msk.msra.mxu1 %vm4386_vm3, %v1033_v23  ;;  %2017 = vmatmul.mubr.f32.gmra.mxu0 %v1360_v41  ;;  %v1466_v41 = vld [vmem:[%s5475_s4 + $0x30] sm:$0xff] }
 0x193   : > { %1173 = vrot.lane.b32.xlu0 %v4319_v18, %s3712_s21  ;;  %1662 = vmatprep.subr.mxu1 %v3710_v10  ;;  %v1031_v43 = vpop.permute.xlu1 %1030  ;;  %v1472_v18 = vld [vmem:[%s5475_s4 + $0x60] sm:$0xff] }
 0x194   : > { %3192 = vmatpush1.msk.msra.mxu1 %vm4386_vm3, %v1031_v43  ;;  %2021 = vmatprep.mubr.f32.mxu0 %v1367_v42  ;;  %v1426_v42 = vld [vmem:[#allocation2 + $0x4f0] sm:$0xff]  ;;  %v1481_v43 = vld [vmem:[%s5475_s4 + $0xa8] sm:$0xff] }
 0x195   : > { %v1029_v45 = vpop.permute.xlu0 %1028  ;;  %1664 = vmatprep.subr.mxu1 %v3710_v10  ;;  %1171 = vrot.lane.b32.xlu1 %v4326_v25, %s3712_s21 }
 0x196   : > { %3194 = vmatpush1.msk.msra.mxu1 %vm4386_vm3, %v1029_v45  ;;  %2022 = vmatmul.mubr.f32.gmra.mxu0 %v1366_v16  ;;  %v1465_v45 = vld [vmem:[%s5475_s4 + $0x28] sm:$0xff] }
 0x197   : > { %1649 = vperm.xlu0 %3665, %v1491_v2   ;;  %1666 = vmatprep.subr.mxu1 %v3710_v10  ;;  %v1027_v7 = vpop.permute.xlu1 %1026  ;;  %v1433_v2 = vld [vmem:[#allocation2 + $0x528] sm:$0xff] }
 0x198   : > { %3196 = vmatpush1.msk.msra.mxu1 %vm4386_vm3, %v1027_v7  ;;  %2026 = vmatprep.mubr.f32.mxu0 %v1373_v49  ;;  %v1480_v7 = vld [vmem:[%s5475_s4 + $0xa0] sm:$0xff] }
 0x199   : > { %v1025_v57 = vpop.permute.xlu0 %1024  ;;  %1668 = vmatprep.subr.mxu1 %v3710_v10  ;;  %1569 = vperm.xlu1 %3666, %v1475_v51   ;;  %v1432_v51 = vld [vmem:[#allocation2 + $0x520] sm:$0xff] }
 0x19a   : > { %3198 = vmatpush1.msk.msra.mxu1 %vm4386_vm3, %v1025_v57  ;;  %2027 = vmatmul.mubr.f32.gmra.mxu0 %v1372_v54  ;;  %v1464_v57 = vld [vmem:[%s5475_s4 + $0x20] sm:$0xff] }
 0x19b   : > { %1644 = vperm.xlu0 %3665, %v1490_v56   ;;  %1670 = vmatprep.subr.mxu1 %v3710_v10  ;;  %v1023_v61 = vpop.permute.xlu1 %1022  ;;  %v1439_v56 = vld [vmem:[#allocation2 + $0x558] sm:$0xff] }
 0x19c   : > { %3200 = vmatpush1.msk.msra.mxu1 %vm4386_vm3, %v1023_v61  ;;  %2031 = vmatprep.mubr.f32.mxu0 %v1379_v58  ;;  %v1479_v61 = vld [vmem:[%s5475_s4 + $0x98] sm:$0xff] }
 0x19d   : > { %v1021_v0 = vpop.permute.xlu0 %1020  ;;  %1672 = vmatprep.subr.mxu1 %v3710_v10  ;;  %1564 = vperm.xlu1 %3666, %v1474_v59   ;;  %v1438_v59 = vld [vmem:[#allocation2 + $0x550] sm:$0xff] }
 0x19e   : > { %3202 = vmatpush1.msk.msra.mxu1 %vm4386_vm3, %v1021_v0  ;;  %2032 = vmatmul.mubr.f32.gmra.mxu0 %v1378_v63  ;;  %v1463_v0 = vld [vmem:[%s5475_s4 + $0x18] sm:$0xff] }
 0x19f   : > { %1639 = vperm.xlu0 %3665, %v1489_v62   ;;  %1674 = vmatprep.subr.mxu1 %v3710_v10  ;;  %v1019_v9 = vpop.permute.xlu1 %1018  ;;  %v1445_v62 = vld [vmem:[#allocation2 + $0x588] sm:$0xff] }
 0x1a0   : > { %3204 = vmatpush1.msk.msra.mxu1 %vm4386_vm3, %v1019_v9  ;;  %2036 = vmatprep.mubr.f32.mxu0 %v1385_v4  ;;  %v1268_v4 = vld [vmem:[#allocation2] sm:$0xff]  ;;  %v1275_v9 = vld [vmem:[#allocation2 + $0x38] sm:$0xff] }
 0x1a1   : > { %v1017_v52 = vpop.permute.xlu0 %1016  ;;  %1676 = vmatprep.subr.mxu1 %v3710_v10  ;;  %1559 = vperm.xlu1 %3666, %v1473_v6  }
 0x1a2   : > { %3206 = vmatpush1.msk.msra.mxu1 %vm4386_vm3, %v1017_v52  ;;  %2037 = vmatmul.mubr.f32.gmra.mxu0 %v1384_v47  ;;  %v1478_v47 = vld [vmem:[%s5475_s4 + $0x90] sm:$0xff]  ;;  %v1444_v52 = vld [vmem:[#allocation2 + $0x580] sm:$0xff] }
 0x1a3   : > { %1634 = vperm.xlu0 %3665, %v1488_v12   ;;  %1678 = vmatprep.subr.mxu1 %v3710_v10  ;;  %v1015_v25 = vpop.permute.xlu1 %1014 }
 0x1a4   : > { %3208 = vmatpush1.msk.msra.mxu1 %vm4386_vm3, %v1015_v25  ;;  %2041 = vmatprep.mubr.f32.mxu0 %v1391_v15  ;;  %v1462_v15 = vld [vmem:[%s5475_s4 + $0x10] sm:$0xff] }
 0x1a5   : > { %v1013_v46 = vpop.permute.xlu0 %1012  ;;  %1680 = vmatprep.subr.mxu1 %v3710_v10  ;;  %1554 = vperm.xlu1 %3666, %v1472_v18   ;;  %v1274_v25 = vld [vmem:[#allocation2 + $0x30] sm:$0xff] }
 0x1a6   : > { %3210 = vmatpush1.msk.msra.mxu1 %vm4386_vm3, %v1013_v46  ;;  %2042 = vmatmul.mubr.f32.gmra.mxu0 %v1390_v26  ;;  %v1477_v26 = vld [vmem:[%s5475_s4 + $0x88] sm:$0xff] }
 0x1a7   : > { %1629 = vperm.xlu0 %3665, %v1487_v28   ;;  %1682 = vmatprep.subr.mxu1 %v3710_v10  ;;  %v1011_v27 = vpop.permute.xlu1 %1010  ;;  %v1281_v46 = vld [vmem:[#allocation2 + $0x68] sm:$0xff] }
 0x1a8   : > { %3212 = vmatpush1.msk.msra.mxu1 %vm4386_vm3, %v1011_v27  ;;  %2046 = vmatprep.mubr.f32.mxu0 %v1397_v30  ;;  %v1461_v30 = vld [vmem:[%s5475_s4 + $0x8] sm:$0xff]  ;;  %v1280_v27 = vld [vmem:[#allocation2 + $0x60] sm:$0xff] }
 0x1a9   : > { %v1073_v55 = vpop.permute.xlu0 %1072  ;;  %1549 = vperm.xlu1 %3666, %v1471_v32   ;;  %1684 = vmatprep.subr.mxu1 %v3710_v10 }
 0x1aa   : > { %3214 = vmatpush2.msk.msra.mxu1 %vm4386_vm3, %v1073_v55  ;;  %2047 = vmatmul.mubr.f32.gmra.mxu0 %v1396_v50  ;;  %v1476_v50 = vld [vmem:[%s5475_s4 + $0x80] sm:$0xff]  ;;  %v1287_v55 = vld [vmem:[#allocation2 + $0x98] sm:$0xff] }
 0x1ab   : > { %1624 = vperm.xlu0 %3665, %v1486_v34   ;;  %1686 = vmatprep.subr.mxu1 %v3710_v10  ;;  %v1071_v5 = vpop.permute.xlu1 %1070 }
 0x1ac   : > { %3216 = vmatpush2.msk.msra.mxu1 %vm4386_vm3, %v1071_v5  ;;  %2051 = vmatprep.mubr.f32.mxu0 %v1403_v60  ;;  %v1460_v60 = vld [vmem:[%s5475_s4] sm:$0xff]  ;;  %v1286_v5 = vld [vmem:[#allocation2 + $0x90] sm:$0xff] }
 0x1ad   : > { %v1069_v21 = vpop.permute.xlu0 %1068  ;;  %1544 = vperm.xlu1 %3666, %v1470_v1   ;;  %1688 = vmatprep.subr.mxu1 %v3710_v10 }
 0x1ae   : > { %3218 = vmatpush2.msk.msra.mxu1 %vm4386_vm3, %v1069_v21  ;;  %2052 = vmatmul.mubr.f32.gmra.mxu0 %v1402_v11  ;;  %v1293_v11 = vld [vmem:[#allocation2 + $0xc8] sm:$0xff]  ;;  %v1451_v21 = vld [vmem:[#allocation2 + $0x5b8] sm:$0xff] }
 0x1af   : > { %1619 = vperm.xlu0 %3665, %v1485_v20   ;;  %1690 = vmatprep.subr.mxu1 %v3710_v10  ;;  %v1067_v37 = vpop.permute.xlu1 %1066 }
 0x1b0   : > { %3220 = vmatpush2.msk.msra.mxu1 %vm4386_vm3, %v1067_v37  ;;  %2056 = vmatprep.mubr.f32.mxu0 %v1409_v22  ;;  %v1450_v22 = vld [vmem:[#allocation2 + $0x5b0] sm:$0xff]  ;;  %v1292_v37 = vld [vmem:[#allocation2 + $0xc0] sm:$0xff] }
 0x1b1   : > { %v1065_v48 = vpop.permute.xlu0 %1064  ;;  %1539 = vperm.xlu1 %3666, %v1469_v17   ;;  %1692 = vmatprep.subr.mxu1 %v3710_v10 }
 0x1b2   : > { %3222 = vmatpush2.msk.msra.mxu1 %vm4386_vm3, %v1065_v48  ;;  %2057 = vmatmul.mubr.f32.gmra.mxu0 %v1408_v14  ;;  %v1299_v14 = vld [vmem:[#allocation2 + $0xf8] sm:$0xff]  ;;  %v1457_v48 = vld [vmem:[#allocation2 + $0x5e8] sm:$0xff] }
 0x1b3   : > { %1614 = vperm.xlu0 %3665, %v1484_v44   ;;  %1694 = vmatprep.subr.mxu1 %v3710_v10  ;;  %v1063_v8 = vpop.permute.xlu1 %1062 }
 0x1b4   : > { %3224 = vmatpush2.msk.msra.mxu1 %vm4386_vm3, %v1063_v8  ;;  %2061 = vmatprep.mubr.f32.mxu0 %v1415_v53  ;;  %v1456_v53 = vld [vmem:[#allocation2 + $0x5e0] sm:$0xff]  ;;  %v1298_v8 = vld [vmem:[#allocation2 + $0xf0] sm:$0xff] }
 0x1b5   : > { %v1061_v35 = vpop.permute.xlu0 %1060  ;;  %1534 = vperm.xlu1 %3666, %v1468_v3   ;;  %1696 = vmatprep.subr.mxu1 %v3710_v10 }
 0x1b6   : > { %3226 = vmatpush2.msk.msra.mxu1 %vm4386_vm3, %v1061_v35  ;;  %2062 = vmatmul.mubr.f32.gmra.mxu0 %v1414_v24  ;;  %v1305_v24 = vld [vmem:[#allocation2 + $0x128] sm:$0xff] }
 0x1b7   : > { %1609 = vperm.xlu0 %3665, %v1483_v29   ;;  %1698 = vmatprep.subr.mxu1 %v3710_v10  ;;  %v1059_v19 = vpop.permute.xlu1 %1058 }
 0x1b8   : > { %3228 = vmatpush2.msk.msra.mxu1 %vm4386_vm3, %v1059_v19  ;;  %2066 = vmatprep.mubr.f32.mxu0 %v1421_v36  ;;  %v1304_v36 = vld [vmem:[#allocation2 + $0x120] sm:$0xff] }
 0x1b9   : > { %v1057_v13 = vpop.permute.xlu0 %1056  ;;  %1529 = vperm.xlu1 %3666, %v1467_v31   ;;  %1700 = vmatprep.subr.mxu1 %v3710_v10  ;;  %v1311_v31 = vld [vmem:[#allocation2 + $0x158] sm:$0xff] }
 0x1ba   : > { %3230 = vmatpush2.msk.msra.mxu1 %vm4386_vm3, %v1057_v13  ;;  %2067 = vmatmul.mubr.f32.gmra.mxu0 %v1420_v38  ;;  %v1317_v13 = vld [vmem:[#allocation2 + $0x188] sm:$0xff] }
 0x1bb   : > { %1604 = vperm.xlu0 %3665, %v1482_v39   ;;  %1702 = vmatprep.subr.mxu1 %v3710_v10  ;;  %v1055_v23 = vpop.permute.xlu1 %1054  ;;  %v1310_v39 = vld [vmem:[#allocation2 + $0x150] sm:$0xff] }
 0x1bc   : > { %3232 = vmatpush2.msk.msra.mxu1 %vm4386_vm3, %v1055_v23  ;;  %2071 = vmatprep.mubr.f32.mxu0 %v1427_v40  ;;  %v1316_v23 = vld [vmem:[#allocation2 + $0x180] sm:$0xff] }
 0x1bd   : > { %v1053_v16 = vpop.permute.xlu0 %1052  ;;  %1524 = vperm.xlu1 %3666, %v1466_v41   ;;  %1704 = vmatprep.subr.mxu1 %v3710_v10 }
 0x1be   : > { %3234 = vmatpush2.msk.msra.mxu1 %vm4386_vm3, %v1053_v16  ;;  %2072 = vmatmul.mubr.f32.gmra.mxu0 %v1426_v42  ;;  %v1323_v42 = vld [vmem:[#allocation2 + $0x1b8] sm:$0xff] }
 0x1bf   : > { %1599 = vperm.xlu0 %3665, %v1481_v43   ;;  %1706 = vmatprep.subr.mxu1 %v3710_v10  ;;  %v1051_v49 = vpop.permute.xlu1 %1050 }
 0x1c0   : > { %3236 = vmatpush2.msk.msra.mxu1 %vm4386_vm3, %v1051_v49  ;;  %2076 = vmatprep.mubr.f32.mxu0 %v1433_v2  ;;  %v1322_v2 = vld [vmem:[#allocation2 + $0x1b0] sm:$0xff] }
 0x1c1   : > { %v1049_v54 = vpop.permute.xlu0 %1048  ;;  %1519 = vperm.xlu1 %3666, %v1465_v45   ;;  %1708 = vmatprep.subr.mxu1 %v3710_v10  ;;  %v1329_v45 = vld [vmem:[#allocation2 + $0x1e8] sm:$0xff] }
 0x1c2   : > { %3238 = vmatpush2.msk.msra.mxu1 %vm4386_vm3, %v1049_v54  ;;  %2077 = vmatmul.mubr.f32.gmra.mxu0 %v1432_v51  ;;  %v1335_v54 = vld [vmem:[#allocation2 + $0x218] sm:$0xff] }
 0x1c3   : > { %1594 = vperm.xlu0 %3665, %v1480_v7   ;;  %1710 = vmatprep.subr.mxu1 %v3710_v10  ;;  %v1047_v58 = vpop.permute.xlu1 %1046  ;;  %v1328_v7 = vld [vmem:[#allocation2 + $0x1e0] sm:$0xff] }
 0x1c4   : > { %3240 = vmatpush2.msk.msra.mxu1 %vm4386_vm3, %v1047_v58  ;;  %2081 = vmatprep.mubr.f32.mxu0 %v1439_v56  ;;  %v1334_v58 = vld [vmem:[#allocation2 + $0x210] sm:$0xff] }
 0x1c5   : > { %v1045_v63 = vpop.permute.xlu0 %1044  ;;  %1514 = vperm.xlu1 %3666, %v1464_v57   ;;  %1712 = vmatprep.subr.mxu1 %v3710_v10 }
 0x1c6   : > { %3242 = vmatpush2.msk.msra.mxu1 %vm4386_vm3, %v1045_v63  ;;  %2082 = vmatmul.mubr.f32.gmra.mxu0 %v1438_v59  ;;  %v1341_v59 = vld [vmem:[#allocation2 + $0x248] sm:$0xff] }
 0x1c7   : > { %1589 = vperm.xlu0 %3665, %v1479_v61   ;;  %1714 = vmatprep.subr.mxu1 %v3710_v10  ;;  %v1043_v6 = vpop.permute.xlu1 %1042 }
 0x1c8   : > { %3244 = vmatpush2.msk.msra.mxu1 %vm4386_vm3, %v1043_v6  ;;  %2086 = vmatprep.mubr.f32.mxu0 %v1445_v62  ;;  %v1340_v62 = vld [vmem:[#allocation2 + $0x240] sm:$0xff] }
 0x1c9   : > { %v1170_v12 = vpop.permute.xlu0 %1169  ;;  %1509 = vperm.xlu1 %3666, %v1463_v0   ;;  %1717 = vmatmul.mubr.f32.vlgmr.msra.gmra.mxu1 %v1268_v4  ;;  %v1347_v0 = vld [vmem:[#allocation2 + $0x278] sm:$0xff] }
 0x1ca   : > { %2102 = vmatprep.subr.mxu1 %v3710_v10  ;;  %1721 = vmatprep.mubr.f32.mxu1 %v1275_v9  ;;  %v1346_v9 = vld [vmem:[#allocation2 + $0x270] sm:$0xff] }
 0x1cb   : > { %3245 = vmatpush1.msk.msra.mxu1 %vm1235_vm4, %v1170_v12  ;;  %1584 = vperm.xlu0 %3665, %v1478_v47   ;;  %v1168_v18 = vpop.permute.xlu1 %1167  ;;  %v1353_v47 = vld [vmem:[#allocation2 + $0x2a8] sm:$0xff] }
 0x1cc   : > { %2104 = vmatprep.subr.mxu1 %v3710_v10  ;;  %2087 = vmatmul.mubr.f32.gmra.mxu0 %v1444_v52 }
 0x1cd   : > { %3246 = vmatpush1.msk.msra.mxu1 %vm1235_vm4, %v1168_v18  ;;  %v1166_v28 = vpop.permute.xlu0 %1165  ;;  %1504 = vperm.xlu1 %3666, %v1462_v15   ;;  %v1352_v15 = vld [vmem:[#allocation2 + $0x2a0] sm:$0xff]  ;;  %v1359_v18 = vld [vmem:[#allocation2 + $0x2d8] sm:$0xff] }
 0x1ce   : > { %1722 = vmatmul.mubr.f32.gmra.mxu1 %v1274_v25  ;;  %2106 = vmatprep.subr.mxu1 %v3710_v10 }
 0x1cf   : > { %3247 = vmatpush1.msk.msra.mxu1 %vm1235_vm4, %v1166_v28  ;;  %1579 = vperm.xlu0 %3665, %v1477_v26   ;;  %v1164_v32 = vpop.permute.xlu1 %1163  ;;  %v1358_v28 = vld [vmem:[#allocation2 + $0x2d0] sm:$0xff] }
 0x1d0   : > { %2108 = vmatprep.subr.mxu1 %v3710_v10  ;;  %1726 = vmatprep.mubr.f32.mxu1 %v1281_v46  ;;  %v1365_v46 = vld [vmem:[#allocation2 + $0x308] sm:$0xff] }
 0x1d1   : > { %3248 = vmatpush1.msk.msra.mxu1 %vm1235_vm4, %v1164_v32  ;;  %v1162_v34 = vpop.permute.xlu0 %1161  ;;  %1499 = vperm.xlu1 %3666, %v1461_v30  }
 0x1d2   : > { %1727 = vmatmul.mubr.f32.gmra.mxu1 %v1280_v27  ;;  %2110 = vmatprep.subr.mxu1 %v3710_v10  ;;  %v1364_v27 = vld [vmem:[#allocation2 + $0x300] sm:$0xff] }
 0x1d3   : > { %3249 = vmatpush1.msk.msra.mxu1 %vm1235_vm4, %v1162_v34  ;;  %1574 = vperm.xlu0 %3665, %v1476_v50   ;;  %v1160_v1 = vpop.permute.xlu1 %1159  ;;  %v1371_v50 = vld [vmem:[#allocation2 + $0x338] sm:$0xff]  ;;  %v1370_v34 = vld [vmem:[#allocation2 + $0x330] sm:$0xff] }
 0x1d4   : > { %2112 = vmatprep.subr.mxu1 %v3710_v10  ;;  %1731 = vmatprep.mubr.f32.mxu1 %v1287_v55  ;;  %v1377_v55 = vld [vmem:[#allocation2 + $0x368] sm:$0xff] }
 0x1d5   : > { %3250 = vmatpush1.msk.msra.mxu1 %vm1235_vm4, %v1160_v1  ;;  %v1158_v20 = vpop.permute.xlu0 %1157  ;;  %1494 = vperm.xlu1 %3666, %v1460_v60   ;;  %v1376_v60 = vld [vmem:[#allocation2 + $0x360] sm:$0xff]  ;;  %v1383_v1 = vld [vmem:[#allocation2 + $0x398] sm:$0xff] }
 0x1d6   : > { %1732 = vmatmul.mubr.f32.gmra.mxu1 %v1286_v5  ;;  %2114 = vmatprep.subr.mxu1 %v3710_v10  ;;  %v1382_v5 = vld [vmem:[#allocation2 + $0x390] sm:$0xff] }
 0x1d7   : > { %3251 = vmatpush1.msk.msra.mxu1 %vm1235_vm4, %v1158_v20  ;;  %v1156_v17 = vpop.permute.xlu1 %1155  ;;  %1736 = vmatprep.mubr.f32.mxu1 %v1293_v11  ;;  %v1389_v11 = vld [vmem:[#allocation2 + $0x3c8] sm:$0xff] }
 0x1d8   : > { %2116 = vmatprep.subr.mxu1 %v3710_v10  ;;  %2091 = vmatprep.mubr.f32.mxu0 %v1451_v21  ;;  %v1395_v21 = vld [vmem:[#allocation2 + $0x3f8] sm:$0xff] }
 0x1d9   : > { %3252 = vmatpush1.msk.msra.mxu1 %vm1235_vm4, %v1156_v17  ;;  %v1154_v44 = vpop.permute.xlu0 %1153  ;;  %2092 = vmatmul.mubr.f32.gmra.mxu0 %v1450_v22 }
 0x1da   : > { %1737 = vmatmul.mubr.f32.gmra.mxu1 %v1292_v37  ;;  %2118 = vmatprep.subr.mxu1 %v3710_v10  ;;  %v1394_v37 = vld [vmem:[#allocation2 + $0x3f0] sm:$0xff] }
 0x1db   : > { %3253 = vmatpush1.msk.msra.mxu1 %vm1235_vm4, %v1154_v44  ;;  %v1152_v3 = vpop.permute.xlu1 %1151  ;;  %1741 = vmatprep.mubr.f32.mxu1 %v1299_v14  ;;  %v1401_v14 = vld [vmem:[#allocation2 + $0x428] sm:$0xff] }
 0x1dc   : > { %2120 = vmatprep.subr.mxu1 %v3710_v10  ;;  %2096 = vmatprep.mubr.f32.mxu0 %v1457_v48 }
 0x1dd   : > { %3254 = vmatpush1.msk.msra.mxu1 %vm1235_vm4, %v1152_v3  ;;  %v1150_v29 = vpop.permute.xlu0 %1149  ;;  %2097 = vmatmul.mubr.f32.gmra.mxu0 %v1456_v53  ;;  %v1400_v53 = vld [vmem:[#allocation2 + $0x420] sm:$0xff]  ;;  %v1407_v3 = vld [vmem:[#allocation2 + $0x458] sm:$0xff] }
 0x1de   : > { %1742 = vmatmul.mubr.f32.gmra.mxu1 %v1298_v8  ;;  %2122 = vmatprep.subr.mxu1 %v3710_v10 }
 0x1df   : > { %3255 = vmatpush1.msk.msra.mxu1 %vm1235_vm4, %v1150_v29  ;;  %v1148_v35 = vpop.permute.xlu1 %1147  ;;  %1746 = vmatprep.mubr.f32.mxu1 %v1305_v24  ;;  %v1406_v29 = vld [vmem:[#allocation2 + $0x450] sm:$0xff] }
 0x1e0   : > { %2124 = vmatprep.subr.mxu1 %v3710_v10 }
 0x1e1   : > { %3256 = vmatpush1.msk.msra.mxu1 %vm1235_vm4, %v1148_v35  ;;  %v1146_v19 = vpop.permute.xlu0 %1145  ;;  %v1413_v35 = vld [vmem:[#allocation2 + $0x488] sm:$0xff] }
 0x1e2   : > { %1747 = vmatmul.mubr.f32.gmra.mxu1 %v1304_v36  ;;  %2126 = vmatprep.subr.mxu1 %v3710_v10 }
 0x1e3   : > { %3257 = vmatpush1.msk.msra.mxu1 %vm1235_vm4, %v1146_v19  ;;  %v1144_v38 = vpop.permute.xlu1 %1143  ;;  %1751 = vmatprep.mubr.f32.mxu1 %v1311_v31  ;;  %v1412_v19 = vld [vmem:[#allocation2 + $0x480] sm:$0xff] }
 0x1e4   : > { %2128 = vmatprep.subr.mxu1 %v3710_v10 }
 0x1e5   : > { %3258 = vmatpush1.msk.msra.mxu1 %vm1235_vm4, %v1144_v38  ;;  %v1142_v40 = vpop.permute.xlu0 %1141  ;;  %v1419_v38 = vld [vmem:[#allocation2 + $0x4b8] sm:$0xff] }
 0x1e6   : > { %1752 = vmatmul.mubr.f32.gmra.mxu1 %v1310_v39  ;;  %2130 = vmatprep.subr.mxu1 %v3710_v10 }
 0x1e7   : > { %3259 = vmatpush1.msk.msra.mxu1 %vm1235_vm4, %v1142_v40  ;;  %v1140_v41 = vpop.permute.xlu1 %1139  ;;  %1756 = vmatprep.mubr.f32.mxu1 %v1317_v13  ;;  %v1418_v40 = vld [vmem:[#allocation2 + $0x4b0] sm:$0xff] }
 0x1e8   : > { %2132 = vmatprep.subr.mxu1 %v3710_v10 }
 0x1e9   : > { %3260 = vmatpush1.msk.msra.mxu1 %vm1235_vm4, %v1140_v41  ;;  %v1202_v43 = vpop.permute.xlu0 %1201  ;;  %v1425_v41 = vld [vmem:[#allocation2 + $0x4e8] sm:$0xff] }
 0x1ea   : > { %1757 = vmatmul.mubr.f32.gmra.mxu1 %v1316_v23  ;;  %2134 = vmatprep.subr.mxu1 %v3710_v10 }
 0x1eb   : > { %3261 = vmatpush2.msk.msra.mxu1 %vm1235_vm4, %v1202_v43  ;;  %v1200_v16 = vpop.permute.xlu1 %1199  ;;  %1761 = vmatprep.mubr.f32.mxu1 %v1323_v42  ;;  %v1424_v43 = vld [vmem:[#allocation2 + $0x4e0] sm:$0xff] }
 0x1ec   : > { %2136 = vmatprep.subr.mxu1 %v3710_v10 }
 0x1ed   : > { %3262 = vmatpush2.msk.msra.mxu1 %vm1235_vm4, %v1200_v16  ;;  %v1198_v49 = vpop.permute.xlu0 %1197  ;;  %v1431_v16 = vld [vmem:[#allocation2 + $0x518] sm:$0xff] }
 0x1ee   : > { %1762 = vmatmul.mubr.f32.gmra.mxu1 %v1322_v2  ;;  %2138 = vmatprep.subr.mxu1 %v3710_v10 }
 0x1ef   : > { %3263 = vmatpush2.msk.msra.mxu1 %vm1235_vm4, %v1198_v49  ;;  %v1196_v51 = vpop.permute.xlu1 %1195  ;;  %1766 = vmatprep.mubr.f32.mxu1 %v1329_v45  ;;  %v1430_v49 = vld [vmem:[#allocation2 + $0x510] sm:$0xff] }
 0x1f0   : > { %2140 = vmatprep.subr.mxu1 %v3710_v10 }
 0x1f1   : > { %3264 = vmatpush2.msk.msra.mxu1 %vm1235_vm4, %v1196_v51  ;;  %v1194_v56 = vpop.permute.xlu0 %1193  ;;  %v1437_v51 = vld [vmem:[#allocation2 + $0x548] sm:$0xff] }
 0x1f2   : > { %1767 = vmatmul.mubr.f32.gmra.mxu1 %v1328_v7  ;;  %2142 = vmatprep.subr.mxu1 %v3710_v10 }
 0x1f3   : > { %3265 = vmatpush2.msk.msra.mxu1 %vm1235_vm4, %v1194_v56  ;;  %v1192_v57 = vpop.permute.xlu1 %1191  ;;  %1771 = vmatprep.mubr.f32.mxu1 %v1335_v54  ;;  %v1436_v56 = vld [vmem:[#allocation2 + $0x540] sm:$0xff] }
 0x1f4   : > { %2144 = vmatprep.subr.mxu1 %v3710_v10 }
 0x1f5   : > { %3266 = vmatpush2.msk.msra.mxu1 %vm1235_vm4, %v1192_v57  ;;  %v1190_v61 = vpop.permute.xlu0 %1189  ;;  %v1443_v57 = vld [vmem:[#allocation2 + $0x578] sm:$0xff] }
 0x1f6   : > { %1772 = vmatmul.mubr.f32.gmra.mxu1 %v1334_v58  ;;  %2146 = vmatprep.subr.mxu1 %v3710_v10 }
 0x1f7   : > { %3267 = vmatpush2.msk.msra.mxu1 %vm1235_vm4, %v1190_v61  ;;  %v1188_v63 = vpop.permute.xlu1 %1187  ;;  %1776 = vmatprep.mubr.f32.mxu1 %v1341_v59  ;;  %v1442_v61 = vld [vmem:[#allocation2 + $0x570] sm:$0xff] }
 0x1f8   : > { %2148 = vmatprep.subr.mxu1 %v3710_v10 }
 0x1f9   : > { %3268 = vmatpush2.msk.msra.mxu1 %vm1235_vm4, %v1188_v63  ;;  %v1186_v4 = vpop.permute.xlu0 %1185  ;;  %v1449_v63 = vld [vmem:[#allocation2 + $0x5a8] sm:$0xff] }
 0x1fa   : > { %1777 = vmatmul.mubr.f32.gmra.mxu1 %v1340_v62  ;;  %2150 = vmatprep.subr.mxu1 %v3710_v10 }
 0x1fb   : > { %3269 = vmatpush2.msk.msra.mxu1 %vm1235_vm4, %v1186_v4  ;;  %v1184_v6 = vpop.permute.xlu1 %1183  ;;  %1781 = vmatprep.mubr.f32.mxu1 %v1347_v0  ;;  %v1448_v4 = vld [vmem:[#allocation2 + $0x5a0] sm:$0xff] }
 0x1fc   : > { %2152 = vmatprep.subr.mxu1 %v3710_v10 }
 0x1fd   : > { %3270 = vmatpush2.msk.msra.mxu1 %vm1235_vm4, %v1184_v6  ;;  %v1182_v12 = vpop.permute.xlu0 %1181  ;;  %v1455_v6 = vld [vmem:[#allocation2 + $0x5d8] sm:$0xff] }
 0x1fe   : > { %1782 = vmatmul.mubr.f32.gmra.mxu1 %v1346_v9  ;;  %2154 = vmatprep.subr.mxu1 %v3710_v10 }
 0x1ff   : > { %3271 = vmatpush2.msk.msra.mxu1 %vm1235_vm4, %v1182_v12  ;;  %v1180_v52 = vpop.permute.xlu1 %1179  ;;  %1786 = vmatprep.mubr.f32.mxu1 %v1353_v47  ;;  %v1454_v12 = vld [vmem:[#allocation2 + $0x5d0] sm:$0xff] }
 0x200   : > { %2156 = vmatprep.subr.mxu1 %v3710_v10 }
 0x201   : > { %3272 = vmatpush2.msk.msra.mxu1 %vm1235_vm4, %v1180_v52  ;;  %v1178_v25 = vpop.permute.xlu0 %1177  ;;  %v1273_v52 = vld [vmem:[#allocation2 + $0x28] sm:$0xff] }
 0x202   : > { %1787 = vmatmul.mubr.f32.gmra.mxu1 %v1352_v15  ;;  %2158 = vmatprep.subr.mxu1 %v3710_v10 }
 0x203   : > { %3273 = vmatpush2.msk.msra.mxu1 %vm1235_vm4, %v1178_v25  ;;  %v1176_v26 = vpop.permute.xlu1 %1175  ;;  %1791 = vmatprep.mubr.f32.mxu1 %v1359_v18  ;;  %v1272_v25 = vld [vmem:[#allocation2 + $0x20] sm:$0xff] }
 0x204   : > { %2160 = vmatprep.subr.mxu1 %v3710_v10 }
 0x205   : > { %3274 = vmatpush2.msk.msra.mxu1 %vm1235_vm4, %v1176_v26  ;;  %v1174_v30 = vpop.permute.xlu0 %1173  ;;  %v1279_v26 = vld [vmem:[#allocation2 + $0x58] sm:$0xff] }
 0x206   : > { %1792 = vmatmul.mubr.f32.gmra.mxu1 %v1358_v28  ;;  %2162 = vmatprep.subr.mxu1 %v3710_v10 }
 0x207   : > { %3275 = vmatpush2.msk.msra.mxu1 %vm1235_vm4, %v1174_v30  ;;  %v1172_v32 = vpop.permute.xlu1 %1171  ;;  %1796 = vmatprep.mubr.f32.mxu1 %v1365_v46  ;;  %v1278_v30 = vld [vmem:[#allocation2 + $0x50] sm:$0xff] }
 0x208   : > { %2164 = vmatprep.subr.mxu1 %v3710_v10  ;;  %v1388_v10 = vld [vmem:[#allocation2 + $0x3c0] sm:$0xff] }
 0x209   : > { %3276 = vmatpush2.msk.msra.mxu1 %vm1235_vm4, %v1172_v32  ;;  %v1285_v32 = vld [vmem:[#allocation2 + $0x88] sm:$0xff] }
 0x20a   : > { %1797 = vmatmul.mubr.f32.gmra.mxu1 %v1364_v27 }
 0x20b   : > { %1801 = vmatprep.mubr.f32.mxu1 %v1371_v50 }
 0x20e   : > { %1802 = vmatmul.mubr.f32.gmra.mxu1 %v1370_v34  ;;  %v1284_v34 = vld [vmem:[#allocation2 + $0x80] sm:$0xff] }
 0x20f   : > { %1806 = vmatprep.mubr.f32.mxu1 %v1377_v55  ;;  %v1291_v55 = vld [vmem:[#allocation2 + $0xb8] sm:$0xff] }
 0x212   : > { %1807 = vmatmul.mubr.f32.gmra.mxu1 %v1376_v60 }
 0x213   : > { %1811 = vmatprep.mubr.f32.mxu1 %v1383_v1 }
 0x216   : > { %1812 = vmatmul.mubr.f32.gmra.mxu1 %v1382_v5  ;;  %v4659_v20 = vpop.f32.mrf.mxu0  ;;  %v1290_v5 = vld [vmem:[#allocation2 + $0xb0] sm:$0xff] }
 0x217   : > { %1816 = vmatprep.mubr.f32.mxu1 %v1389_v11  ;;  %v1297_v11 = vld [vmem:[#allocation2 + $0xe8] sm:$0xff] }
 0x218   : > { %v1945_v22 = vpop.f32.mrf.mxu0 }
 0x219   : > { %v1296_v22 = vld [vmem:[#allocation2 + $0xe0] sm:$0xff] }
 0x21a   : > { %1817 = vmatmul.mubr.f32.gmra.mxu1 %v1388_v10  ;;  %v4661_v17 = vpop.f32.mrf.mxu0 }
 0x21b   : > { %1821 = vmatprep.mubr.f32.mxu1 %v1395_v21 }
 0x21c   : > { %v1950_v44 = vpop.f32.mrf.mxu0 }
 0x21e   : > { %1822 = vmatmul.mubr.f32.gmra.mxu1 %v1394_v37  ;;  %v4663_v48 = vpop.f32.mrf.mxu0  ;;  %v1303_v37 = vld [vmem:[#allocation2 + $0x118] sm:$0xff] }
 0x21f   : > { %1826 = vmatprep.mubr.f32.mxu1 %v1401_v14 }
 0x220   : > { %v1955_v8 = vpop.f32.mrf.mxu0 }
 0x222   : > { %1827 = vmatmul.mubr.f32.gmra.mxu1 %v1400_v53  ;;  %v4665_v24 = vpop.f32.mrf.mxu0  ;;  %v1302_v53 = vld [vmem:[#allocation2 + $0x110] sm:$0xff] }
 0x223   : > { %1831 = vmatprep.mubr.f32.mxu1 %v1407_v3  ;;  %v1309_v3 = vld [vmem:[#allocation2 + $0x148] sm:$0xff] }
 0x224   : > { %v1960_v36 = vpop.f32.mrf.mxu0 }
 0x225   : > { %v1315_v36 = vld [vmem:[#allocation2 + $0x178] sm:$0xff] }
 0x226   : > { %1832 = vmatmul.mubr.f32.gmra.mxu1 %v1406_v29  ;;  %v4667_v31 = vpop.f32.mrf.mxu0 }
 0x227   : > { %5487 = vst [vmem:[#allocation6_spill] sm:$0xff] %v4667_v31  ;;  %1836 = vmatprep.mubr.f32.mxu1 %v1413_v35  ;;  %v1308_v35 = vld [vmem:[#allocation2 + $0x140] sm:$0xff] }
 0x228   : > { %v1965_v39 = vpop.f32.mrf.mxu0 }
 0x229   : > { %v1314_v39 = vld [vmem:[#allocation2 + $0x170] sm:$0xff] }
 0x22a   : > { %1837 = vmatmul.mubr.f32.gmra.mxu1 %v1412_v19  ;;  %v4669_v13 = vpop.f32.mrf.mxu0 }
 0x22b   : > { %1841 = vmatprep.mubr.f32.mxu1 %v1419_v38 }
 0x22c   : > { %v1970_v23 = vpop.f32.mrf.mxu0 }
 0x22e   : > { %1842 = vmatmul.mubr.f32.gmra.mxu1 %v1418_v40  ;;  %v4671_v42 = vpop.f32.mrf.mxu0  ;;  %v1321_v40 = vld [vmem:[#allocation2 + $0x1a8] sm:$0xff] }
 0x22f   : > { %1846 = vmatprep.mubr.f32.mxu1 %v1425_v41 }
 0x230   : > { %v1975_v2 = vpop.f32.mrf.mxu0 }
 0x232   : > { %1847 = vmatmul.mubr.f32.gmra.mxu1 %v1424_v43  ;;  %v4673_v45 = vpop.f32.mrf.mxu0  ;;  %v1320_v43 = vld [vmem:[#allocation2 + $0x1a0] sm:$0xff] }
 0x233   : > { %1851 = vmatprep.mubr.f32.mxu1 %v1431_v16  ;;  %v1327_v16 = vld [vmem:[#allocation2 + $0x1d8] sm:$0xff] }
 0x234   : > { %v1980_v7 = vpop.f32.mrf.mxu0 }
 0x235   : > { %v1333_v7 = vld [vmem:[#allocation2 + $0x208] sm:$0xff] }
 0x236   : > { %1852 = vmatmul.mubr.f32.gmra.mxu1 %v1430_v49  ;;  %v4675_v54 = vpop.f32.mrf.mxu0 }
 0x237   : > { %1856 = vmatprep.mubr.f32.mxu1 %v1437_v51  ;;  %v1326_v51 = vld [vmem:[#allocation2 + $0x1d0] sm:$0xff] }
 0x238   : > { %v1985_v58 = vpop.f32.mrf.mxu0 }
 0x239   : > { %v1332_v58 = vld [vmem:[#allocation2 + $0x200] sm:$0xff] }
 0x23a   : > { %1857 = vmatmul.mubr.f32.gmra.mxu1 %v1436_v56  ;;  %v4677_v59 = vpop.f32.mrf.mxu0 }
 0x23b   : > { %1861 = vmatprep.mubr.f32.mxu1 %v1443_v57 }
 0x23c   : > { %v1990_v62 = vpop.f32.mrf.mxu0 }
 0x23e   : > { %1862 = vmatmul.mubr.f32.gmra.mxu1 %v1442_v61  ;;  %v4679_v0 = vpop.f32.mrf.mxu0  ;;  %v1339_v61 = vld [vmem:[#allocation2 + $0x238] sm:$0xff] }
 0x23f   : > { %1866 = vmatprep.mubr.f32.mxu1 %v1449_v63 }
 0x240   : > { %v1995_v9 = vpop.f32.mrf.mxu0 }
 0x242   : > { %1867 = vmatmul.mubr.f32.gmra.mxu1 %v1448_v4  ;;  %v4681_v47 = vpop.f32.mrf.mxu0  ;;  %v1338_v4 = vld [vmem:[#allocation2 + $0x230] sm:$0xff] }
 0x243   : > { %1871 = vmatprep.mubr.f32.mxu1 %v1455_v6  ;;  %v1345_v6 = vld [vmem:[#allocation2 + $0x268] sm:$0xff] }
 0x244   : > { %v2000_v15 = vpop.f32.mrf.mxu0 }
 0x245   : > { %v1351_v15 = vld [vmem:[#allocation2 + $0x298] sm:$0xff] }
 0x246   : > { %1872 = vmatmul.mubr.f32.gmra.mxu1 %v1454_v12  ;;  %v4683_v18 = vpop.f32.mrf.mxu0 }
 0x247   : > { %2166 = vmatprep.mubr.f32.mxu1 %v1273_v52  ;;  %v1344_v52 = vld [vmem:[#allocation2 + $0x260] sm:$0xff] }
 0x248   : > { %v2005_v28 = vpop.f32.mrf.mxu0 }
 0x249   : > { %v1350_v28 = vld [vmem:[#allocation2 + $0x290] sm:$0xff] }
 0x24a   : > { %2167 = vmatmul.mubr.f32.vlgmr.msra.gmra.mxu1 %v1272_v25  ;;  %v4685_v46 = vpop.f32.mrf.mxu0 }
 0x24b   : > { %2171 = vmatprep.mubr.f32.mxu1 %v1279_v26 }
 0x24c   : > { %v2010_v27 = vpop.f32.mrf.mxu0 }
 0x24e   : > { %2172 = vmatmul.mubr.f32.gmra.mxu1 %v1278_v30  ;;  %v4687_v50 = vpop.f32.mrf.mxu0  ;;  %v1357_v30 = vld [vmem:[#allocation2 + $0x2c8] sm:$0xff] }
 0x24f   : > { %2176 = vmatprep.mubr.f32.mxu1 %v1285_v32 }
 0x250   : > { %v2015_v60 = vpop.f32.mrf.mxu0 }
 0x252   : > { %2177 = vmatmul.mubr.f32.gmra.mxu1 %v1284_v34  ;;  %v4689_v1 = vpop.f32.mrf.mxu0  ;;  %v1356_v34 = vld [vmem:[#allocation2 + $0x2c0] sm:$0xff] }
 0x253   : > { %2181 = vmatprep.mubr.f32.mxu1 %v1291_v55  ;;  %v1363_v55 = vld [vmem:[#allocation2 + $0x2f8] sm:$0xff] }
 0x254   : > { %v2020_v10 = vpop.f32.mrf.mxu0 }
 0x255   : > { %v1369_v10 = vld [vmem:[#allocation2 + $0x328] sm:$0xff] }
 0x256   : > { %2182 = vmatmul.mubr.f32.gmra.mxu1 %v1290_v5  ;;  %v4691_v21 = vpop.f32.mrf.mxu0 }
 0x257   : > { %2186 = vmatprep.mubr.f32.mxu1 %v1297_v11  ;;  %v1362_v11 = vld [vmem:[#allocation2 + $0x2f0] sm:$0xff] }
 0x258   : > { %v2025_v14 = vpop.f32.mrf.mxu0 }
 0x259   : > { %v1368_v14 = vld [vmem:[#allocation2 + $0x320] sm:$0xff] }
 0x25a   : > { %2187 = vmatmul.mubr.f32.gmra.mxu1 %v1296_v22  ;;  %v4693_v44 = vpop.f32.mrf.mxu0 }
 0x25b   : > { %2191 = vmatprep.mubr.f32.mxu1 %v1303_v37 }
 0x25c   : > { %v2030_v8 = vpop.f32.mrf.mxu0 }
 0x25e   : > { %2192 = vmatmul.mubr.f32.gmra.mxu1 %v1302_v53  ;;  %v4695_v29 = vpop.f32.mrf.mxu0  ;;  %v1375_v53 = vld [vmem:[#allocation2 + $0x358] sm:$0xff] }
 0x25f   : > { %5488 = vst [vmem:[#allocation7_spill] sm:$0xff] %v4695_v29  ;;  %2196 = vmatprep.mubr.f32.mxu1 %v1309_v3 }
 0x260   : > { %v2035_v19 = vpop.f32.mrf.mxu0 }
 0x261   : > { %v1381_v19 = vld [vmem:[#allocation2 + $0x388] sm:$0xff] }
 0x262   : > { %2197 = vmatmul.mubr.f32.gmra.mxu1 %v1308_v35  ;;  %v4697_v38 = vpop.f32.mrf.mxu0 }
 0x263   : > { %5489 = vst [vmem:[#allocation8_spill] sm:$0xff] %v4697_v38  ;;  %2201 = vmatprep.mubr.f32.mxu1 %v1315_v36  ;;  %v1374_v36 = vld [vmem:[#allocation2 + $0x350] sm:$0xff] }
 0x264   : > { %v2040_v41 = vpop.f32.mrf.mxu0 }
 0x266   : > { %2202 = vmatmul.mubr.f32.gmra.mxu1 %v1314_v39  ;;  %v4699_v23 = vpop.f32.mrf.mxu0 }
 0x267   : > { %5490 = vst [vmem:[#allocation9_spill] sm:$0xff] %v4699_v23  ;;  %2206 = vmatprep.mubr.f32.mxu1 %v1321_v40 }
 0x268   : > { %v2045_v2 = vpop.f32.mrf.mxu0 }
 0x269   : > { %v1387_v2 = vld [vmem:[#allocation2 + $0x3b8] sm:$0xff] }
 0x26a   : > { %2207 = vmatmul.mubr.f32.gmra.mxu1 %v1320_v43  ;;  %v4701_v49 = vpop.f32.mrf.mxu0  ;;  %v1380_v43 = vld [vmem:[#allocation2 + $0x380] sm:$0xff] }
 0x26b   : > { %5491 = vst [vmem:[#allocation10_spill] sm:$0xff] %v4701_v49  ;;  %2211 = vmatprep.mubr.f32.mxu1 %v1327_v16 }
 0x26c   : > { %v2050_v56 = vpop.f32.mrf.mxu0 }
 0x26e   : > { %2212 = vmatmul.mubr.f32.gmra.mxu1 %v1326_v51  ;;  %v4703_v57 = vpop.f32.mrf.mxu0 }
 0x26f   : > { %5492 = vst [vmem:[#allocation11_spill] sm:$0xff] %v4703_v57  ;;  %2216 = vmatprep.mubr.f32.mxu1 %v1333_v7  ;;  %v1386_v7 = vld [vmem:[#allocation2 + $0x3b0] sm:$0xff] }
 0x270   : > { %v2055_v63 = vpop.f32.mrf.mxu0 }
 0x271   : > { %v1392_v63 = vld [vmem:[#allocation2 + $0x3e0] sm:$0xff] }
 0x272   : > { %2217 = vmatmul.mubr.f32.gmra.mxu1 %v1332_v58  ;;  %v4705_v62 = vpop.f32.mrf.mxu0  ;;  %v1393_v58 = vld [vmem:[#allocation2 + $0x3e8] sm:$0xff] }
 0x273   : > { %5493 = vst [vmem:[#allocation12_spill] sm:$0xff] %v4705_v62  ;;  %2221 = vmatprep.mubr.f32.mxu1 %v1339_v61 }
 0x274   : > { %v2060_v9 = vpop.f32.mrf.mxu0 }
 0x276   : > { %2222 = vmatmul.mubr.f32.gmra.mxu1 %v1338_v4  ;;  %v4707_v12 = vpop.f32.mrf.mxu0 }
 0x277   : > { %5494 = vst [vmem:[#allocation13_spill] sm:$0xff] %v4707_v12  ;;  %2226 = vmatprep.mubr.f32.mxu1 %v1345_v6  ;;  %v1399_v6 = vld [vmem:[#allocation2 + $0x418] sm:$0xff] }
 0x278   : > { %v2065_v25 = vpop.f32.mrf.mxu0 }
 0x27a   : > { %2227 = vmatmul.mubr.f32.gmra.mxu1 %v1344_v52  ;;  %v4709_v26 = vpop.f32.mrf.mxu0 }
 0x27b   : > { %5495 = vst [vmem:[#allocation14_spill] sm:$0xff] %v4709_v26  ;;  %2231 = vmatprep.mubr.f32.mxu1 %v1351_v15  ;;  %v1398_v15 = vld [vmem:[#allocation2 + $0x410] sm:$0xff] }
 0x27c   : > { %v2070_v32 = vpop.f32.mrf.mxu0 }
 0x27e   : > { %2232 = vmatmul.mubr.f32.gmra.mxu1 %v1350_v28  ;;  %v4711_v27 = vpop.f32.mrf.mxu0 }
 0x27f   : > { %5496 = vst [vmem:[#allocation15_spill] sm:$0xff] %v4711_v27  ;;  %2236 = vmatprep.mubr.f32.mxu1 %v1357_v30  ;;  %v1405_v30 = vld [vmem:[#allocation2 + $0x448] sm:$0xff] }
 0x280   : > { %v2075_v60 = vpop.f32.mrf.mxu0 }
 0x282   : > { %2237 = vmatmul.mubr.f32.gmra.mxu1 %v1356_v34  ;;  %v4713_v5 = vpop.f32.mrf.mxu0 }
 0x283   : > { %5497 = vst [vmem:[#allocation16_spill] sm:$0xff] %v4713_v5  ;;  %2241 = vmatprep.mubr.f32.mxu1 %v1363_v55  ;;  %v1404_v55 = vld [vmem:[#allocation2 + $0x440] sm:$0xff]  ;;  %v4793_v5 = vpop.permute.xlu0 %1649 }
 0x284   : > { %v2080_v22 = vpop.f32.mrf.mxu0  ;;  %5507 = vst [vmem:[#allocation26_spill] sm:$0xff] %v4793_v5 }
 0x286   : > { %2242 = vmatmul.mubr.f32.gmra.mxu1 %v1362_v11  ;;  %v4715_v37 = vpop.f32.mrf.mxu0 }
 0x287   : > { %5498 = vst [vmem:[#allocation17_spill] sm:$0xff] %v4715_v37  ;;  %2246 = vmatprep.mubr.f32.mxu1 %v1369_v10  ;;  %v1411_v10 = vld [vmem:[#allocation2 + $0x478] sm:$0xff] }
 0x288   : > { %v2085_v3 = vpop.f32.mrf.mxu0 }
 0x289   : > { %v4717_v8 = vpop.f32.mrf.mxu1  ;;  %v1417_v3 = vld [vmem:[#allocation2 + $0x4a8] sm:$0xff] }
 0x28a   : > { %2247 = vmatmul.mubr.f32.gmra.mxu1 %v1368_v14  ;;  %v1410_v14 = vld [vmem:[#allocation2 + $0x470] sm:$0xff] }
 0x28b   : > { %v1720_v35 = vpop.f32.mrf.mxu1  ;;  %2251 = vmatprep.mubr.f32.mxu1 %v1375_v53 }
 0x28c   : > { %v4719_v39 = vpop.f32.mrf.mxu0 }
 0x28d   : > { %5499 = vst [vmem:[#allocation18_spill] sm:$0xff] %v4719_v39 }
 0x28e   : > { %v4721_v40 = vpop.f32.mrf.mxu1  ;;  %2252 = vmatmul.mubr.f32.gmra.mxu1 %v1374_v36  ;;  %v2090_v41 = vpop.f32.mrf.mxu0  ;;  %v1416_v36 = vld [vmem:[#allocation2 + $0x4a0] sm:$0xff] }
 0x28f   : > { %2256 = vmatprep.mubr.f32.mxu1 %v1381_v19  ;;  %v1423_v41 = vld [vmem:[#allocation2 + $0x4d8] sm:$0xff] }
 0x290   : > { %v1725_v16 = vpop.f32.mrf.mxu1 }
 0x292   : > { %v4723_v51 = vpop.f32.mrf.mxu1  ;;  %2257 = vmatmul.mubr.f32.gmra.mxu1 %v1380_v43  ;;  %v4739_v43 = vpop.permute.xlu1 %1569 }
 0x293   : > { %2261 = vmatprep.mubr.f32.mxu1 %v1387_v2  ;;  %v1422_v2 = vld [vmem:[#allocation2 + $0x4d0] sm:$0xff] }
 0x294   : > { %v1730_v56 = vpop.f32.mrf.mxu1 }
 0x295   : > { %v1429_v56 = vld [vmem:[#allocation2 + $0x508] sm:$0xff] }
 0x296   : > { %v4725_v61 = vpop.f32.mrf.mxu1  ;;  %2262 = vmatmul.mubr.f32.gmra.mxu1 %v1386_v7 }
 0x297   : > { %2266 = vmatprep.mubr.f32.mxu1 %v1393_v58 }
 0x298   : > { %v1735_v4 = vpop.f32.mrf.mxu1 }
 0x299   : > { %v4727_v9 = vpop.f32.mrf.mxu0  ;;  %v4745_v4 = vpop.permute.xlu1 %1564 }
 0x29a   : > { %5500 = vst [vmem:[#allocation19_spill] sm:$0xff] %v4727_v9  ;;  %v4729_v52 = vpop.f32.mrf.mxu1  ;;  %2267 = vmatmul.mubr.f32.gmra.mxu1 %v1392_v63  ;;  %v1428_v63 = vld [vmem:[#allocation2 + $0x500] sm:$0xff] }
 0x29b   : > { %2271 = vmatprep.mubr.f32.mxu1 %v1399_v6  ;;  %v2095_v25 = vpop.f32.mrf.mxu0 }
 0x29c   : > { %v1740_v28 = vpop.f32.mrf.mxu1 }
 0x29d   : > { %v4731_v32 = vpop.f32.mrf.mxu0  ;;  %v1434_v28 = vld [vmem:[#allocation2 + $0x530] sm:$0xff] }
 0x29e   : > { %5501 = vst [vmem:[#allocation20_spill] sm:$0xff] %v4731_v32  ;;  %v4733_v34 = vpop.f32.mrf.mxu1  ;;  %2272 = vmatmul.mubr.f32.gmra.mxu1 %v1398_v15  ;;  %v1435_v15 = vld [vmem:[#allocation2 + $0x538] sm:$0xff] }
 0x29f   : > { %2276 = vmatprep.mubr.f32.mxu1 %v1405_v30  ;;  %v2100_v60 = vpop.f32.mrf.mxu0 }
 0x2a0   : > { %v1745_v11 = vpop.f32.mrf.mxu1  ;;  %v4749_v60 = vpop.permute.xlu1 %1559 }
 0x2a2   : > { %v4735_v22 = vpop.f32.mrf.mxu1  ;;  %2277 = vmatmul.mubr.f32.gmra.mxu1 %v1404_v55  ;;  %v1441_v55 = vld [vmem:[#allocation2 + $0x568] sm:$0xff] }
 0x2a3   : > { %2281 = vmatprep.mubr.f32.mxu1 %v1411_v10  ;;  %v1440_v10 = vld [vmem:[#allocation2 + $0x560] sm:$0xff] }
 0x2a4   : > { %v1750_v53 = vpop.f32.mrf.mxu1 }
 0x2a5   : > { %v1447_v53 = vld [vmem:[#allocation2 + $0x598] sm:$0xff] }
 0x2a6   : > { %v4737_v35 = vpop.f32.mrf.mxu1  ;;  %2282 = vmatmul.mubr.f32.gmra.mxu1 %v1410_v14 }
 0x2a7   : > { %2286 = vmatprep.mubr.f32.mxu1 %v1417_v3 }
 0x2a8   : > { %v1755_v19 = vpop.f32.mrf.mxu1 }
 0x2a9   : > { %v4755_v19 = vpop.permute.xlu1 %1554 }
 0x2aa   : > { %v4741_v16 = vpop.f32.mrf.mxu1  ;;  %2287 = vmatmul.mubr.f32.gmra.mxu1 %v1416_v36  ;;  %v1446_v36 = vld [vmem:[#allocation2 + $0x590] sm:$0xff] }
 0x2ab   : > { %2291 = vmatprep.mubr.f32.mxu1 %v1423_v41 }
 0x2ac   : > { %v1760_v7 = vpop.f32.mrf.mxu1 }
 0x2ae   : > { %v4743_v58 = vpop.f32.mrf.mxu1  ;;  %2292 = vmatmul.mubr.f32.gmra.mxu1 %v1422_v2  ;;  %v1453_v2 = vld [vmem:[#allocation2 + $0x5c8] sm:$0xff] }
 0x2af   : > { %2296 = vmatprep.mubr.f32.mxu1 %v1429_v56  ;;  %v1452_v56 = vld [vmem:[#allocation2 + $0x5c0] sm:$0xff] }
 0x2b0   : > { %v1765_v6 = vpop.f32.mrf.mxu1 }
 0x2b1   : > { %v1459_v6 = vld [vmem:[#allocation2 + $0x5f8] sm:$0xff] }
 0x2b2   : > { %v4747_v25 = vpop.f32.mrf.mxu1  ;;  %2297 = vmatmul.mubr.f32.gmra.mxu1 %v1428_v63 }
 0x2b3   : > { %2301 = vmatprep.mubr.f32.mxu1 %v1435_v15  ;;  %v4759_v15 = vpop.permute.xlu1 %1549 }
 0x2b4   : > { %v1770_v30 = vpop.f32.mrf.mxu1 }
 0x2b5   : > { %v1458_v30 = vld [vmem:[#allocation2 + $0x5f0] sm:$0xff] }
 0x2b6   : > { %v4751_v11 = vpop.f32.mrf.mxu1  ;;  %2302 = vmatmul.mubr.f32.gmra.mxu1 %v1434_v28 }
 0x2b7   : > { %2306 = vmatprep.mubr.f32.mxu1 %v1441_v55 }
 0x2b8   : > { %v1775_v14 = vpop.f32.mrf.mxu1 }
 0x2b9   : > { %v4765_v14 = vpop.permute.xlu1 %1544 }
 0x2ba   : > { %v4753_v3 = vpop.f32.mrf.mxu1  ;;  %2307 = vmatmul.mubr.f32.gmra.mxu1 %v1440_v10 }
 0x2bb   : > { %2311 = vmatprep.mubr.f32.mxu1 %v1447_v53 }
 0x2bc   : > { %v1780_v41 = vpop.f32.mrf.mxu1 }
 0x2be   : > { %v4757_v7 = vpop.f32.mrf.mxu1  ;;  %2312 = vmatmul.mubr.f32.gmra.mxu1 %v1446_v36 }
 0x2bf   : > { %2316 = vmatprep.mubr.f32.mxu1 %v1453_v2  ;;  %v4769_v2 = vpop.permute.xlu1 %1539 }
 0x2c0   : > { %v1785_v63 = vpop.f32.mrf.mxu1 }
 0x2c2   : > { %v4761_v28 = vpop.f32.mrf.mxu1  ;;  %2317 = vmatmul.mubr.f32.gmra.mxu1 %v1452_v56 }
 0x2c3   : > { %2321 = vmatprep.mubr.f32.mxu1 %v1459_v6  ;;  %v4775_v56 = vpop.permute.xlu1 %1534 }
 0x2c4   : > { %v1790_v55 = vpop.f32.mrf.mxu1 }
 0x2c6   : > { %v4763_v10 = vpop.f32.mrf.mxu1  ;;  %2322 = vmatmul.mubr.f32.gmra.mxu1 %v1458_v30 }
 0x2c7   : > { %v4779_v30 = vpop.permute.xlu1 %1529 }
 0x2c8   : > { %v1795_v53 = vpop.f32.mrf.mxu1 }
 0x2ca   : > { %v4767_v41 = vpop.f32.mrf.mxu1 }
 0x2cc   : > { %v1800_v36 = vpop.f32.mrf.mxu1 }
 0x2cd   : > { %v4785_v36 = vpop.permute.xlu1 %1524 }
 0x2ce   : > { %v4771_v63 = vpop.f32.mrf.mxu1 }
 0x2d0   : > { %v1805_v33 = vpop.f32.mrf.mxu1 }
 0x2d1   : > { %v4789_v39 = vpop.permute.xlu1 %1519 }
 0x2d2   : > { %v4773_v23 = vpop.f32.mrf.mxu1 }
 0x2d4   : > { %v1810_v6 = vpop.f32.mrf.mxu1 }
 0x2d5   : > { %v4797_v27 = vpop.permute.xlu1 %1514 }
 0x2d6   : > { %v4777_v55 = vpop.f32.mrf.mxu1 }
 0x2d7   : > { %5502 = vst [vmem:[#allocation21_spill] sm:$0xff] %v4777_v55 }
 0x2d8   : > { %v1815_v49 = vpop.f32.mrf.mxu1 }
 0x2d9   : > { %v1510_v26 = vpop.permute.xlu1 %1509 }
 0x2da   : > { %v4781_v57 = vpop.f32.mrf.mxu1 }
 0x2db   : > { %5503 = vst [vmem:[#allocation22_spill] sm:$0xff] %v4781_v57 }
 0x2dc   : > { %v1820_v53 = vpop.f32.mrf.mxu1 }
 0x2de   : > { %v4783_v32 = vpop.f32.mrf.mxu1 }
 0x2df   : > { %5504 = vst [vmem:[#allocation23_spill] sm:$0xff] %v4783_v32  ;;  %v4801_v32 = vpop.permute.xlu0 %1644 }
 0x2e0   : > { %v1825_v62 = vpop.f32.mrf.mxu1  ;;  %5510 = vst [vmem:[#allocation29_spill] sm:$0xff] %v4801_v32 }
 0x2e2   : > { %v4787_v9 = vpop.f32.mrf.mxu1 }
 0x2e3   : > { %5505 = vst [vmem:[#allocation24_spill] sm:$0xff] %v4787_v9  ;;  %v4805_v12 = vpop.permute.xlu0 %1639 }
 0x2e4   : > { %v1830_v33 = vpop.f32.mrf.mxu1  ;;  %5512 = vst [vmem:[#allocation31_spill] sm:$0xff] %v4805_v12 }
 0x2e6   : > { %v4791_v37 = vpop.f32.mrf.mxu1 }
 0x2e7   : > { %5506 = vst [vmem:[#allocation25_spill] sm:$0xff] %v4791_v37 }
 0x2e8   : > { %v1835_v6 = vpop.f32.mrf.mxu1 }
 0x2e9   : > { %v1505_v6 = vpop.permute.xlu1 %1504 }
 0x2ea   : > { %v4795_v49 = vpop.f32.mrf.mxu1 }
 0x2eb   : > { %5508 = vst [vmem:[#allocation27_spill] sm:$0xff] %v4795_v49  ;;  %v4811_v49 = vpop.permute.xlu0 %1634 }
 0x2ec   : > { %v1840_v53 = vpop.f32.mrf.mxu1  ;;  %5515 = vst [vmem:[#allocation34_spill] sm:$0xff] %v4811_v49 }
 0x2ed   : > { %v1500_v55 = vpop.permute.xlu1 %1499 }
 0x2ee   : > { %v4799_v57 = vpop.f32.mrf.mxu1 }
 0x2ef   : > { %5509 = vst [vmem:[#allocation28_spill] sm:$0xff] %v4799_v57 }
 0x2f0   : > { %v1845_v62 = vpop.f32.mrf.mxu1 }
 0x2f1   : > { %v4815_v62 = vpop.permute.xlu0 %1629 }
 0x2f2   : > { %v4803_v9 = vpop.f32.mrf.mxu1  ;;  %5517 = vst [vmem:[#allocation36_spill] sm:$0xff] %v4815_v62 }
 0x2f3   : > { %5511 = vst [vmem:[#allocation30_spill] sm:$0xff] %v4803_v9 }
 0x2f4   : > { %v1850_v33 = vpop.f32.mrf.mxu1 }
 0x2f5   : > { %v1495_v33 = vpop.permute.xlu1 %1494 }
 0x2f6   : > { %v4807_v37 = vpop.f32.mrf.mxu1  ;;  %v1719_v12 = vadd.f32 %v4717_v8, %v1495_v33 }
 0x2f7   : > { %5513 = vst [vmem:[#allocation32_spill] sm:$0xff] %v4807_v37 }
 0x2f8   : > { %v1855_v5 = vpop.f32.mrf.mxu1  ;;  %v1944_v49 = vadd.f32 %v4659_v20, %v1719_v12  ;;  %v1734_v20 = vadd.f32 %v4725_v61, %v1510_v26 }
 0x2f9   : > { %v4822_v5 = vpop.permute.xlu0 %1624 }
 0x2fa   : > { %v4809_v38 = vpop.f32.mrf.mxu1 }
 0x2fb   : > { %5514 = vst [vmem:[#allocation33_spill] sm:$0xff] %v4809_v38 }
 0x2fc   : > { %v1860_v53 = vpop.f32.mrf.mxu1 }
 0x2fd   : > { %v1724_v53 = vadd.f32 %v4721_v40, %v1500_v55 }
 0x2fe   : > { %v4813_v57 = vpop.f32.mrf.mxu1 }
 0x2ff   : > { %5516 = vst [vmem:[#allocation35_spill] sm:$0xff] %v4813_v57  ;;  %v1949_v62 = vadd.f32 %v4661_v17, %v1724_v53  ;;  %v1959_v17 = vadd.f32 %v4665_v24, %v1734_v20  ;;  %v1759_v24 = vadd.f32 %v4741_v16, %v4775_v56  ;;  %v1769_v16 = vadd.f32 %v4747_v25, %v4765_v14 }
 0x300   : > { %v1865_v32 = vpop.f32.mrf.mxu1 }
 0x302   : > { %v4817_v29 = vpop.f32.mrf.mxu1 }
 0x303   : > { %5518 = vst [vmem:[#allocation37_spill] sm:$0xff] %v4817_v29  ;;  %v1729_v29 = vadd.f32 %v4723_v51, %v1505_v6 }
 0x304   : > { %v1870_v9 = vpop.f32.mrf.mxu1 }
 0x305   : > { %v4830_v9 = vpop.permute.xlu0 %1619 }
 0x306   : > { %v4820_v37 = vpop.f32.mrf.mxu1 }
 0x307   : > { %5519 = vst [vmem:[#allocation38_spill] sm:$0xff] %v4820_v37 }
 0x308   : > { %v1875_v38 = vpop.f32.mrf.mxu1 }
 0x309   : > { %v1954_v38 = vadd.f32 %v4663_v48, %v1729_v29 }
 0x30a   : > { %v2168_v31 = vpop.f32.mrf.mxu1 }
 0x30b   : > { %v4826_v57 = vadd.f32 %v2168_v31, %v1944_v49  ;;  %v4838_v31 = vpop.permute.xlu0 %1614 }
 0x30c   : > { %v2170_v32 = vpop.f32.mrf.mxu1 }
 0x30e   : > { %v2173_v8 = vpop.f32.mrf.mxu1 }
 0x30f   : > { %v4832_v33 = vadd.f32 %v2173_v8, %v1949_v62  ;;  %v4843_v53 = vpop.permute.xlu0 %1609 }
 0x310   : > { %v2175_v37 = vpop.f32.mrf.mxu1 }
 0x312   : > { %v2178_v12 = vpop.f32.mrf.mxu1 }
 0x313   : > { %v4836_v40 = vadd.f32 %v2178_v12, %v1954_v38  ;;  %v4849_v29 = vpop.permute.xlu0 %1604  ;;  %v1984_v12 = vadd.f32 %v4675_v54, %v1759_v24  ;;  %v1994_v24 = vadd.f32 %v4679_v0, %v1769_v16  ;;  %v1779_v0 = vadd.f32 %v4753_v3, %v4755_v19 }
 0x314   : > { %v2180_v55 = vpop.f32.mrf.mxu1 }
 0x315   : > { %v1764_v55 = vadd.f32 %v4743_v58, %v4769_v2 }
 0x316   : > { %v2183_v49 = vpop.f32.mrf.mxu1 }
 0x317   : > { %v4841_v51 = vadd.f32 %v2183_v49, %v1959_v17  ;;  %v4855_v8 = vpop.permute.xlu0 %1599 }
 0x318   : > { %v2185_v6 = vpop.f32.mrf.mxu1 }
 0x31a   : > { %v4845_v62 = vpop.f32.mrf.mxu1 }
 0x31b   : > { %v4862_v6 = vpop.permute.xlu0 %1594 }
 0x31c   : > { %v2190_v37 = vpop.f32.mrf.mxu1 }
 0x31e   : > { %v4847_v48 = vpop.f32.mrf.mxu1 }
 0x31f   : > { %v4880_v25 = vpop.permute.xlu0 %1589 }
 0x320   : > { %v2195_v26 = vpop.f32.mrf.mxu1 }
 0x321   : > { %v1989_v26 = vadd.f32 %v4677_v59, %v1764_v55  ;;  %v1774_v59 = vadd.f32 %v4751_v11, %v4759_v15 }
 0x322   : > { %v4851_v61 = vpop.f32.mrf.mxu1 }
 0x324   : > { %v2200_v32 = vpop.f32.mrf.mxu1 }
 0x326   : > { %v4857_v38 = vpop.f32.mrf.mxu1 }
 0x328   : > { %v2205_v20 = vpop.f32.mrf.mxu1 }
 0x329   : > { %v4870_v20 = vld [vmem:[%s5478_s7] ss:$0 sm:$0xff] }
 0x32a   : > { %v2208_v17 = vpop.f32.mrf.mxu1 }
 0x32b   : > { %v2209_v49 = vadd.f32 %v2208_v17, %v1984_v12 }
 0x32c   : > { %v2210_v37 = vpop.f32.mrf.mxu1 }
 0x32d   : > { %v2335_v56 = vmax.f32 %v2209_v49, 0.0  ;;  %v1999_v37 = vadd.f32 %v4681_v47, %v1774_v59 }
 0x32e   : > { %v2213_v32 = vpop.f32.mrf.mxu1 }
 0x32f   : > { %v4873_v54 = vmul.f32 %v4870_v20, %v2335_v56  ;;  %v2214_v58 = vadd.f32 %v2213_v32, %v1989_v26  ;;  %v1585_v56 = vpop.permute.xlu0 %1584 }
 0x330   : > { %v2215_v2 = vpop.f32.mrf.mxu1 }
 0x331   : > { %v2336_v12 = vmax.f32 %v2214_v58, 0.0  ;;  %2439 = vrot.lane.b32.xlu1 %v4873_v54, %s3711_s20  ;;  %v2004_v58 = vadd.f32 %v4683_v18, %v1779_v0  ;;  %v1784_v2 = vadd.f32 %v4757_v7, %v4749_v60  ;;  %v1754_v0 = vadd.f32 %v4737_v35, %v4779_v30 }
 0x332   : > { %v2218_v14 = vpop.f32.mrf.mxu1 }
 0x333   : > { %v4883_v55 = vmul.f32 %v4870_v20, %v2336_v12  ;;  %v2219_v17 = vadd.f32 %v2218_v14, %v1994_v24  ;;  %v2009_v12 = vadd.f32 %v4685_v46, %v1784_v2  ;;  %v1789_v14 = vadd.f32 %v4761_v28, %v4745_v4  ;;  %v1580_v18 = vpop.permute.xlu0 %1579 }
 0x334   : > { %v2220_v49 = vpop.f32.mrf.mxu1  ;;  %v1794_v46 = vadd.f32 %v4763_v10, %v4739_v43  ;;  %v1979_v35 = vadd.f32 %v4673_v45, %v1754_v0 }
 0x335   : > { %v2337_v26 = vmax.f32 %v2219_v17, 0.0  ;;  %2441 = vrot.lane.b32.xlu1 %v4883_v55, %s3711_s20 }
 0x336   : > { %v2223_v11 = vpop.f32.mrf.mxu1 }
 0x337   : > { %v4891_v15 = vmul.f32 %v4870_v20, %v2337_v26  ;;  %v2224_v16 = vadd.f32 %v2223_v11, %v1999_v37  ;;  %v2014_v26 = vadd.f32 %v4687_v50, %v1789_v14  ;;  %v2019_v50 = vadd.f32 %v4689_v1, %v1794_v46 }
 0x338   : > { %v2225_v32 = vpop.f32.mrf.mxu1 }
 0x339   : > { %v2338_v47 = vmax.f32 %v2224_v16, 0.0  ;;  %2443 = vrot.lane.b32.xlu1 %v4891_v15, %s3711_s20  ;;  %v1575_v32 = vpop.permute.xlu0 %1574 }
 0x33a   : > { %v2228_v3 = vpop.f32.mrf.mxu1  ;;  %v1799_v43 = vadd.f32 %v4767_v41, %v1575_v32  ;;  %v1804_v41 = vadd.f32 %v4771_v63, %v1580_v18  ;;  %v1809_v63 = vadd.f32 %v4773_v23, %v1585_v56 }
 0x33b   : > { %v4899_v19 = vmul.f32 %v4870_v20, %v2338_v47  ;;  %v2229_v24 = vadd.f32 %v2228_v3, %v2004_v58  ;;  %v1749_v58 = vadd.f32 %v4735_v22, %v4785_v36  ;;  %v2204_v47 = vadd.f32 %v4857_v38, %v1979_v35 }
 0x33c   : > { %v2230_v59 = vpop.f32.mrf.mxu1  ;;  %v1744_v22 = vadd.f32 %v4733_v34, %v4789_v39  ;;  %v2024_v1 = vadd.f32 %v4691_v21, %v1799_v43  ;;  %v2029_v34 = vadd.f32 %v4693_v44, %v1804_v41  ;;  %v5522_v44 = vld [vmem:[#allocation21_spill] sm:$0xff] }
 0x33d   : > { %v2339_v17 = vmax.f32 %v2229_v24, 0.0  ;;  %2445 = vrot.lane.b32.xlu1 %v4899_v19, %s3711_s20  ;;  %v1974_v45 = vadd.f32 %v4671_v42, %v1749_v58  ;;  %v2334_v14 = vmax.f32 %v2204_v47, 0.0  ;;  %v1739_v42 = vadd.f32 %v4729_v52, %v4797_v27  ;;  %v5520_v27 = vld [vmem:[#allocation6_spill] sm:$0xff]  ;;  %v5523_v58 = vld [vmem:[#allocation8_spill] sm:$0xff] }
 0x33e   : > { %v2233_v60 = vpop.f32.mrf.mxu1  ;;  %v1969_v21 = vadd.f32 %v4669_v13, %v1744_v22  ;;  %v5521_v13 = vld [vmem:[#allocation7_spill] sm:$0xff]  ;;  %v1814_v23 = vadd.f32 %v5522_v44, %v4880_v25 }
 0x33f   : > { %v4907_v7 = vmul.f32 %v4870_v20, %v2339_v17  ;;  %v2234_v49 = vadd.f32 %v2233_v60, %v2009_v12  ;;  %v2199_v38 = vadd.f32 %v4851_v61, %v1974_v45  ;;  %v1964_v52 = vadd.f32 %v5520_v27, %v1739_v42  ;;  %v5527_v27 = vld [vmem:[#allocation14_spill] sm:$0xff] }
 0x340   : > { %v2235_v37 = vpop.f32.mrf.mxu1  ;;  %v2194_v18 = vadd.f32 %v4847_v48, %v1969_v21  ;;  %v2034_v46 = vadd.f32 %v5521_v13, %v1809_v63  ;;  %v5526_v63 = vld [vmem:[#allocation28_spill] sm:$0xff] }
 0x341   : > { %v2340_v4 = vmax.f32 %v2234_v49, 0.0  ;;  %2447 = vrot.lane.b32.xlu1 %v4907_v7, %s3711_s20  ;;  %v2333_v49 = vmax.f32 %v2199_v38, 0.0  ;;  %v4952_v37 = vmul.f32 %v4870_v20, %v2334_v14  ;;  %v2189_v48 = vadd.f32 %v4845_v62, %v1964_v52  ;;  %v5524_v38 = vld [vmem:[#allocation27_spill] sm:$0xff]  ;;  %v5528_v52 = vld [vmem:[#allocation30_spill] sm:$0xff] }
 0x342   : > { %v2238_v28 = vpop.f32.mrf.mxu1  ;;  %v1839_v14 = vadd.f32 %v5524_v38, %v4838_v31  ;;  %v1849_v13 = vadd.f32 %v5528_v52, %v4822_v5 }
 0x343   : > { %v4917_v11 = vmul.f32 %v4870_v20, %v2340_v4  ;;  %v2239_v16 = vadd.f32 %v2238_v28, %v2014_v26  ;;  %v2332_v4 = vmax.f32 %v2194_v18, 0.0  ;;  %v4964_v28 = vmul.f32 %v4870_v20, %v2333_v49 }
 0x344   : > { %v2240_v2 = vpop.f32.mrf.mxu1  ;;  %v2331_v25 = vmax.f32 %v2189_v48, 0.0  ;;  %v5529_v48 = vld [vmem:[#allocation15_spill] sm:$0xff] }
 0x345   : > { %v2341_v10 = vmax.f32 %v2239_v16, 0.0  ;;  %2449 = vrot.lane.b32.xlu1 %v4917_v11, %s3711_s20  ;;  %v2039_v2 = vadd.f32 %v5523_v58, %v1814_v23  ;;  %v5531_v58 = vld [vmem:[#allocation32_spill] sm:$0xff] }
 0x346   : > { %v2243_v30 = vpop.f32.mrf.mxu1  ;;  %v4982_v47 = vmul.f32 %v4870_v20, %v2331_v25 }
 0x347   : > { %v4928_v3 = vmul.f32 %v4870_v20, %v2341_v10  ;;  %v2244_v24 = vadd.f32 %v2243_v30, %v2019_v50  ;;  %v4972_v50 = vmul.f32 %v4870_v20, %v2332_v4  ;;  %v2330_v30 = vmax.f32 %v4841_v51, 0.0 }
 0x348   : > { %v2245_v36 = vpop.f32.mrf.mxu1  ;;  %v2328_v51 = vmax.f32 %v4832_v33, 0.0  ;;  %v2074_v4 = vadd.f32 %v5529_v48, %v1849_v13 }
 0x349   : > { %v2342_v59 = vmax.f32 %v2244_v24, 0.0  ;;  %2451 = vrot.lane.b32.xlu1 %v4928_v3, %s3711_s20  ;;  %v2329_v36 = vmax.f32 %v4836_v40, 0.0  ;;  %v4990_v45 = vmul.f32 %v4870_v20, %v2330_v30 }
 0x34a   : > { %v2248_v12 = vpop.f32.mrf.mxu1  ;;  %v5008_v42 = vmul.f32 %v4870_v20, %v2328_v51  ;;  %v5534_v51 = vld [vmem:[#allocation33_spill] sm:$0xff] }
 0x34b   : > { %v4939_v17 = vmul.f32 %v4870_v20, %v2342_v59  ;;  %v4941_v60 = vadd.f32 %v2248_v12, %v2024_v1  ;;  %v4998_v59 = vmul.f32 %v4870_v20, %v2329_v36 }
 0x34c   : > { %v2250_v39 = vpop.f32.mrf.mxu1 }
 0x34d   : > { %2453 = vrot.lane.b32.xlu1 %v4939_v17, %s3711_s20  ;;  %v2327_v39 = vmax.f32 %v4826_v57, 0.0 }
 0x34e   : > { %v2253_v61 = vpop.f32.mrf.mxu1 }
 0x34f   : > { %v4954_v0 = vadd.f32 %v2253_v61, %v2029_v34  ;;  %v5525_v34 = vld [vmem:[#allocation13_spill] sm:$0xff]  ;;  %v1844_v61 = vadd.f32 %v5526_v63, %v4830_v9  ;;  %v5016_v18 = vmul.f32 %v4870_v20, %v2327_v39 }
 0x350   : > { %v2255_v26 = vpop.f32.mrf.mxu1  ;;  %v2064_v33 = vadd.f32 %v5525_v34, %v1839_v14 }
 0x351   : > { %2437 = vrot.lane.b32.xlu1 %v4952_v37, %s3711_s20  ;;  %v2069_v57 = vadd.f32 %v5527_v27, %v1844_v61  ;;  %v5536_v61 = vld [vmem:[#allocation31_spill] sm:$0xff] }
 0x352   : > { %v2258_v56 = vpop.f32.mrf.mxu1 }
 0x353   : > { %v4966_v16 = vadd.f32 %v2258_v56, %v2034_v46 }
 0x354   : > { %v2260_v32 = vpop.f32.mrf.mxu1 }
 0x355   : > { %2435 = vrot.lane.b32.xlu1 %v4964_v28, %s3711_s20  ;;  %v5530_v32 = vld [vmem:[#allocation36_spill] sm:$0xff] }
 0x356   : > { %v2263_v35 = vpop.f32.mrf.mxu1 }
 0x357   : > { %v4974_v43 = vadd.f32 %v2263_v35, %v2039_v2  ;;  %v1854_v2 = vadd.f32 %v5531_v58, %v5530_v32 }
 0x358   : > { %v2265_v62 = vpop.f32.mrf.mxu1 }
 0x359   : > { %2433 = vrot.lane.b32.xlu1 %v4972_v50, %s3711_s20 }
 0x35a   : > { %v4978_v10 = vpop.f32.mrf.mxu1 }
 0x35c   : > { %v2270_v24 = vpop.f32.mrf.mxu1 }
 0x35d   : > { %2431 = vrot.lane.b32.xlu1 %v4982_v47, %s3711_s20  ;;  %v5532_v24 = vld [vmem:[#allocation16_spill] sm:$0xff] }
 0x35e   : > { %v4986_v22 = vpop.f32.mrf.mxu1  ;;  %v2079_v36 = vadd.f32 %v5532_v24, %v1854_v2 }
 0x360   : > { %v2275_v1 = vpop.f32.mrf.mxu1 }
 0x361   : > { %2429 = vrot.lane.b32.xlu1 %v4990_v45, %s3711_s20  ;;  %v5533_v1 = vld [vmem:[#allocation34_spill] sm:$0xff] }
 0x362   : > { %v4994_v41 = vpop.f32.mrf.mxu1 }
 0x364   : > { %v2280_v12 = vpop.f32.mrf.mxu1 }
 0x365   : > { %2427 = vrot.lane.b32.xlu1 %v4998_v59, %s3711_s20  ;;  %v1859_v12 = vadd.f32 %v5534_v51, %v5533_v1  ;;  %v5544_v1 = vld [vmem:[#allocation38_spill] sm:$0xff] }
 0x366   : > { %v5004_v40 = vpop.f32.mrf.mxu1 }
 0x368   : > { %v2285_v21 = vpop.f32.mrf.mxu1 }
 0x369   : > { %2425 = vrot.lane.b32.xlu1 %v5008_v42, %s3711_s20 }
 0x36a   : > { %v2288_v31 = vpop.f32.mrf.mxu1 }
 0x36b   : > { %v2289_v49 = vadd.f32 %v2288_v31, %v2064_v33  ;;  %v5535_v33 = vld [vmem:[#allocation17_spill] sm:$0xff]  ;;  %v5537_v31 = vld [vmem:[#allocation35_spill] sm:$0xff] }
 0x36c   : > { %v2290_v26 = vpop.f32.mrf.mxu1  ;;  %v2084_v63 = vadd.f32 %v5535_v33, %v1859_v12 }
 0x36d   : > { %v2351_v46 = vmax.f32 %v2289_v49, 0.0  ;;  %2423 = vrot.lane.b32.xlu1 %v5016_v18, %s3711_s20  ;;  %v1864_v49 = vadd.f32 %v5537_v31, %v5536_v61  ;;  %v5547_v31 = vld [vmem:[#allocation20_spill] sm:$0xff] }
 0x36e   : > { %v2293_v44 = vpop.f32.mrf.mxu1 }
 0x36f   : > { %v5024_v9 = vmul.f32 %v4870_v20, %v2351_v46  ;;  %v2294_v23 = vadd.f32 %v2293_v44, %v2069_v57  ;;  %v5538_v46 = vld [vmem:[#allocation18_spill] sm:$0xff] }
 0x370   : > { %v2295_v56 = vpop.f32.mrf.mxu1  ;;  %v2089_v44 = vadd.f32 %v5538_v46, %v1864_v49 }
 0x371   : > { %v2352_v35 = vmax.f32 %v2294_v23, 0.0  ;;  %2471 = vrot.lane.b32.xlu0 %v5024_v9, %s3711_s20  ;;  %2581 = vrot.lane.b32.xlu1 %v4939_v17, %s3712_s21  ;;  %v5539_v23 = vld [vmem:[#allocation29_spill] sm:$0xff] }
 0x372   : > { %v2298_v5 = vpop.f32.mrf.mxu1  ;;  %v5540_v56 = vld [vmem:[#allocation37_spill] sm:$0xff] }
 0x373   : > { %v5034_v25 = vmul.f32 %v4870_v20, %v2352_v35  ;;  %v2299_v62 = vadd.f32 %v2298_v5, %v2074_v4  ;;  %v1869_v48 = vadd.f32 %v5540_v56, %v5539_v23  ;;  %v5541_v5 = vld [vmem:[#allocation25_spill] sm:$0xff]  ;;  %v5549_v56 = vld [vmem:[#allocation11_spill] sm:$0xff] }
 0x374   : > { %v2300_v30 = vpop.f32.mrf.mxu1 }
 0x375   : > { %v2353_v38 = vmax.f32 %v2299_v62, 0.0  ;;  %2473 = vrot.lane.b32.xlu0 %v5034_v25, %s3711_s20  ;;  %2579 = vrot.lane.b32.xlu1 %v4928_v3, %s3712_s21  ;;  %v1834_v62 = vadd.f32 %v5541_v5, %v4843_v53  ;;  %v5542_v30 = vld [vmem:[#allocation19_spill] sm:$0xff]  ;;  %v5545_v53 = vld [vmem:[#allocation24_spill] sm:$0xff] }
 0x376   : > { %v2303_v14 = vpop.f32.mrf.mxu1  ;;  %v2094_v24 = vadd.f32 %v5542_v30, %v1869_v48  ;;  %v1829_v33 = vadd.f32 %v5545_v53, %v4849_v29  ;;  %v5548_v29 = vld [vmem:[#allocation23_spill] sm:$0xff] }
 0x377   : > { %v5044_v39 = vmul.f32 %v4870_v20, %v2353_v38  ;;  %v2304_v21 = vadd.f32 %v2303_v14, %v2079_v36  ;;  %v5543_v36 = vld [vmem:[#allocation26_spill] sm:$0xff]  ;;  %v1824_v23 = vadd.f32 %v5548_v29, %v4855_v8 }
 0x378   : > { %v2305_v34 = vpop.f32.mrf.mxu1  ;;  %v1874_v51 = vadd.f32 %v5544_v1, %v5543_v36  ;;  %v2054_v48 = vadd.f32 %v5549_v56, %v1829_v33  ;;  %v5552_v36 = vld [vmem:[#allocation9_spill] sm:$0xff]  ;;  %v2680_v33 = vld [vmem:[%s5476_s5 + $0x8] sm:$0xff] }
 0x379   : > { %v2354_v26 = vmax.f32 %v2304_v21, 0.0  ;;  %2475 = vrot.lane.b32.xlu0 %v5044_v39, %s3711_s20  ;;  %2577 = vrot.lane.b32.xlu1 %v4917_v11, %s3712_s21 }
 0x37a   : > { %v2308_v27 = vpop.f32.mrf.mxu1  ;;  %v2099_v49 = vadd.f32 %v5547_v31, %v1874_v51  ;;  %2767 = vmatprep.mubr.f32.mxu0 %v2680_v33 }
 0x37b   : > { %v5054_v57 = vmul.f32 %v4870_v20, %v2354_v26  ;;  %v2309_v52 = vadd.f32 %v2308_v27, %v2084_v63  ;;  %v5546_v63 = vld [vmem:[#allocation12_spill] sm:$0xff] }
 0x37c   : > { %v2310_v13 = vpop.f32.mrf.mxu1  ;;  %v2059_v61 = vadd.f32 %v5546_v63, %v1834_v62  ;;  %v5551_v62 = vld [vmem:[#allocation10_spill] sm:$0xff] }
 0x37d   : > { %v2355_v4 = vmax.f32 %v2309_v52, 0.0  ;;  %2477 = vrot.lane.b32.xlu0 %v5054_v57, %s3711_s20  ;;  %2575 = vrot.lane.b32.xlu1 %v4907_v7, %s3712_s21  ;;  %v2049_v8 = vadd.f32 %v5551_v62, %v1824_v23 }
 0x37e   : > { %v2313_v32 = vpop.f32.mrf.mxu1  ;;  %v2284_v52 = vadd.f32 %v5004_v40, %v2059_v61  ;;  %v2343_v61 = vmax.f32 %v4941_v60, 0.0 }
 0x37f   : > { %v5064_v58 = vmul.f32 %v4870_v20, %v2355_v4  ;;  %v2314_v2 = vadd.f32 %v2313_v32, %v2089_v44  ;;  %v2279_v32 = vadd.f32 %v4994_v41, %v2054_v48  ;;  %v2274_v30 = vadd.f32 %v4986_v22, %v2049_v8 }
 0x380   : > { %v2315_v35 = vpop.f32.mrf.mxu1  ;;  %v2350_v40 = vmax.f32 %v2284_v52, 0.0 }
 0x381   : > { %v2356_v12 = vmax.f32 %v2314_v2, 0.0  ;;  %2479 = vrot.lane.b32.xlu0 %v5064_v58, %s3711_s20  ;;  %2573 = vrot.lane.b32.xlu1 %v4899_v19, %s3712_s21  ;;  %v5550_v35 = vld [vmem:[#allocation22_spill] sm:$0xff]  ;;  %v2348_v51 = vmax.f32 %v2274_v30, 0.0 }
 0x382   : > { %v2318_v38 = vpop.f32.mrf.mxu1  ;;  %v1819_v5 = vadd.f32 %v5550_v35, %v4862_v6  ;;  %v5110_v41 = vmul.f32 %v4870_v20, %v2350_v40 }
 0x383   : > { %v5076_v14 = vmul.f32 %v4870_v20, %v2356_v12  ;;  %v2319_v21 = vadd.f32 %v2318_v38, %v2094_v24  ;;  %v2349_v24 = vmax.f32 %v2279_v32, 0.0  ;;  %v5126_v38 = vmul.f32 %v4870_v20, %v2348_v51 }
 0x384   : > { %v2320_v34 = vpop.f32.mrf.mxu1  ;;  %v2044_v1 = vadd.f32 %v5552_v36, %v1819_v5 }
 0x385   : > { %v2357_v26 = vmax.f32 %v2319_v21, 0.0  ;;  %2481 = vrot.lane.b32.xlu0 %v5076_v14, %s3711_s20  ;;  %2571 = vrot.lane.b32.xlu1 %v4891_v15, %s3712_s21  ;;  %v5119_v12 = vmul.f32 %v4870_v20, %v2349_v24  ;;  %v2345_v34 = vmax.f32 %v4966_v16, 0.0 }
 0x386   : > { %v2323_v27 = vpop.f32.mrf.mxu1  ;;  %v2269_v6 = vadd.f32 %v4978_v10, %v2044_v1  ;;  %v2346_v10 = vmax.f32 %v4974_v43, 0.0  ;;  %v2344_v43 = vmax.f32 %v4954_v0, 0.0  ;;  %v5170_v0 = vmul.f32 %v4870_v20, %v2343_v61 }
 0x387   : > { %v5088_v13 = vmul.f32 %v4870_v20, %v2357_v26  ;;  %v2324_v46 = vadd.f32 %v2323_v27, %v2099_v49  ;;  %v5153_v63 = vmul.f32 %v4870_v20, %v2345_v34 }
 0x388   : > { %v2325_v44 = vpop.f32.mrf.mxu1  ;;  %v2347_v22 = vmax.f32 %v2269_v6, 0.0  ;;  %v5142_v53 = vmul.f32 %v4870_v20, %v2346_v10  ;;  %v5163_v31 = vmul.f32 %v4870_v20, %v2344_v43  ;;  %v2960_v6 = vld [vmem:[%s5479_s8 + $0x10] sm:$0x3] }
 0x389   : > { %v2358_v4 = vmax.f32 %v2324_v46, 0.0  ;;  %2483 = vrot.lane.b32.xlu0 %v5088_v13, %s3711_s20  ;;  %2569 = vrot.lane.b32.xlu1 %v4883_v55, %s3712_s21 }
 0x38a   : > { %v5134_v21 = vmul.f32 %v4870_v20, %v2347_v22 }
 0x38b   : > { %v5099_v2 = vmul.f32 %v4870_v20, %v2358_v4 }
 0x38d   : > { %2485 = vrot.lane.b32.xlu0 %v5099_v2, %s3711_s20  ;;  %2567 = vrot.lane.b32.xlu1 %v4873_v54, %s3712_s21 }
 0x391   : > { %2469 = vrot.lane.b32.xlu0 %v5110_v41, %s3711_s20  ;;  %2565 = vrot.lane.b32.xlu1 %v4952_v37, %s3712_s21 }
 0x395   : > { %2467 = vrot.lane.b32.xlu0 %v5119_v12, %s3711_s20  ;;  %2563 = vrot.lane.b32.xlu1 %v4964_v28, %s3712_s21 }
 0x399   : > { %2465 = vrot.lane.b32.xlu0 %v5126_v38, %s3711_s20  ;;  %2561 = vrot.lane.b32.xlu1 %v4972_v50, %s3712_s21 }
 0x39d   : > { %2463 = vrot.lane.b32.xlu0 %v5134_v21, %s3711_s20  ;;  %2559 = vrot.lane.b32.xlu1 %v4982_v47, %s3712_s21 }
 0x3a1   : > { %2461 = vrot.lane.b32.xlu0 %v5142_v53, %s3711_s20  ;;  %2557 = vrot.lane.b32.xlu1 %v4990_v45, %s3712_s21 }
 0x3a3   : > { %v5159_v16 = vpop.permute.xlu1 %2439 }
 0x3a5   : > { %2459 = vrot.lane.b32.xlu0 %v5153_v63, %s3711_s20  ;;  %2555 = vrot.lane.b32.xlu1 %v4998_v59, %s3712_s21 }
 0x3a7   : > { %v2442_v49 = vpop.permute.xlu1 %2441 }
 0x3a9   : > { %2457 = vrot.lane.b32.xlu0 %v5163_v31, %s3711_s20  ;;  %2553 = vrot.lane.b32.xlu1 %v5008_v42, %s3712_s21 }
 0x3ab   : > { %v2444_v60 = vpop.permute.xlu1 %2443 }
 0x3ad   : > { %2455 = vrot.lane.b32.xlu0 %v5170_v0, %s3711_s20  ;;  %2551 = vrot.lane.b32.xlu1 %v5016_v18, %s3712_s21  ;;  %s347_s20 = scalar_lea.vmem %s5480_s9, %s3380_s15 }
 0x3af   : > { %v2446_v26 = vpop.permute.xlu1 %2445 }
 0x3b1   : > { %2611 = vrot.lane.b32.xlu0 %v5088_v13, %s3712_s21 }
 0x3b3   : > { %v2448_v20 = vpop.permute.xlu1 %2447 }
 0x3b5   : > { %2609 = vrot.lane.b32.xlu0 %v5076_v14, %s3712_s21 }
 0x3b7   : > { %v2450_v27 = vpop.permute.xlu1 %2449 }
 0x3b9   : > { %2607 = vrot.lane.b32.xlu0 %v5064_v58, %s3712_s21 }
 0x3bb   : > { %v2452_v52 = vpop.permute.xlu1 %2451 }
 0x3bd   : > { %2605 = vrot.lane.b32.xlu0 %v5054_v57, %s3712_s21 }
 0x3bf   : > { %v2454_v46 = vpop.permute.xlu1 %2453 }
 0x3c1   : > { %2603 = vrot.lane.b32.xlu0 %v5044_v39, %s3712_s21 }
 0x3c3   : > { %v2438_v44 = vpop.permute.xlu1 %2437 }
 0x3c5   : > { %2601 = vrot.lane.b32.xlu0 %v5034_v25, %s3712_s21 }
 0x3c7   : > { %v2436_v29 = vpop.permute.xlu1 %2435 }
 0x3c9   : > { %2599 = vrot.lane.b32.xlu0 %v5024_v9, %s3712_s21 }
 0x3cb   : > { %v2434_v23 = vpop.permute.xlu1 %2433 }
 0x3cd   : > { %2613 = vrot.lane.b32.xlu0 %v5099_v2, %s3712_s21 }
 0x3cf   : > { %v2432_v4 = vpop.permute.xlu1 %2431 }
 0x3d1   : > { %2597 = vrot.lane.b32.xlu0 %v5110_v41, %s3712_s21 }
 0x3d3   : > { %v2430_v40 = vpop.permute.xlu1 %2429 }
 0x3d5   : > { %2595 = vrot.lane.b32.xlu0 %v5119_v12, %s3712_s21 }
 0x3d7   : > { %v2428_v62 = vpop.permute.xlu1 %2427 }
 0x3d9   : > { %2593 = vrot.lane.b32.xlu0 %v5126_v38, %s3712_s21 }
 0x3db   : > { %v2426_v30 = vpop.permute.xlu1 %2425 }
 0x3dd   : > { %2591 = vrot.lane.b32.xlu0 %v5134_v21, %s3712_s21 }
 0x3df   : > { %v2424_v1 = vpop.permute.xlu1 %2423 }
 0x3e1   : > { %2589 = vrot.lane.b32.xlu0 %v5142_v53, %s3712_s21 }
 0x3e3   : > { %v2472_v56 = vpop.permute.xlu0 %2471  ;;  %v5220_v22 = vpop.permute.xlu1 %2581 }
 0x3e5   : > { %2587 = vrot.lane.b32.xlu0 %v5153_v63, %s3712_s21 }
 0x3e7   : > { %v2474_v48 = vpop.permute.xlu0 %2473  ;;  %v5234_v33 = vpop.permute.xlu1 %2579 }
 0x3e9   : > { %2585 = vrot.lane.b32.xlu0 %v5163_v31, %s3712_s21 }
 0x3eb   : > { %v2476_v32 = vpop.permute.xlu0 %2475  ;;  %v5249_v61 = vpop.permute.xlu1 %2577 }
 0x3ed   : > { %2583 = vrot.lane.b32.xlu0 %v5170_v0, %s3712_s21 }
 0x3ef   : > { %v2478_v35 = vpop.permute.xlu0 %2477 }
 0x3f3   : > { %v2480_v5 = vpop.permute.xlu0 %2479 }
 0x3f7   : > { %v2482_v8 = vpop.permute.xlu0 %2481 }
 0x3fb   : > { %v2484_v24 = vpop.permute.xlu0 %2483 }
 0x3ff   : > { %v2486_v36 = vpop.permute.xlu0 %2485 }
 0x400   : > { %3422 = vmatprep.subr.msk.mxu0 %vm4386_vm3, %v2486_v36  ;;  %v2702_v36 = vld [vmem:[%s5476_s5 + $0xb8] sm:$0xff] }
 0x401   : > { %3423 = vmatpush3.msk.msra.mxu0 %vm4386_vm3, %v2454_v46  ;;  %v2686_v46 = vld [vmem:[%s5476_s5 + $0x38] sm:$0xff] }
 0x402   : > { %3424 = vmatprep.subr.msk.mxu0 %vm4386_vm3, %v2484_v24  ;;  %v2695_v24 = vld [vmem:[%s5476_s5 + $0x80] sm:$0xff] }
 0x403   : > { %v2470_v51 = vpop.permute.xlu0 %2469  ;;  %3425 = vmatpush3.msk.msra.mxu0 %vm4386_vm3, %v2452_v52  ;;  %v2679_v52 = vld [vmem:[%s5476_s5] sm:$0xff] }
 0x404   : > { %3426 = vmatprep.subr.msk.mxu0 %vm4386_vm3, %v2482_v8  ;;  %v2689_v8 = vld [vmem:[%s5476_s5 + $0x50] sm:$0xff] }
 0x405   : > { %3427 = vmatpush3.msk.msra.mxu0 %vm4386_vm3, %v2450_v27 }
 0x406   : > { %3428 = vmatprep.subr.msk.mxu0 %vm4386_vm3, %v2480_v5 }
 0x407   : > { %v2468_v10 = vpop.permute.xlu0 %2467  ;;  %3429 = vmatpush3.msk.msra.mxu0 %vm4386_vm3, %v2448_v20 }
 0x408   : > { %3430 = vmatprep.subr.msk.mxu0 %vm4386_vm3, %v2478_v35  ;;  %v2683_v35 = vld [vmem:[%s5476_s5 + $0x20] sm:$0xff] }
 0x409   : > { %3431 = vmatpush3.msk.msra.mxu0 %vm4386_vm3, %v2446_v26 }
 0x40a   : > { %3432 = vmatprep.subr.msk.mxu0 %vm4386_vm3, %v2476_v32 }
 0x40b   : > { %v2466_v34 = vpop.permute.xlu0 %2465  ;;  %3433 = vmatpush3.msk.msra.mxu0 %vm4386_vm3, %v2444_v60  ;;  %v5263_v60 = vpop.permute.xlu1 %2575 }
 0x40c   : > { %3434 = vmatprep.subr.msk.mxu0 %vm4386_vm3, %v2474_v48 }
 0x40d   : > { %3435 = vmatpush3.msk.msra.mxu0 %vm4386_vm3, %v2442_v49 }
 0x40e   : > { %3436 = vmatprep.subr.msk.mxu0 %vm4386_vm3, %v2472_v56  ;;  %v2692_v56 = vld [vmem:[%s5476_s5 + $0x68] sm:$0xff] }
 0x40f   : > { %v2464_v43 = vpop.permute.xlu0 %2463  ;;  %3437 = vmatpush3.msk.msra.mxu0 %vm4386_vm3, %v5159_v16  ;;  %v5277_v20 = vpop.permute.xlu1 %2573 }
 0x410   : > { %3438 = vmatprep.subr.msk.mxu0 %vm4386_vm3, %v2470_v51  ;;  %v2959_v51 = vld [vmem:[%s5479_s8 + $0x8] sm:$0xff] }
 0x411   : > { %3439 = vmatpush3.msk.msra.mxu0 %vm4386_vm3, %v2438_v44 }
 0x412   : > { %3440 = vmatprep.subr.msk.mxu0 %vm4386_vm3, %v2468_v10 }
 0x413   : > { %v2462_v49 = vpop.permute.xlu0 %2461  ;;  %3441 = vmatpush3.msk.msra.mxu0 %vm4386_vm3, %v2436_v29  ;;  %v2685_v29 = vld [vmem:[%s5476_s5 + $0x30] sm:$0xff] }
 0x414   : > { %3442 = vmatprep.subr.msk.mxu0 %vm4386_vm3, %v2466_v34 }
 0x415   : > { %3443 = vmatpush3.msk.msra.mxu0 %vm4386_vm3, %v2434_v23  ;;  %v5296_v23 = vpop.permute.xlu1 %2571 }
 0x416   : > { %3444 = vmatprep.subr.msk.mxu0 %vm4386_vm3, %v2464_v43 }
 0x417   : > { %v2460_v16 = vpop.permute.xlu0 %2459  ;;  %3445 = vmatpush3.msk.msra.mxu0 %vm4386_vm3, %v2432_v4 }
 0x418   : > { %3446 = vmatprep.subr.msk.mxu0 %vm4386_vm3, %v2462_v49 }
 0x419   : > { %3447 = vmatpush3.msk.msra.mxu0 %vm4386_vm3, %v2430_v40 }
 0x41a   : > { %3448 = vmatprep.subr.msk.mxu0 %vm4386_vm3, %v2460_v16 }
 0x41b   : > { %v2458_v26 = vpop.permute.xlu0 %2457  ;;  %3449 = vmatpush3.msk.msra.mxu0 %vm4386_vm3, %v2428_v62  ;;  %v2690_v62 = vld [vmem:[%s5476_s5 + $0x58] sm:$0xff] }
 0x41c   : > { %3450 = vmatprep.subr.msk.mxu0 %vm4386_vm3, %v2458_v26 }
 0x41d   : > { %3451 = vmatpush3.msk.msra.mxu0 %vm4386_vm3, %v2426_v30  ;;  %v2696_v30 = vld [vmem:[%s5476_s5 + $0x88] sm:$0xff] }
 0x41f   : > { %v2456_v27 = vpop.permute.xlu0 %2455 }
 0x420   : > { %3452 = vmatprep.subr.msk.mxu0 %vm4386_vm3, %v2456_v27 }
 0x421   : > { %3453 = vmatpush3.msk.msra.mxu0 %vm4386_vm3, %v2424_v1  ;;  %v2701_v1 = vld [vmem:[%s5476_s5 + $0xb0] sm:$0xff] }
 0x422   : > { %3466 = vmatprep.subr.mxu0 %v5099_v2  ;;  %2768 = vmatmul.mubr.f32.vlgmr.msra.gmra.mxu0 %v2679_v52 }
 0x423   : > { %v5290_v44 = vpop.permute.xlu0 %2611  ;;  %3467 = vmatpush3.msra.mxu0 %v4939_v17  ;;  %2772 = vmatprep.mubr.f32.mxu0 %v2686_v46  ;;  %v2691_v17 = vld [vmem:[%s5476_s5 + $0x60] sm:$0xff] }
 0x424   : > { %3468 = vmatprep.subr.mxu0 %v5088_v13  ;;  %v2698_v13 = vld [vmem:[%s5476_s5 + $0x98] sm:$0xff] }
 0x425   : > { %3469 = vmatpush3.msra.mxu0 %v4928_v3  ;;  %v5313_v3 = vpop.permute.xlu1 %2569 }
 0x426   : > { %3470 = vmatprep.subr.mxu0 %v5076_v14  ;;  %2773 = vmatmul.mubr.f32.gmra.mxu0 %v2685_v29 }
 0x427   : > { %v2610_v2 = vpop.permute.xlu0 %2609  ;;  %3471 = vmatpush3.msra.mxu0 %v4917_v11  ;;  %2777 = vmatprep.mubr.f32.mxu0 %v2692_v56  ;;  %v2697_v11 = vld [vmem:[%s5476_s5 + $0x90] sm:$0xff] }
 0x428   : > { %3472 = vmatprep.subr.mxu0 %v5064_v58  ;;  %v2682_v58 = vld [vmem:[%s5476_s5 + $0x18] sm:$0xff] }
 0x429   : > { %3473 = vmatpush3.msra.mxu0 %v4907_v7 }
 0x42a   : > { %3474 = vmatprep.subr.mxu0 %v5054_v57  ;;  %2778 = vmatmul.mubr.f32.gmra.mxu0 %v2691_v17 }
 0x42b   : > { %v2608_v14 = vpop.permute.xlu0 %2607  ;;  %3475 = vmatpush3.msra.mxu0 %v4899_v19  ;;  %2782 = vmatprep.mubr.f32.mxu0 %v2698_v13  ;;  %v5327_v19 = vpop.permute.xlu1 %2567 }
 0x42c   : > { %3476 = vmatprep.subr.mxu0 %v5044_v39 }
 0x42d   : > { %3477 = vmatpush3.msra.mxu0 %v4891_v15 }
 0x42e   : > { %3478 = vmatprep.subr.mxu0 %v5034_v25  ;;  %2783 = vmatmul.mubr.f32.gmra.mxu0 %v2697_v11  ;;  %v2693_v25 = vld [vmem:[%s5476_s5 + $0x70] sm:$0xff] }
 0x42f   : > { %v2606_v7 = vpop.permute.xlu0 %2605  ;;  %3479 = vmatpush3.msra.mxu0 %v4883_v55  ;;  %2852 = vmatprep.mubr.f32.mxu0 %v2682_v58  ;;  %v2566_v15 = vpop.permute.xlu1 %2565 }
 0x430   : > { %3480 = vmatprep.subr.mxu0 %v5024_v9 }
 0x431   : > { %3481 = vmatpush3.msra.mxu0 %v4873_v54 }
 0x432   : > { %3482 = vmatprep.subr.mxu0 %v5110_v41  ;;  %v2700_v41 = vld [vmem:[%s5476_s5 + $0xa8] sm:$0xff] }
 0x433   : > { %v2604_v39 = vpop.permute.xlu0 %2603  ;;  %3483 = vmatpush3.msra.mxu0 %v4952_v37  ;;  %v2564_v37 = vpop.permute.xlu1 %2563 }
 0x434   : > { %3484 = vmatprep.subr.mxu0 %v5119_v12 }
 0x435   : > { %3485 = vmatpush3.msra.mxu0 %v4964_v28 }
 0x436   : > { %3486 = vmatprep.subr.mxu0 %v5126_v38  ;;  %v2699_v38 = vld [vmem:[%s5476_s5 + $0xa0] sm:$0xff] }
 0x437   : > { %v2602_v55 = vpop.permute.xlu0 %2601  ;;  %3487 = vmatpush3.msra.mxu0 %v4972_v50  ;;  %v2681_v50 = vld [vmem:[%s5476_s5 + $0x10] sm:$0xff] }
 0x438   : > { %3488 = vmatprep.subr.mxu0 %v5134_v21  ;;  %v2684_v21 = vld [vmem:[%s5476_s5 + $0x28] sm:$0xff] }
 0x439   : > { %3489 = vmatpush3.msra.mxu0 %v4982_v47  ;;  %v2688_v47 = vld [vmem:[%s5476_s5 + $0x48] sm:$0xff] }
 0x43a   : > { %3490 = vmatprep.subr.mxu0 %v5142_v53 }
 0x43b   : > { %v2600_v54 = vpop.permute.xlu0 %2599  ;;  %3491 = vmatpush3.msra.mxu0 %v4990_v45  ;;  %v2562_v45 = vpop.permute.xlu1 %2561 }
 0x43c   : > { %3492 = vmatprep.subr.mxu0 %v5153_v63 }
 0x43d   : > { %3493 = vmatpush3.msra.mxu0 %v4998_v59 }
 0x43e   : > { %3494 = vmatprep.subr.mxu0 %v5163_v31 }
 0x43f   : > { %v2614_v28 = vpop.permute.xlu0 %2613  ;;  %3495 = vmatpush3.msra.mxu0 %v5008_v42  ;;  %v2687_v42 = vld [vmem:[%s5476_s5 + $0x40] sm:$0xff]  ;;  %v2560_v57 = vpop.permute.xlu1 %2559 }
 0x440   : > { %3496 = vmatprep.subr.mxu0 %v5170_v0 }
 0x441   : > { %3497 = vmatpush3.msra.mxu0 %v5016_v18  ;;  %v2694_v18 = vld [vmem:[%s5476_s5 + $0x78] sm:$0xff] }
 0x442   : > { %3510 = vmatprep.subr.msk.mxu0 %vm1235_vm4, %v2614_v28  ;;  %2853 = vmatmul.mubr.f32.vlgmr.msra.gmra.mxu0 %v2681_v50 }
 0x443   : > { %v2598_v59 = vpop.permute.xlu0 %2597  ;;  %3511 = vmatpush3.msk.msra.mxu0 %vm1235_vm4, %v5220_v22  ;;  %2857 = vmatprep.mubr.f32.mxu0 %v2688_v47  ;;  %v2558_v53 = vpop.permute.xlu1 %2557  ;;  %v2958_v22 = vld [vmem:[%s5479_s8] sm:$0xff] }
 0x444   : > { %3512 = vmatprep.subr.msk.mxu0 %vm1235_vm4, %v5290_v44 }
 0x445   : > { %3513 = vmatpush3.msk.msra.mxu0 %vm1235_vm4, %v5234_v33 }
 0x446   : > { %3514 = vmatprep.subr.msk.mxu0 %vm1235_vm4, %v2610_v2  ;;  %2858 = vmatmul.mubr.f32.gmra.mxu0 %v2687_v42 }
 0x447   : > { %v2596_v9 = vpop.permute.xlu0 %2595  ;;  %3515 = vmatpush3.msk.msra.mxu0 %vm1235_vm4, %v5249_v61  ;;  %2862 = vmatprep.mubr.f32.mxu0 %v2694_v18  ;;  %v2556_v0 = vpop.permute.xlu1 %2555 }
 0x448   : > { %3516 = vmatprep.subr.msk.mxu0 %vm1235_vm4, %v2608_v14 }
 0x449   : > { %3517 = vmatpush3.msk.msra.mxu0 %vm1235_vm4, %v5263_v60 }
 0x44a   : > { %3518 = vmatprep.subr.msk.mxu0 %vm1235_vm4, %v2606_v7  ;;  %2863 = vmatmul.mubr.f32.gmra.mxu0 %v2693_v25 }
 0x44b   : > { %v2594_v12 = vpop.permute.xlu0 %2593  ;;  %3519 = vmatpush3.msk.msra.mxu0 %vm1235_vm4, %v5277_v20  ;;  %2867 = vmatprep.mubr.f32.mxu0 %v2700_v41  ;;  %v2554_v4 = vpop.permute.xlu1 %2553 }
 0x44c   : > { %3520 = vmatprep.subr.msk.mxu0 %vm1235_vm4, %v2604_v39 }
 0x44d   : > { %3521 = vmatpush3.msk.msra.mxu0 %vm1235_vm4, %v5296_v23 }
 0x44e   : > { %3522 = vmatprep.subr.msk.mxu0 %vm1235_vm4, %v2602_v55  ;;  %2868 = vmatmul.mubr.f32.gmra.mxu0 %v2699_v38 }
 0x44f   : > { %v2592_v63 = vpop.permute.xlu0 %2591  ;;  %3523 = vmatpush3.msk.msra.mxu0 %vm1235_vm4, %v5313_v3  ;;  %2937 = vmatprep.mubr.f32.mxu0 %v2684_v21  ;;  %v2552_v5 = vpop.permute.xlu1 %2551  ;;  %v2962_v21 = vld [vmem:[%s5477_s6 + $0x8] sm:$0xff] }
 0x450   : > { %3524 = vmatprep.subr.msk.mxu0 %vm1235_vm4, %v2600_v54 }
 0x451   : > { %3525 = vmatpush3.msk.msra.mxu0 %vm1235_vm4, %v5327_v19 }
 0x452   : > { %3526 = vmatprep.subr.msk.mxu0 %vm1235_vm4, %v2598_v59 }
 0x453   : > { %v2590_v31 = vpop.permute.xlu0 %2589  ;;  %3527 = vmatpush3.msk.msra.mxu0 %vm1235_vm4, %v2566_v15 }
 0x454   : > { %3528 = vmatprep.subr.msk.mxu0 %vm1235_vm4, %v2596_v9 }
 0x455   : > { %3529 = vmatpush3.msk.msra.mxu0 %vm1235_vm4, %v2564_v37 }
 0x456   : > { %3530 = vmatprep.subr.msk.mxu0 %vm1235_vm4, %v2594_v12 }
 0x457   : > { %v2588_v48 = vpop.permute.xlu0 %2587  ;;  %3531 = vmatpush3.msk.msra.mxu0 %vm1235_vm4, %v2562_v45 }
 0x458   : > { %3532 = vmatprep.subr.msk.mxu0 %vm1235_vm4, %v2592_v63  ;;  %v2961_v63 = vld [vmem:[%s5477_s6] sm:$0xff] }
 0x459   : > { %3533 = vmatpush3.msk.msra.mxu0 %vm1235_vm4, %v2560_v57 }
 0x45a   : > { %3534 = vmatprep.subr.msk.mxu0 %vm1235_vm4, %v2590_v31 }
 0x45b   : > { %v2586_v32 = vpop.permute.xlu0 %2585  ;;  %3535 = vmatpush3.msk.msra.mxu0 %vm1235_vm4, %v2558_v53 }
 0x45c   : > { %3536 = vmatprep.subr.msk.mxu0 %vm1235_vm4, %v2588_v48 }
 0x45d   : > { %3537 = vmatpush3.msk.msra.mxu0 %vm1235_vm4, %v2556_v0 }
 0x45e   : > { %3538 = vmatprep.subr.msk.mxu0 %vm1235_vm4, %v2586_v32 }
 0x45f   : > { %v2584_v40 = vpop.permute.xlu0 %2583  ;;  %3539 = vmatpush3.msk.msra.mxu0 %vm1235_vm4, %v2554_v4  ;;  %v2964_v4 = vld [vmem:[%s5477_s6 + $0x18] sm:$0xff] }
 0x460   : > { %3540 = vmatprep.subr.msk.mxu0 %vm1235_vm4, %v2584_v40  ;;  %v2963_v40 = vld [vmem:[%s5477_s6 + $0x10] sm:$0xff] }
 0x461   : > { %3541 = vmatpush3.msk.msra.mxu0 %vm1235_vm4, %v2552_v5 }
 0x462   : > { %2938 = vmatmul.mubr.f32.vlgmr.msra.gmra.mxu0 %v2683_v35  ;;  %3627 = vmatprep.subr.msk.mxu0 %vm679_vm0, %v2960_v6 }
 0x463   : > { %2942 = vmatprep.mubr.f32.mxu0 %v2690_v62  ;;  %3628 = vmatpush3.msk.msra.mxu0 %vm679_vm0, %v2960_v6 }
 0x464   : > { %3629 = vmatprep.subr.mxu0 %v2959_v51 }
 0x465   : > { %3630 = vmatpush3.msra.mxu0 %v2959_v51 }
 0x466   : > { %2943 = vmatmul.mubr.f32.gmra.mxu0 %v2689_v8  ;;  %3631 = vmatprep.subr.mxu0 %v2958_v22 }
 0x467   : > { %2947 = vmatprep.mubr.f32.mxu0 %v2696_v30  ;;  %3632 = vmatpush3.msra.mxu0 %v2958_v22 }
 0x46a   : > { %2948 = vmatmul.mubr.f32.gmra.mxu0 %v2695_v24 }
 0x46b   : > { %2952 = vmatprep.mubr.f32.mxu0 %v2702_v36 }
 0x46e   : > { %2953 = vmatmul.mubr.f32.gmra.mxu0 %v2701_v1 }
 0x4e2   : > { %v3454_v10 = vpop.f32.mrf.mxu0 }
 0x4e4   : > { %v3455_v34 = vpop.f32.mrf.mxu0 }
 0x4e5   : > { %v3456_v17 = vadd.f32 %v3455_v34, %v3454_v10 }
 0x4e6   : > { %v3457_v33 = vpop.f32.mrf.mxu0 }
 0x4e8   : > { %v3458_v43 = vpop.f32.mrf.mxu0 }
 0x4e9   : > { %v3459_v7 = vadd.f32 %v3458_v43, %v3457_v33 }
 0x4ea   : > { %v3460_v61 = vpop.f32.mrf.mxu0 }
 0x4ec   : > { %v3461_v49 = vpop.f32.mrf.mxu0 }
 0x4ed   : > { %v3462_v28 = vadd.f32 %v3461_v49, %v3460_v61 }
 0x4ee   : > { %v3463_v16 = vpop.f32.mrf.mxu0 }
 0x4f0   : > { %v3464_v60 = vpop.f32.mrf.mxu0 }
 0x4f1   : > { %v3465_v9 = vadd.f32 %v3464_v60, %v3463_v16 }
 0x502   : > { %v3498_v26 = vpop.f32.mrf.mxu0 }
 0x504   : > { %v3499_v20 = vpop.f32.mrf.mxu0 }
 0x505   : > { %v3500_v56 = vadd.f32 %v3499_v20, %v3498_v26 }
 0x506   : > { %v3501_v27 = vpop.f32.mrf.mxu0 }
 0x507   : > { %v2855_v3 = vadd.f32 %v3500_v56, %v3456_v17 }
 0x508   : > { %v3502_v52 = vpop.f32.mrf.mxu0 }
 0x509   : > { %v3503_v14 = vadd.f32 %v3502_v52, %v3501_v27 }
 0x50a   : > { %v3504_v46 = vpop.f32.mrf.mxu0 }
 0x50b   : > { %v2860_v15 = vadd.f32 %v3503_v14, %v3459_v7 }
 0x50c   : > { %v3505_v44 = vpop.f32.mrf.mxu0 }
 0x50d   : > { %v3506_v55 = vadd.f32 %v3505_v44, %v3504_v46 }
 0x50e   : > { %v3507_v29 = vpop.f32.mrf.mxu0 }
 0x50f   : > { %v2865_v45 = vadd.f32 %v3506_v55, %v3462_v28 }
 0x510   : > { %v3508_v23 = vpop.f32.mrf.mxu0 }
 0x511   : > { %v3509_v59 = vadd.f32 %v3508_v23, %v3507_v29 }
 0x513   : > { %v2870_v41 = vadd.f32 %v3509_v59, %v3465_v9 }
 0x522   : > { %v3542_v2 = vpop.f32.mrf.mxu0 }
 0x524   : > { %v3543_v13 = vpop.f32.mrf.mxu0 }
 0x525   : > { %v3544_v11 = vadd.f32 %v3543_v13, %v3542_v2 }
 0x526   : > { %v3545_v58 = vpop.f32.mrf.mxu0 }
 0x527   : > { %v2940_v19 = vadd.f32 %v3544_v11, %v2855_v3 }
 0x528   : > { %v3546_v39 = vpop.f32.mrf.mxu0 }
 0x529   : > { %3633 = vmatprep.mubr.msk.f32.mxu0 %vm2965_vm5, %v2940_v19  ;;  %v3547_v54 = vadd.f32 %v3546_v39, %v3545_v58 }
 0x52a   : > { %v3548_v37 = vpop.f32.mrf.mxu0 }
 0x52b   : > { %v2945_v50 = vadd.f32 %v3547_v54, %v2860_v15 }
 0x52c   : > { %v3549_v47 = vpop.f32.mrf.mxu0 }
 0x52d   : > { %v3550_v42 = vadd.f32 %v3549_v47, %v3548_v37  ;;  %3634 = vmatmul.mubr.msk.f32.vlgmr.msra.gmra.mxu0 %vm2965_vm5, %v2945_v50 }
 0x52e   : > { %v3551_v18 = vpop.f32.mrf.mxu0 }
 0x52f   : > { %v2950_v25 = vadd.f32 %v3550_v42, %v2865_v45 }
 0x530   : > { %v3552_v57 = vpop.f32.mrf.mxu0 }
 0x531   : > { %v3553_v12 = vadd.f32 %v3552_v57, %v3551_v18  ;;  %3636 = vmatprep.mubr.msk.f32.mxu0 %vm2965_vm5, %v2950_v25 }
 0x533   : > { %v2955_v38 = vadd.f32 %v3553_v12, %v2870_v41 }
 0x535   : > { %3637 = vmatmul.mubr.msk.f32.gmra.mxu0 %vm2965_vm5, %v2955_v38 }
 0x5ed   : > { %v3635_v53 = vpop.f32.mrf.mxu0 }
 0x5ee   : > { %v3053_v31 = vadd.f32 %v3635_v53, %v2962_v21 }
 0x5ef   : > { %v3047_v0 = vpop.f32.mrf.mxu0 }
 0x5f0   : > { %3067 = vst.msk [vmem:[%s347_s20 + $0x8] sm:$0xff] %vm1106_vm2, %v3053_v31  ;;  %v3048_v48 = vadd.f32 %v3047_v0, %v2961_v63 }
 0x5f2   : > { %3066 = vst.msk [vmem:[%s347_s20] sm:$0xff] %vm1106_vm2, %v3048_v48 }
 0x5f5   : > { %v3638_v32 = vpop.f32.mrf.mxu0 }
 0x5f6   : > { %v3063_v35 = vadd.f32 %v3638_v32, %v2964_v4 }
 0x5f7   : > { %v3057_v5 = vpop.f32.mrf.mxu0 }
 0x5f8   : > { %3069 = vst.msk [vmem:[%s347_s20 + $0x18] sm:$0xff] %vm1106_vm2, %v3063_v35  ;;  %v3058_v62 = vadd.f32 %v3057_v5, %v2963_v40 }
 0x5fa   : > { %3068 = vst.msk [vmem:[%s347_s20 + $0x10] sm:$0xff] %vm1106_vm2, %v3058_v62 }
 0x5fb PF: > { %s20_s30 = sadd.s32 1, %s3704_s30  }
 0x5fc   : > { %p17_p1 = scmp.ge.s32.totalorder %s20_s30, 4  }
 0x5fe   :  { %19 = sbr.rel (!%p17_p1) target bundleno = 1 (0x1), region = 91 }
 0x603   :  { %3091 = vsyncpa [#allocation3], 1 }
 0x604   :  { %3093 = vsyncpa [#allocation3 + $0x1], 1 }

</bundles_post_ra>
